<compile_context>
chip_gen: v7x
topology: tpu7x:2x2x1
jax: 0.10.0
libtpu: 0.0.40
codegen_flags: <defaults>
</compile_context>

<pallas_src>
import jax
import jax.numpy as jnp
from jax.experimental import pallas as pl
from jax.experimental.pallas import tpu as pltpu


# ----------------------------------------------------------------------------
# Kernel A: embedding row gather + mean over the context window.
# ----------------------------------------------------------------------------
def gather_mean_kernel(ids_ref, emb_hbm, embeds_ref, gbuf, sems):
    """ids_ref:    (B, C) int32 in SMEM (scalar prefetch)
    emb_hbm:    (V, E) f32 embedding table, left in HBM (pl.ANY)
    embeds_ref: (B, E) bf16 output -- mean embedding, cast once for the MXU
    gbuf:       (B, C, E) f32 VMEM scratch holding the gathered rows
    sems:       (B, C) DMA semaphores (all copies in flight at once)."""
    B, C = ids_ref.shape
    V, E = emb_hbm.shape

    # Start all B*C row DMAs, then wait.  B*C (batch * context window) is small,
    # so the unrolled descriptor-per-row gather is fine here.
    # TODO(synk): for very large B*C this should become a pipelined fori_loop
    # gather (or move to the wrapper) to bound code size / descriptor overhead.
    copies = []
    for b in range(B):
        for c in range(C):
            # Clamp ids so out-of-range tokens can't read arbitrary HBM.
            # (Semantic divergence: torch nn.Embedding would raise instead.)
            idx = jnp.minimum(jnp.maximum(ids_ref[b, c], 0), V - 1)
            cp = pltpu.make_async_copy(
                emb_hbm.at[pl.ds(idx, 1), :],   # (1, E) row in HBM
                gbuf.at[b, pl.ds(c, 1), :],     # (1, E) slot in VMEM
                sems.at[b, c])
            cp.start()
            copies.append(cp)
    for cp in copies:
        cp.wait()

    # Mean over the context window accumulated in f32; single f32->bf16 cast
    # (hoisted out of the projection's per-tile loop).
    embeds_ref[...] = gbuf[...].mean(axis=1).astype(embeds_ref.dtype)


# ----------------------------------------------------------------------------
# Kernel B: projection (B, E) @ (V, E)^T -> (B, V), weight streamed in V tiles.
# ----------------------------------------------------------------------------
def projection_kernel(embeds_ref, w_ref, out_ref):
    """embeds_ref: (B, E) bf16 mean embedding (same block every grid step)
    w_ref:      (TV, E) bf16 weight tile (torch (V, E) layout)
    out_ref:    (B, TV) f32 output tile (lane-dense)."""
    out_ref[...] = jax.lax.dot_general(
        embeds_ref[...], w_ref[...],
        dimension_numbers=(((1,), (1,)), ((), ())),   # contract on E: A @ W^T
        preferred_element_type=jnp.float32,
    )


def _vmem_capacity_bytes():
    try:
        return int(pltpu.get_tpu_info().vmem_capacity_bytes)
    except Exception:
        return 64 << 20   # conservative: v7x has 64 MiB/TC (v5e/v6e: 128 MiB)


def _choose_v_tile(V, E, w_itemsize, vmem_cap):
    """Pick TV so each streamed weight tile is multi-MiB (amortizes per-grid-step
    overhead) while double-buffering stays well inside VMEM on every chip gen."""
    target_tile_bytes = min(4 << 20, vmem_cap // 16)
    tv = (target_tile_bytes // (E * w_itemsize)) // 128 * 128   # lane-aligned TV
    tv = max(tv, 128)
    if tv >= V:
        return V                                     # grid of 1 (demo shapes)
    # Keep TV a divisor of V so the wrapper needs no remainder handling.
    while V % tv != 0 and tv > 128:
        tv -= 128
    return tv if V % tv == 0 else V


def cbow_forward(x_idx, emb_table, lin_weight):
    """x_idx: (B, C) int; emb_table: (V, E) f32; lin_weight: (V, E) bf16 (torch layout)."""
    B, C = x_idx.shape
    V, E = emb_table.shape
    assert lin_weight.shape == (V, E)
    x_idx = x_idx.astype(jnp.int32)

    # --- Kernel A: gather + mean -> (B, E) bf16 -------------------------------
    embeds = pl.pallas_call(
        gather_mean_kernel,
        out_shape=jax.ShapeDtypeStruct((B, E), jnp.bfloat16),
        grid_spec=pltpu.PrefetchScalarGridSpec(
            num_scalar_prefetch=1,                          # x_idx -> SMEM
            grid=(1,),
            in_specs=[pl.BlockSpec(memory_space=pl.ANY)],   # table stays in HBM
            out_specs=pl.BlockSpec((B, E), lambda i, ids: (0, 0)),
            scratch_shapes=[pltpu.VMEM((B, C, E), jnp.float32),
                            pltpu.SemaphoreType.DMA((B, C))],
        ),
        compiler_params=pltpu.CompilerParams(
            dimension_semantics=("arbitrary",)),
    )(x_idx, emb_table)

    # --- Kernel B: projection, weight streamed over V tiles -------------------
    w_itemsize = jnp.dtype(lin_weight.dtype).itemsize
    vmem_cap = _vmem_capacity_bytes()
    TV = _choose_v_tile(V, E, w_itemsize, vmem_cap)

    # Double-buffered weight + output tiles, plus the resident embeds block.
    vmem_needed = 2 * (TV * E * w_itemsize + B * TV * 4) + 2 * (B * E * 2)
    vmem_limit = min(vmem_cap, max(32 << 20, int(1.5 * vmem_needed) + (4 << 20)))

    cost = pl.CostEstimate(
        flops=2 * B * E * V,
        transcendentals=0,
        bytes_accessed=(V * E * w_itemsize      # streamed weight (dominant)
                        + B * E * 2             # mean embedding (bf16)
                        + B * V * 4),           # output
    )

    out = pl.pallas_call(
        projection_kernel,
        out_shape=jax.ShapeDtypeStruct((B, V), jnp.float32),
        grid_spec=pltpu.PrefetchScalarGridSpec(
            num_scalar_prefetch=0,
            grid=(V // TV,),
            in_specs=[
                pl.BlockSpec((B, E), lambda j: (0, 0)),     # resident activation
                pl.BlockSpec((TV, E), lambda j: (j, 0)),    # streamed weight tile
            ],
            out_specs=pl.BlockSpec((B, TV), lambda j: (0, j)),
        ),
        compiler_params=pltpu.CompilerParams(
            # No scratch carry across V tiles anymore -> safe to split the V
            # axis across TensorCores (v7x megacore); no-op on v5e/v6e.
            dimension_semantics=("parallel",),
            vmem_limit_bytes=vmem_limit),
        cost_estimate=cost,
    )(embeds, lin_weight)
    return out


if __name__ == "__main__":
    # Small, TPU-friendly shapes implied by the module.
    B, C = 8, 4            # batch, context window
    V, E = 2048, 128       # vocab size, embedding dim

    key = jax.random.PRNGKey(0)
    k_idx, k_emb, k_lin = jax.random.split(key, 3)

    x_idx = jax.random.randint(k_idx, (B, C), 0, V, dtype=jnp.int32)
    # nn.Embedding default ~ N(0, 1); nn.Linear ~ U(-1/sqrt(E), 1/sqrt(E)).
    emb_table = jax.random.normal(k_emb, (V, E), dtype=jnp.float32)
    lin_weight_f32 = jax.random.uniform(
        k_lin, (V, E), dtype=jnp.float32,
        minval=-1.0 / (E ** 0.5), maxval=1.0 / (E ** 0.5))
    lin_weight = lin_weight_f32.astype(jnp.bfloat16)   # streamed weight in bf16

    out = cbow_forward(x_idx, emb_table, lin_weight)
    out = jax.block_until_ready(out)

    # Reference in plain JAX (mirrors the PyTorch forward; the weight is the
    # same bf16 parameter the kernel sees, promoted to f32, and the mean
    # embedding is rounded once to bf16 exactly as in the kernel).
    ref_embeds = jnp.take(emb_table, x_idx, axis=0).mean(axis=1)          # (B, E) f32
    ref_embeds = ref_embeds.astype(jnp.bfloat16).astype(jnp.float32)
    ref = ref_embeds @ lin_weight.astype(jnp.float32).T                   # (B, V)

    assert out.shape == (B, V)
    assert jnp.allclose(out, ref, atol=1e-2, rtol=1e-2)

    print("KERNEL_OK")
</pallas_src>

<mosaic_0001>
module attributes {stable_mosaic.version = 11 : i64} {
  func.func @gather_mean_kernel(%arg0: i32, %arg1: memref<8x4xi32, #tpu.memory_space<smem>>, %arg2: memref<2048x128xf32, #tpu.memory_space<any>>, %arg3: memref<8x128xbf16, #tpu.memory_space<vmem>>, %arg4: memref<8x4x128xf32, #tpu.memory_space<vmem>>, %arg5: memref<8x4x!tpu.dma_semaphore, #tpu.memory_space<semaphore_mem>>) attributes {dimension_semantics = [#tpu.dimension_semantics<arbitrary>], iteration_bounds = array<i64: 1>, scalar_prefetch = 1 : i64, scratch_operands = 2 : i64, tpu.core_type = #tpu.core_type<tc>, window_params = [{}, {pipeline_mode = #tpu.pipeline_mode<synchronous>, transform_indices = @transform_1, window_bounds = array<i64: 8, 128>}]} {
    %c0 = arith.constant 0 : index
    %c0_0 = arith.constant 0 : index
    %0 = memref.load %arg1[%c0, %c0_0] : memref<8x4xi32, #tpu.memory_space<smem>>
    %c0_i32 = arith.constant 0 : i32
    %1 = arith.maxsi %0, %c0_i32 : i32
    %c2047_i32 = arith.constant 2047 : i32
    %2 = arith.minsi %1, %c2047_i32 : i32
    %c0_i32_1 = arith.constant 0 : i32
    %c0_i32_2 = arith.constant 0 : i32
    %c0_i32_3 = arith.constant 0 : i32
    %c0_i32_4 = arith.constant 0 : i32
    %3 = tpu.memref_slice %arg2[%2, %c0_i32_4] : memref<2048x128xf32, #tpu.memory_space<any>> -> memref<1x128xf32, #tpu.memory_space<any>>
    %c0_i32_5 = arith.constant 0 : i32
    %c0_i32_6 = arith.constant 0 : i32
    %4 = tpu.memref_slice %arg4[%c0_i32_1, %c0_i32_5, %c0_i32_6] : memref<8x4x128xf32, #tpu.memory_space<vmem>> -> memref<1x1x128xf32, #tpu.memory_space<vmem>>
    %5 = tpu.memref_squeeze %4 : memref<1x1x128xf32, #tpu.memory_space<vmem>> -> memref<1x128xf32, #tpu.memory_space<vmem>>
    %6 = tpu.memref_slice %arg5[%c0_i32_2, %c0_i32_3] : memref<8x4x!tpu.dma_semaphore, #tpu.memory_space<semaphore_mem>> -> memref<1x1x!tpu.dma_semaphore, #tpu.memory_space<semaphore_mem>>
    %7 = tpu.memref_squeeze %6 : memref<1x1x!tpu.dma_semaphore, #tpu.memory_space<semaphore_mem>> -> memref<!tpu.dma_semaphore, #tpu.memory_space<semaphore_mem>>
    tpu.enqueue_dma source(%3 : memref<1x128xf32, #tpu.memory_space<any>>) target(%5 : memref<1x128xf32, #tpu.memory_space<vmem>>) target_semaphore(%7 : memref<!tpu.dma_semaphore, #tpu.memory_space<semaphore_mem>>)
    %c0_7 = arith.constant 0 : index
    %c1 = arith.constant 1 : index
    %8 = memref.load %arg1[%c0_7, %c1] : memref<8x4xi32, #tpu.memory_space<smem>>
    %c0_i32_8 = arith.constant 0 : i32
    %9 = arith.maxsi %8, %c0_i32_8 : i32
    %c2047_i32_9 = arith.constant 2047 : i32
    %10 = arith.minsi %9, %c2047_i32_9 : i32
    %c0_i32_10 = arith.constant 0 : i32
    %c0_i32_11 = arith.constant 0 : i32
    %c1_i32 = arith.constant 1 : i32
    %c0_i32_12 = arith.constant 0 : i32
    %11 = tpu.memref_slice %arg2[%10, %c0_i32_12] : memref<2048x128xf32, #tpu.memory_space<any>> -> memref<1x128xf32, #tpu.memory_space<any>>
    %c1_i32_13 = arith.constant 1 : i32
    %c0_i32_14 = arith.constant 0 : i32
    %12 = tpu.memref_slice %arg4[%c0_i32_10, %c1_i32_13, %c0_i32_14] : memref<8x4x128xf32, #tpu.memory_space<vmem>> -> memref<1x1x128xf32, #tpu.memory_space<vmem>>
    %13 = tpu.memref_squeeze %12 : memref<1x1x128xf32, #tpu.memory_space<vmem>> -> memref<1x128xf32, #tpu.memory_space<vmem>>
    %14 = tpu.memref_slice %arg5[%c0_i32_11, %c1_i32] : memref<8x4x!tpu.dma_semaphore, #tpu.memory_space<semaphore_mem>> -> memref<1x1x!tpu.dma_semaphore, #tpu.memory_space<semaphore_mem>>
    %15 = tpu.memref_squeeze %14 : memref<1x1x!tpu.dma_semaphore, #tpu.memory_space<semaphore_mem>> -> memref<!tpu.dma_semaphore, #tpu.memory_space<semaphore_mem>>
    tpu.enqueue_dma source(%11 : memref<1x128xf32, #tpu.memory_space<any>>) target(%13 : memref<1x128xf32, #tpu.memory_space<vmem>>) target_semaphore(%15 : memref<!tpu.dma_semaphore, #tpu.memory_space<semaphore_mem>>)
    %c0_15 = arith.constant 0 : index
    %c2 = arith.constant 2 : index
    %16 = memref.load %arg1[%c0_15, %c2] : memref<8x4xi32, #tpu.memory_space<smem>>
    %c0_i32_16 = arith.constant 0 : i32
    %17 = arith.maxsi %16, %c0_i32_16 : i32
    %c2047_i32_17 = arith.constant 2047 : i32
    %18 = arith.minsi %17, %c2047_i32_17 : i32
    %c0_i32_18 = arith.constant 0 : i32
    %c0_i32_19 = arith.constant 0 : i32
    %c2_i32 = arith.constant 2 : i32
    %c0_i32_20 = arith.constant 0 : i32
    %19 = tpu.memref_slice %arg2[%18, %c0_i32_20] : memref<2048x128xf32, #tpu.memory_space<any>> -> memref<1x128xf32, #tpu.memory_space<any>>
    %c2_i32_21 = arith.constant 2 : i32
    %c0_i32_22 = arith.constant 0 : i32
    %20 = tpu.memref_slice %arg4[%c0_i32_18, %c2_i32_21, %c0_i32_22] : memref<8x4x128xf32, #tpu.memory_space<vmem>> -> memref<1x1x128xf32, #tpu.memory_space<vmem>>
    %21 = tpu.memref_squeeze %20 : memref<1x1x128xf32, #tpu.memory_space<vmem>> -> memref<1x128xf32, #tpu.memory_space<vmem>>
    %22 = tpu.memref_slice %arg5[%c0_i32_19, %c2_i32] : memref<8x4x!tpu.dma_semaphore, #tpu.memory_space<semaphore_mem>> -> memref<1x1x!tpu.dma_semaphore, #tpu.memory_space<semaphore_mem>>
    %23 = tpu.memref_squeeze %22 : memref<1x1x!tpu.dma_semaphore, #tpu.memory_space<semaphore_mem>> -> memref<!tpu.dma_semaphore, #tpu.memory_space<semaphore_mem>>
    tpu.enqueue_dma source(%19 : memref<1x128xf32, #tpu.memory_space<any>>) target(%21 : memref<1x128xf32, #tpu.memory_space<vmem>>) target_semaphore(%23 : memref<!tpu.dma_semaphore, #tpu.memory_space<semaphore_mem>>)
    %c0_23 = arith.constant 0 : index
    %c3 = arith.constant 3 : index
    %24 = memref.load %arg1[%c0_23, %c3] : memref<8x4xi32, #tpu.memory_space<smem>>
    %c0_i32_24 = arith.constant 0 : i32
    %25 = arith.maxsi %24, %c0_i32_24 : i32
    %c2047_i32_25 = arith.constant 2047 : i32
    %26 = arith.minsi %25, %c2047_i32_25 : i32
    %c0_i32_26 = arith.constant 0 : i32
    %c0_i32_27 = arith.constant 0 : i32
    %c3_i32 = arith.constant 3 : i32
    %c0_i32_28 = arith.constant 0 : i32
    %27 = tpu.memref_slice %arg2[%26, %c0_i32_28] : memref<2048x128xf32, #tpu.memory_space<any>> -> memref<1x128xf32, #tpu.memory_space<any>>
    %c3_i32_29 = arith.constant 3 : i32
    %c0_i32_30 = arith.constant 0 : i32
    %28 = tpu.memref_slice %arg4[%c0_i32_26, %c3_i32_29, %c0_i32_30] : memref<8x4x128xf32, #tpu.memory_space<vmem>> -> memref<1x1x128xf32, #tpu.memory_space<vmem>>
    %29 = tpu.memref_squeeze %28 : memref<1x1x128xf32, #tpu.memory_space<vmem>> -> memref<1x128xf32, #tpu.memory_space<vmem>>
    %30 = tpu.memref_slice %arg5[%c0_i32_27, %c3_i32] : memref<8x4x!tpu.dma_semaphore, #tpu.memory_space<semaphore_mem>> -> memref<1x1x!tpu.dma_semaphore, #tpu.memory_space<semaphore_mem>>
    %31 = tpu.memref_squeeze %30 : memref<1x1x!tpu.dma_semaphore, #tpu.memory_space<semaphore_mem>> -> memref<!tpu.dma_semaphore, #tpu.memory_space<semaphore_mem>>
    tpu.enqueue_dma source(%27 : memref<1x128xf32, #tpu.memory_space<any>>) target(%29 : memref<1x128xf32, #tpu.memory_space<vmem>>) target_semaphore(%31 : memref<!tpu.dma_semaphore, #tpu.memory_space<semaphore_mem>>)
    %c1_31 = arith.constant 1 : index
    %c0_32 = arith.constant 0 : index
    %32 = memref.load %arg1[%c1_31, %c0_32] : memref<8x4xi32, #tpu.memory_space<smem>>
    %c0_i32_33 = arith.constant 0 : i32
    %33 = arith.maxsi %32, %c0_i32_33 : i32
    %c2047_i32_34 = arith.constant 2047 : i32
    %34 = arith.minsi %33, %c2047_i32_34 : i32
    %c1_i32_35 = arith.constant 1 : i32
    %c1_i32_36 = arith.constant 1 : i32
    %c0_i32_37 = arith.constant 0 : i32
    %c0_i32_38 = arith.constant 0 : i32
    %35 = tpu.memref_slice %arg2[%34, %c0_i32_38] : memref<2048x128xf32, #tpu.memory_space<any>> -> memref<1x128xf32, #tpu.memory_space<any>>
    %c0_i32_39 = arith.constant 0 : i32
    %c0_i32_40 = arith.constant 0 : i32
    %36 = tpu.memref_slice %arg4[%c1_i32_35, %c0_i32_39, %c0_i32_40] : memref<8x4x128xf32, #tpu.memory_space<vmem>> -> memref<1x1x128xf32, #tpu.memory_space<vmem>>
    %37 = tpu.memref_squeeze %36 : memref<1x1x128xf32, #tpu.memory_space<vmem>> -> memref<1x128xf32, #tpu.memory_space<vmem>>
    %38 = tpu.memref_slice %arg5[%c1_i32_36, %c0_i32_37] : memref<8x4x!tpu.dma_semaphore, #tpu.memory_space<semaphore_mem>> -> memref<1x1x!tpu.dma_semaphore, #tpu.memory_space<semaphore_mem>>
    %39 = tpu.memref_squeeze %38 : memref<1x1x!tpu.dma_semaphore, #tpu.memory_space<semaphore_mem>> -> memref<!tpu.dma_semaphore, #tpu.memory_space<semaphore_mem>>
    tpu.enqueue_dma source(%35 : memref<1x128xf32, #tpu.memory_space<any>>) target(%37 : memref<1x128xf32, #tpu.memory_space<vmem>>) target_semaphore(%39 : memref<!tpu.dma_semaphore, #tpu.memory_space<semaphore_mem>>)
    %c1_41 = arith.constant 1 : index
    %c1_42 = arith.constant 1 : index
    %40 = memref.load %arg1[%c1_41, %c1_42] : memref<8x4xi32, #tpu.memory_space<smem>>
    %c0_i32_43 = arith.constant 0 : i32
    %41 = arith.maxsi %40, %c0_i32_43 : i32
    %c2047_i32_44 = arith.constant 2047 : i32
    %42 = arith.minsi %41, %c2047_i32_44 : i32
    %c1_i32_45 = arith.constant 1 : i32
    %c1_i32_46 = arith.constant 1 : i32
    %c1_i32_47 = arith.constant 1 : i32
    %c0_i32_48 = arith.constant 0 : i32
    %43 = tpu.memref_slice %arg2[%42, %c0_i32_48] : memref<2048x128xf32, #tpu.memory_space<any>> -> memref<1x128xf32, #tpu.memory_space<any>>
    %c1_i32_49 = arith.constant 1 : i32
    %c0_i32_50 = arith.constant 0 : i32
    %44 = tpu.memref_slice %arg4[%c1_i32_45, %c1_i32_49, %c0_i32_50] : memref<8x4x128xf32, #tpu.memory_space<vmem>> -> memref<1x1x128xf32, #tpu.memory_space<vmem>>
    %45 = tpu.memref_squeeze %44 : memref<1x1x128xf32, #tpu.memory_space<vmem>> -> memref<1x128xf32, #tpu.memory_space<vmem>>
    %46 = tpu.memref_slice %arg5[%c1_i32_46, %c1_i32_47] : memref<8x4x!tpu.dma_semaphore, #tpu.memory_space<semaphore_mem>> -> memref<1x1x!tpu.dma_semaphore, #tpu.memory_space<semaphore_mem>>
    %47 = tpu.memref_squeeze %46 : memref<1x1x!tpu.dma_semaphore, #tpu.memory_space<semaphore_mem>> -> memref<!tpu.dma_semaphore, #tpu.memory_space<semaphore_mem>>
    tpu.enqueue_dma source(%43 : memref<1x128xf32, #tpu.memory_space<any>>) target(%45 : memref<1x128xf32, #tpu.memory_space<vmem>>) target_semaphore(%47 : memref<!tpu.dma_semaphore, #tpu.memory_space<semaphore_mem>>)
    %c1_51 = arith.constant 1 : index
    %c2_52 = arith.constant 2 : index
    %48 = memref.load %arg1[%c1_51, %c2_52] : memref<8x4xi32, #tpu.memory_space<smem>>
    %c0_i32_53 = arith.constant 0 : i32
    %49 = arith.maxsi %48, %c0_i32_53 : i32
    %c2047_i32_54 = arith.constant 2047 : i32
    %50 = arith.minsi %49, %c2047_i32_54 : i32
    %c1_i32_55 = arith.constant 1 : i32
    %c1_i32_56 = arith.constant 1 : i32
    %c2_i32_57 = arith.constant 2 : i32
    %c0_i32_58 = arith.constant 0 : i32
    %51 = tpu.memref_slice %arg2[%50, %c0_i32_58] : memref<2048x128xf32, #tpu.memory_space<any>> -> memref<1x128xf32, #tpu.memory_space<any>>
    %c2_i32_59 = arith.constant 2 : i32
    %c0_i32_60 = arith.constant 0 : i32
    %52 = tpu.memref_slice %arg4[%c1_i32_55, %c2_i32_59, %c0_i32_60] : memref<8x4x128xf32, #tpu.memory_space<vmem>> -> memref<1x1x128xf32, #tpu.memory_space<vmem>>
    %53 = tpu.memref_squeeze %52 : memref<1x1x128xf32, #tpu.memory_space<vmem>> -> memref<1x128xf32, #tpu.memory_space<vmem>>
    %54 = tpu.memref_slice %arg5[%c1_i32_56, %c2_i32_57] : memref<8x4x!tpu.dma_semaphore, #tpu.memory_space<semaphore_mem>> -> memref<1x1x!tpu.dma_semaphore, #tpu.memory_space<semaphore_mem>>
    %55 = tpu.memref_squeeze %54 : memref<1x1x!tpu.dma_semaphore, #tpu.memory_space<semaphore_mem>> -> memref<!tpu.dma_semaphore, #tpu.memory_space<semaphore_mem>>
    tpu.enqueue_dma source(%51 : memref<1x128xf32, #tpu.memory_space<any>>) target(%53 : memref<1x128xf32, #tpu.memory_space<vmem>>) target_semaphore(%55 : memref<!tpu.dma_semaphore, #tpu.memory_space<semaphore_mem>>)
    %c1_61 = arith.constant 1 : index
    %c3_62 = arith.constant 3 : index
    %56 = memref.load %arg1[%c1_61, %c3_62] : memref<8x4xi32, #tpu.memory_space<smem>>
    %c0_i32_63 = arith.constant 0 : i32
    %57 = arith.maxsi %56, %c0_i32_63 : i32
    %c2047_i32_64 = arith.constant 2047 : i32
    %58 = arith.minsi %57, %c2047_i32_64 : i32
    %c1_i32_65 = arith.constant 1 : i32
    %c1_i32_66 = arith.constant 1 : i32
    %c3_i32_67 = arith.constant 3 : i32
    %c0_i32_68 = arith.constant 0 : i32
    %59 = tpu.memref_slice %arg2[%58, %c0_i32_68] : memref<2048x128xf32, #tpu.memory_space<any>> -> memref<1x128xf32, #tpu.memory_space<any>>
    %c3_i32_69 = arith.constant 3 : i32
    %c0_i32_70 = arith.constant 0 : i32
    %60 = tpu.memref_slice %arg4[%c1_i32_65, %c3_i32_69, %c0_i32_70] : memref<8x4x128xf32, #tpu.memory_space<vmem>> -> memref<1x1x128xf32, #tpu.memory_space<vmem>>
    %61 = tpu.memref_squeeze %60 : memref<1x1x128xf32, #tpu.memory_space<vmem>> -> memref<1x128xf32, #tpu.memory_space<vmem>>
    %62 = tpu.memref_slice %arg5[%c1_i32_66, %c3_i32_67] : memref<8x4x!tpu.dma_semaphore, #tpu.memory_space<semaphore_mem>> -> memref<1x1x!tpu.dma_semaphore, #tpu.memory_space<semaphore_mem>>
    %63 = tpu.memref_squeeze %62 : memref<1x1x!tpu.dma_semaphore, #tpu.memory_space<semaphore_mem>> -> memref<!tpu.dma_semaphore, #tpu.memory_space<semaphore_mem>>
    tpu.enqueue_dma source(%59 : memref<1x128xf32, #tpu.memory_space<any>>) target(%61 : memref<1x128xf32, #tpu.memory_space<vmem>>) target_semaphore(%63 : memref<!tpu.dma_semaphore, #tpu.memory_space<semaphore_mem>>)
    %c2_71 = arith.constant 2 : index
    %c0_72 = arith.constant 0 : index
    %64 = memref.load %arg1[%c2_71, %c0_72] : memref<8x4xi32, #tpu.memory_space<smem>>
    %c0_i32_73 = arith.constant 0 : i32
    %65 = arith.maxsi %64, %c0_i32_73 : i32
    %c2047_i32_74 = arith.constant 2047 : i32
    %66 = arith.minsi %65, %c2047_i32_74 : i32
    %c2_i32_75 = arith.constant 2 : i32
    %c2_i32_76 = arith.constant 2 : i32
    %c0_i32_77 = arith.constant 0 : i32
    %c0_i32_78 = arith.constant 0 : i32
    %67 = tpu.memref_slice %arg2[%66, %c0_i32_78] : memref<2048x128xf32, #tpu.memory_space<any>> -> memref<1x128xf32, #tpu.memory_space<any>>
    %c0_i32_79 = arith.constant 0 : i32
    %c0_i32_80 = arith.constant 0 : i32
    %68 = tpu.memref_slice %arg4[%c2_i32_75, %c0_i32_79, %c0_i32_80] : memref<8x4x128xf32, #tpu.memory_space<vmem>> -> memref<1x1x128xf32, #tpu.memory_space<vmem>>
    %69 = tpu.memref_squeeze %68 : memref<1x1x128xf32, #tpu.memory_space<vmem>> -> memref<1x128xf32, #tpu.memory_space<vmem>>
    %70 = tpu.memref_slice %arg5[%c2_i32_76, %c0_i32_77] : memref<8x4x!tpu.dma_semaphore, #tpu.memory_space<semaphore_mem>> -> memref<1x1x!tpu.dma_semaphore, #tpu.memory_space<semaphore_mem>>
    %71 = tpu.memref_squeeze %70 : memref<1x1x!tpu.dma_semaphore, #tpu.memory_space<semaphore_mem>> -> memref<!tpu.dma_semaphore, #tpu.memory_space<semaphore_mem>>
    tpu.enqueue_dma source(%67 : memref<1x128xf32, #tpu.memory_space<any>>) target(%69 : memref<1x128xf32, #tpu.memory_space<vmem>>) target_semaphore(%71 : memref<!tpu.dma_semaphore, #tpu.memory_space<semaphore_mem>>)
    %c2_81 = arith.constant 2 : index
    %c1_82 = arith.constant 1 : index
    %72 = memref.load %arg1[%c2_81, %c1_82] : memref<8x4xi32, #tpu.memory_space<smem>>
    %c0_i32_83 = arith.constant 0 : i32
    %73 = arith.maxsi %72, %c0_i32_83 : i32
    %c2047_i32_84 = arith.constant 2047 : i32
    %74 = arith.minsi %73, %c2047_i32_84 : i32
    %c2_i32_85 = arith.constant 2 : i32
    %c2_i32_86 = arith.constant 2 : i32
    %c1_i32_87 = arith.constant 1 : i32
    %c0_i32_88 = arith.constant 0 : i32
    %75 = tpu.memref_slice %arg2[%74, %c0_i32_88] : memref<2048x128xf32, #tpu.memory_space<any>> -> memref<1x128xf32, #tpu.memory_space<any>>
    %c1_i32_89 = arith.constant 1 : i32
    %c0_i32_90 = arith.constant 0 : i32
    %76 = tpu.memref_slice %arg4[%c2_i32_85, %c1_i32_89, %c0_i32_90] : memref<8x4x128xf32, #tpu.memory_space<vmem>> -> memref<1x1x128xf32, #tpu.memory_space<vmem>>
    %77 = tpu.memref_squeeze %76 : memref<1x1x128xf32, #tpu.memory_space<vmem>> -> memref<1x128xf32, #tpu.memory_space<vmem>>
    %78 = tpu.memref_slice %arg5[%c2_i32_86, %c1_i32_87] : memref<8x4x!tpu.dma_semaphore, #tpu.memory_space<semaphore_mem>> -> memref<1x1x!tpu.dma_semaphore, #tpu.memory_space<semaphore_mem>>
    %79 = tpu.memref_squeeze %78 : memref<1x1x!tpu.dma_semaphore, #tpu.memory_space<semaphore_mem>> -> memref<!tpu.dma_semaphore, #tpu.memory_space<semaphore_mem>>
    tpu.enqueue_dma source(%75 : memref<1x128xf32, #tpu.memory_space<any>>) target(%77 : memref<1x128xf32, #tpu.memory_space<vmem>>) target_semaphore(%79 : memref<!tpu.dma_semaphore, #tpu.memory_space<semaphore_mem>>)
    %c2_91 = arith.constant 2 : index
    %c2_92 = arith.constant 2 : index
    %80 = memref.load %arg1[%c2_91, %c2_92] : memref<8x4xi32, #tpu.memory_space<smem>>
    %c0_i32_93 = arith.constant 0 : i32
    %81 = arith.maxsi %80, %c0_i32_93 : i32
    %c2047_i32_94 = arith.constant 2047 : i32
    %82 = arith.minsi %81, %c2047_i32_94 : i32
    %c2_i32_95 = arith.constant 2 : i32
    %c2_i32_96 = arith.constant 2 : i32
    %c2_i32_97 = arith.constant 2 : i32
    %c0_i32_98 = arith.constant 0 : i32
    %83 = tpu.memref_slice %arg2[%82, %c0_i32_98] : memref<2048x128xf32, #tpu.memory_space<any>> -> memref<1x128xf32, #tpu.memory_space<any>>
    %c2_i32_99 = arith.constant 2 : i32
    %c0_i32_100 = arith.constant 0 : i32
    %84 = tpu.memref_slice %arg4[%c2_i32_95, %c2_i32_99, %c0_i32_100] : memref<8x4x128xf32, #tpu.memory_space<vmem>> -> memref<1x1x128xf32, #tpu.memory_space<vmem>>
    %85 = tpu.memref_squeeze %84 : memref<1x1x128xf32, #tpu.memory_space<vmem>> -> memref<1x128xf32, #tpu.memory_space<vmem>>
    %86 = tpu.memref_slice %arg5[%c2_i32_96, %c2_i32_97] : memref<8x4x!tpu.dma_semaphore, #tpu.memory_space<semaphore_mem>> -> memref<1x1x!tpu.dma_semaphore, #tpu.memory_space<semaphore_mem>>
    %87 = tpu.memref_squeeze %86 : memref<1x1x!tpu.dma_semaphore, #tpu.memory_space<semaphore_mem>> -> memref<!tpu.dma_semaphore, #tpu.memory_space<semaphore_mem>>
    tpu.enqueue_dma source(%83 : memref<1x128xf32, #tpu.memory_space<any>>) target(%85 : memref<1x128xf32, #tpu.memory_space<vmem>>) target_semaphore(%87 : memref<!tpu.dma_semaphore, #tpu.memory_space<semaphore_mem>>)
    %c2_101 = arith.constant 2 : index
    %c3_102 = arith.constant 3 : index
    %88 = memref.load %arg1[%c2_101, %c3_102] : memref<8x4xi32, #tpu.memory_space<smem>>
    %c0_i32_103 = arith.constant 0 : i32
    %89 = arith.maxsi %88, %c0_i32_103 : i32
    %c2047_i32_104 = arith.constant 2047 : i32
    %90 = arith.minsi %89, %c2047_i32_104 : i32
    %c2_i32_105 = arith.constant 2 : i32
    %c2_i32_106 = arith.constant 2 : i32
    %c3_i32_107 = arith.constant 3 : i32
    %c0_i32_108 = arith.constant 0 : i32
    %91 = tpu.memref_slice %arg2[%90, %c0_i32_108] : memref<2048x128xf32, #tpu.memory_space<any>> -> memref<1x128xf32, #tpu.memory_space<any>>
    %c3_i32_109 = arith.constant 3 : i32
    %c0_i32_110 = arith.constant 0 : i32
    %92 = tpu.memref_slice %arg4[%c2_i32_105, %c3_i32_109, %c0_i32_110] : memref<8x4x128xf32, #tpu.memory_space<vmem>> -> memref<1x1x128xf32, #tpu.memory_space<vmem>>
    %93 = tpu.memref_squeeze %92 : memref<1x1x128xf32, #tpu.memory_space<vmem>> -> memref<1x128xf32, #tpu.memory_space<vmem>>
    %94 = tpu.memref_slice %arg5[%c2_i32_106, %c3_i32_107] : memref<8x4x!tpu.dma_semaphore, #tpu.memory_space<semaphore_mem>> -> memref<1x1x!tpu.dma_semaphore, #tpu.memory_space<semaphore_mem>>
    %95 = tpu.memref_squeeze %94 : memref<1x1x!tpu.dma_semaphore, #tpu.memory_space<semaphore_mem>> -> memref<!tpu.dma_semaphore, #tpu.memory_space<semaphore_mem>>
    tpu.enqueue_dma source(%91 : memref<1x128xf32, #tpu.memory_space<any>>) target(%93 : memref<1x128xf32, #tpu.memory_space<vmem>>) target_semaphore(%95 : memref<!tpu.dma_semaphore, #tpu.memory_space<semaphore_mem>>)
    %c3_111 = arith.constant 3 : index
    %c0_112 = arith.constant 0 : index
    %96 = memref.load %arg1[%c3_111, %c0_112] : memref<8x4xi32, #tpu.memory_space<smem>>
    %c0_i32_113 = arith.constant 0 : i32
    %97 = arith.maxsi %96, %c0_i32_113 : i32
    %c2047_i32_114 = arith.constant 2047 : i32
    %98 = arith.minsi %97, %c2047_i32_114 : i32
    %c3_i32_115 = arith.constant 3 : i32
    %c3_i32_116 = arith.constant 3 : i32
    %c0_i32_117 = arith.constant 0 : i32
    %c0_i32_118 = arith.constant 0 : i32
    %99 = tpu.memref_slice %arg2[%98, %c0_i32_118] : memref<2048x128xf32, #tpu.memory_space<any>> -> memref<1x128xf32, #tpu.memory_space<any>>
    %c0_i32_119 = arith.constant 0 : i32
    %c0_i32_120 = arith.constant 0 : i32
    %100 = tpu.memref_slice %arg4[%c3_i32_115, %c0_i32_119, %c0_i32_120] : memref<8x4x128xf32, #tpu.memory_space<vmem>> -> memref<1x1x128xf32, #tpu.memory_space<vmem>>
    %101 = tpu.memref_squeeze %100 : memref<1x1x128xf32, #tpu.memory_space<vmem>> -> memref<1x128xf32, #tpu.memory_space<vmem>>
    %102 = tpu.memref_slice %arg5[%c3_i32_116, %c0_i32_117] : memref<8x4x!tpu.dma_semaphore, #tpu.memory_space<semaphore_mem>> -> memref<1x1x!tpu.dma_semaphore, #tpu.memory_space<semaphore_mem>>
    %103 = tpu.memref_squeeze %102 : memref<1x1x!tpu.dma_semaphore, #tpu.memory_space<semaphore_mem>> -> memref<!tpu.dma_semaphore, #tpu.memory_space<semaphore_mem>>
    tpu.enqueue_dma source(%99 : memref<1x128xf32, #tpu.memory_space<any>>) target(%101 : memref<1x128xf32, #tpu.memory_space<vmem>>) target_semaphore(%103 : memref<!tpu.dma_semaphore, #tpu.memory_space<semaphore_mem>>)
    %c3_121 = arith.constant 3 : index
    %c1_122 = arith.constant 1 : index
    %104 = memref.load %arg1[%c3_121, %c1_122] : memref<8x4xi32, #tpu.memory_space<smem>>
    %c0_i32_123 = arith.constant 0 : i32
    %105 = arith.maxsi %104, %c0_i32_123 : i32
    %c2047_i32_124 = arith.constant 2047 : i32
    %106 = arith.minsi %105, %c2047_i32_124 : i32
    %c3_i32_125 = arith.constant 3 : i32
    %c3_i32_126 = arith.constant 3 : i32
    %c1_i32_127 = arith.constant 1 : i32
    %c0_i32_128 = arith.constant 0 : i32
    %107 = tpu.memref_slice %arg2[%106, %c0_i32_128] : memref<2048x128xf32, #tpu.memory_space<any>> -> memref<1x128xf32, #tpu.memory_space<any>>
    %c1_i32_129 = arith.constant 1 : i32
    %c0_i32_130 = arith.constant 0 : i32
    %108 = tpu.memref_slice %arg4[%c3_i32_125, %c1_i32_129, %c0_i32_130] : memref<8x4x128xf32, #tpu.memory_space<vmem>> -> memref<1x1x128xf32, #tpu.memory_space<vmem>>
    %109 = tpu.memref_squeeze %108 : memref<1x1x128xf32, #tpu.memory_space<vmem>> -> memref<1x128xf32, #tpu.memory_space<vmem>>
    %110 = tpu.memref_slice %arg5[%c3_i32_126, %c1_i32_127] : memref<8x4x!tpu.dma_semaphore, #tpu.memory_space<semaphore_mem>> -> memref<1x1x!tpu.dma_semaphore, #tpu.memory_space<semaphore_mem>>
    %111 = tpu.memref_squeeze %110 : memref<1x1x!tpu.dma_semaphore, #tpu.memory_space<semaphore_mem>> -> memref<!tpu.dma_semaphore, #tpu.memory_space<semaphore_mem>>
    tpu.enqueue_dma source(%107 : memref<1x128xf32, #tpu.memory_space<any>>) target(%109 : memref<1x128xf32, #tpu.memory_space<vmem>>) target_semaphore(%111 : memref<!tpu.dma_semaphore, #tpu.memory_space<semaphore_mem>>)
    %c3_131 = arith.constant 3 : index
    %c2_132 = arith.constant 2 : index
    %112 = memref.load %arg1[%c3_131, %c2_132] : memref<8x4xi32, #tpu.memory_space<smem>>
    %c0_i32_133 = arith.constant 0 : i32
    %113 = arith.maxsi %112, %c0_i32_133 : i32
    %c2047_i32_134 = arith.constant 2047 : i32
    %114 = arith.minsi %113, %c2047_i32_134 : i32
    %c3_i32_135 = arith.constant 3 : i32
    %c3_i32_136 = arith.constant 3 : i32
    %c2_i32_137 = arith.constant 2 : i32
    %c0_i32_138 = arith.constant 0 : i32
    %115 = tpu.memref_slice %arg2[%114, %c0_i32_138] : memref<2048x128xf32, #tpu.memory_space<any>> -> memref<1x128xf32, #tpu.memory_space<any>>
    %c2_i32_139 = arith.constant 2 : i32
    %c0_i32_140 = arith.constant 0 : i32
    %116 = tpu.memref_slice %arg4[%c3_i32_135, %c2_i32_139, %c0_i32_140] : memref<8x4x128xf32, #tpu.memory_space<vmem>> -> memref<1x1x128xf32, #tpu.memory_space<vmem>>
    %117 = tpu.memref_squeeze %116 : memref<1x1x128xf32, #tpu.memory_space<vmem>> -> memref<1x128xf32, #tpu.memory_space<vmem>>
    %118 = tpu.memref_slice %arg5[%c3_i32_136, %c2_i32_137] : memref<8x4x!tpu.dma_semaphore, #tpu.memory_space<semaphore_mem>> -> memref<1x1x!tpu.dma_semaphore, #tpu.memory_space<semaphore_mem>>
    %119 = tpu.memref_squeeze %118 : memref<1x1x!tpu.dma_semaphore, #tpu.memory_space<semaphore_mem>> -> memref<!tpu.dma_semaphore, #tpu.memory_space<semaphore_mem>>
    tpu.enqueue_dma source(%115 : memref<1x128xf32, #tpu.memory_space<any>>) target(%117 : memref<1x128xf32, #tpu.memory_space<vmem>>) target_semaphore(%119 : memref<!tpu.dma_semaphore, #tpu.memory_space<semaphore_mem>>)
    %c3_141 = arith.constant 3 : index
    %c3_142 = arith.constant 3 : index
    %120 = memref.load %arg1[%c3_141, %c3_142] : memref<8x4xi32, #tpu.memory_space<smem>>
    %c0_i32_143 = arith.constant 0 : i32
    %121 = arith.maxsi %120, %c0_i32_143 : i32
    %c2047_i32_144 = arith.constant 2047 : i32
    %122 = arith.minsi %121, %c2047_i32_144 : i32
    %c3_i32_145 = arith.constant 3 : i32
    %c3_i32_146 = arith.constant 3 : i32
    %c3_i32_147 = arith.constant 3 : i32
    %c0_i32_148 = arith.constant 0 : i32
    %123 = tpu.memref_slice %arg2[%122, %c0_i32_148] : memref<2048x128xf32, #tpu.memory_space<any>> -> memref<1x128xf32, #tpu.memory_space<any>>
    %c3_i32_149 = arith.constant 3 : i32
    %c0_i32_150 = arith.constant 0 : i32
    %124 = tpu.memref_slice %arg4[%c3_i32_145, %c3_i32_149, %c0_i32_150] : memref<8x4x128xf32, #tpu.memory_space<vmem>> -> memref<1x1x128xf32, #tpu.memory_space<vmem>>
    %125 = tpu.memref_squeeze %124 : memref<1x1x128xf32, #tpu.memory_space<vmem>> -> memref<1x128xf32, #tpu.memory_space<vmem>>
    %126 = tpu.memref_slice %arg5[%c3_i32_146, %c3_i32_147] : memref<8x4x!tpu.dma_semaphore, #tpu.memory_space<semaphore_mem>> -> memref<1x1x!tpu.dma_semaphore, #tpu.memory_space<semaphore_mem>>
    %127 = tpu.memref_squeeze %126 : memref<1x1x!tpu.dma_semaphore, #tpu.memory_space<semaphore_mem>> -> memref<!tpu.dma_semaphore, #tpu.memory_space<semaphore_mem>>
    tpu.enqueue_dma source(%123 : memref<1x128xf32, #tpu.memory_space<any>>) target(%125 : memref<1x128xf32, #tpu.memory_space<vmem>>) target_semaphore(%127 : memref<!tpu.dma_semaphore, #tpu.memory_space<semaphore_mem>>)
    %c4 = arith.constant 4 : index
    %c0_151 = arith.constant 0 : index
    %128 = memref.load %arg1[%c4, %c0_151] : memref<8x4xi32, #tpu.memory_space<smem>>
    %c0_i32_152 = arith.constant 0 : i32
    %129 = arith.maxsi %128, %c0_i32_152 : i32
    %c2047_i32_153 = arith.constant 2047 : i32
    %130 = arith.minsi %129, %c2047_i32_153 : i32
    %c4_i32 = arith.constant 4 : i32
    %c4_i32_154 = arith.constant 4 : i32
    %c0_i32_155 = arith.constant 0 : i32
    %c0_i32_156 = arith.constant 0 : i32
    %131 = tpu.memref_slice %arg2[%130, %c0_i32_156] : memref<2048x128xf32, #tpu.memory_space<any>> -> memref<1x128xf32, #tpu.memory_space<any>>
    %c0_i32_157 = arith.constant 0 : i32
    %c0_i32_158 = arith.constant 0 : i32
    %132 = tpu.memref_slice %arg4[%c4_i32, %c0_i32_157, %c0_i32_158] : memref<8x4x128xf32, #tpu.memory_space<vmem>> -> memref<1x1x128xf32, #tpu.memory_space<vmem>>
    %133 = tpu.memref_squeeze %132 : memref<1x1x128xf32, #tpu.memory_space<vmem>> -> memref<1x128xf32, #tpu.memory_space<vmem>>
    %134 = tpu.memref_slice %arg5[%c4_i32_154, %c0_i32_155] : memref<8x4x!tpu.dma_semaphore, #tpu.memory_space<semaphore_mem>> -> memref<1x1x!tpu.dma_semaphore, #tpu.memory_space<semaphore_mem>>
    %135 = tpu.memref_squeeze %134 : memref<1x1x!tpu.dma_semaphore, #tpu.memory_space<semaphore_mem>> -> memref<!tpu.dma_semaphore, #tpu.memory_space<semaphore_mem>>
    tpu.enqueue_dma source(%131 : memref<1x128xf32, #tpu.memory_space<any>>) target(%133 : memref<1x128xf32, #tpu.memory_space<vmem>>) target_semaphore(%135 : memref<!tpu.dma_semaphore, #tpu.memory_space<semaphore_mem>>)
    %c4_159 = arith.constant 4 : index
    %c1_160 = arith.constant 1 : index
    %136 = memref.load %arg1[%c4_159, %c1_160] : memref<8x4xi32, #tpu.memory_space<smem>>
    %c0_i32_161 = arith.constant 0 : i32
    %137 = arith.maxsi %136, %c0_i32_161 : i32
    %c2047_i32_162 = arith.constant 2047 : i32
    %138 = arith.minsi %137, %c2047_i32_162 : i32
    %c4_i32_163 = arith.constant 4 : i32
    %c4_i32_164 = arith.constant 4 : i32
    %c1_i32_165 = arith.constant 1 : i32
    %c0_i32_166 = arith.constant 0 : i32
    %139 = tpu.memref_slice %arg2[%138, %c0_i32_166] : memref<2048x128xf32, #tpu.memory_space<any>> -> memref<1x128xf32, #tpu.memory_space<any>>
    %c1_i32_167 = arith.constant 1 : i32
    %c0_i32_168 = arith.constant 0 : i32
    %140 = tpu.memref_slice %arg4[%c4_i32_163, %c1_i32_167, %c0_i32_168] : memref<8x4x128xf32, #tpu.memory_space<vmem>> -> memref<1x1x128xf32, #tpu.memory_space<vmem>>
    %141 = tpu.memref_squeeze %140 : memref<1x1x128xf32, #tpu.memory_space<vmem>> -> memref<1x128xf32, #tpu.memory_space<vmem>>
    %142 = tpu.memref_slice %arg5[%c4_i32_164, %c1_i32_165] : memref<8x4x!tpu.dma_semaphore, #tpu.memory_space<semaphore_mem>> -> memref<1x1x!tpu.dma_semaphore, #tpu.memory_space<semaphore_mem>>
    %143 = tpu.memref_squeeze %142 : memref<1x1x!tpu.dma_semaphore, #tpu.memory_space<semaphore_mem>> -> memref<!tpu.dma_semaphore, #tpu.memory_space<semaphore_mem>>
    tpu.enqueue_dma source(%139 : memref<1x128xf32, #tpu.memory_space<any>>) target(%141 : memref<1x128xf32, #tpu.memory_space<vmem>>) target_semaphore(%143 : memref<!tpu.dma_semaphore, #tpu.memory_space<semaphore_mem>>)
    %c4_169 = arith.constant 4 : index
    %c2_170 = arith.constant 2 : index
    %144 = memref.load %arg1[%c4_169, %c2_170] : memref<8x4xi32, #tpu.memory_space<smem>>
    %c0_i32_171 = arith.constant 0 : i32
    %145 = arith.maxsi %144, %c0_i32_171 : i32
    %c2047_i32_172 = arith.constant 2047 : i32
    %146 = arith.minsi %145, %c2047_i32_172 : i32
    %c4_i32_173 = arith.constant 4 : i32
    %c4_i32_174 = arith.constant 4 : i32
    %c2_i32_175 = arith.constant 2 : i32
    %c0_i32_176 = arith.constant 0 : i32
    %147 = tpu.memref_slice %arg2[%146, %c0_i32_176] : memref<2048x128xf32, #tpu.memory_space<any>> -> memref<1x128xf32, #tpu.memory_space<any>>
    %c2_i32_177 = arith.constant 2 : i32
    %c0_i32_178 = arith.constant 0 : i32
    %148 = tpu.memref_slice %arg4[%c4_i32_173, %c2_i32_177, %c0_i32_178] : memref<8x4x128xf32, #tpu.memory_space<vmem>> -> memref<1x1x128xf32, #tpu.memory_space<vmem>>
    %149 = tpu.memref_squeeze %148 : memref<1x1x128xf32, #tpu.memory_space<vmem>> -> memref<1x128xf32, #tpu.memory_space<vmem>>
    %150 = tpu.memref_slice %arg5[%c4_i32_174, %c2_i32_175] : memref<8x4x!tpu.dma_semaphore, #tpu.memory_space<semaphore_mem>> -> memref<1x1x!tpu.dma_semaphore, #tpu.memory_space<semaphore_mem>>
    %151 = tpu.memref_squeeze %150 : memref<1x1x!tpu.dma_semaphore, #tpu.memory_space<semaphore_mem>> -> memref<!tpu.dma_semaphore, #tpu.memory_space<semaphore_mem>>
    tpu.enqueue_dma source(%147 : memref<1x128xf32, #tpu.memory_space<any>>) target(%149 : memref<1x128xf32, #tpu.memory_space<vmem>>) target_semaphore(%151 : memref<!tpu.dma_semaphore, #tpu.memory_space<semaphore_mem>>)
    %c4_179 = arith.constant 4 : index
    %c3_180 = arith.constant 3 : index
    %152 = memref.load %arg1[%c4_179, %c3_180] : memref<8x4xi32, #tpu.memory_space<smem>>
    %c0_i32_181 = arith.constant 0 : i32
    %153 = arith.maxsi %152, %c0_i32_181 : i32
    %c2047_i32_182 = arith.constant 2047 : i32
    %154 = arith.minsi %153, %c2047_i32_182 : i32
    %c4_i32_183 = arith.constant 4 : i32
    %c4_i32_184 = arith.constant 4 : i32
    %c3_i32_185 = arith.constant 3 : i32
    %c0_i32_186 = arith.constant 0 : i32
    %155 = tpu.memref_slice %arg2[%154, %c0_i32_186] : memref<2048x128xf32, #tpu.memory_space<any>> -> memref<1x128xf32, #tpu.memory_space<any>>
    %c3_i32_187 = arith.constant 3 : i32
    %c0_i32_188 = arith.constant 0 : i32
    %156 = tpu.memref_slice %arg4[%c4_i32_183, %c3_i32_187, %c0_i32_188] : memref<8x4x128xf32, #tpu.memory_space<vmem>> -> memref<1x1x128xf32, #tpu.memory_space<vmem>>
    %157 = tpu.memref_squeeze %156 : memref<1x1x128xf32, #tpu.memory_space<vmem>> -> memref<1x128xf32, #tpu.memory_space<vmem>>
    %158 = tpu.memref_slice %arg5[%c4_i32_184, %c3_i32_185] : memref<8x4x!tpu.dma_semaphore, #tpu.memory_space<semaphore_mem>> -> memref<1x1x!tpu.dma_semaphore, #tpu.memory_space<semaphore_mem>>
    %159 = tpu.memref_squeeze %158 : memref<1x1x!tpu.dma_semaphore, #tpu.memory_space<semaphore_mem>> -> memref<!tpu.dma_semaphore, #tpu.memory_space<semaphore_mem>>
    tpu.enqueue_dma source(%155 : memref<1x128xf32, #tpu.memory_space<any>>) target(%157 : memref<1x128xf32, #tpu.memory_space<vmem>>) target_semaphore(%159 : memref<!tpu.dma_semaphore, #tpu.memory_space<semaphore_mem>>)
    %c5 = arith.constant 5 : index
    %c0_189 = arith.constant 0 : index
    %160 = memref.load %arg1[%c5, %c0_189] : memref<8x4xi32, #tpu.memory_space<smem>>
    %c0_i32_190 = arith.constant 0 : i32
    %161 = arith.maxsi %160, %c0_i32_190 : i32
    %c2047_i32_191 = arith.constant 2047 : i32
    %162 = arith.minsi %161, %c2047_i32_191 : i32
    %c5_i32 = arith.constant 5 : i32
    %c5_i32_192 = arith.constant 5 : i32
    %c0_i32_193 = arith.constant 0 : i32
    %c0_i32_194 = arith.constant 0 : i32
    %163 = tpu.memref_slice %arg2[%162, %c0_i32_194] : memref<2048x128xf32, #tpu.memory_space<any>> -> memref<1x128xf32, #tpu.memory_space<any>>
    %c0_i32_195 = arith.constant 0 : i32
    %c0_i32_196 = arith.constant 0 : i32
    %164 = tpu.memref_slice %arg4[%c5_i32, %c0_i32_195, %c0_i32_196] : memref<8x4x128xf32, #tpu.memory_space<vmem>> -> memref<1x1x128xf32, #tpu.memory_space<vmem>>
    %165 = tpu.memref_squeeze %164 : memref<1x1x128xf32, #tpu.memory_space<vmem>> -> memref<1x128xf32, #tpu.memory_space<vmem>>
    %166 = tpu.memref_slice %arg5[%c5_i32_192, %c0_i32_193] : memref<8x4x!tpu.dma_semaphore, #tpu.memory_space<semaphore_mem>> -> memref<1x1x!tpu.dma_semaphore, #tpu.memory_space<semaphore_mem>>
    %167 = tpu.memref_squeeze %166 : memref<1x1x!tpu.dma_semaphore, #tpu.memory_space<semaphore_mem>> -> memref<!tpu.dma_semaphore, #tpu.memory_space<semaphore_mem>>
    tpu.enqueue_dma source(%163 : memref<1x128xf32, #tpu.memory_space<any>>) target(%165 : memref<1x128xf32, #tpu.memory_space<vmem>>) target_semaphore(%167 : memref<!tpu.dma_semaphore, #tpu.memory_space<semaphore_mem>>)
    %c5_197 = arith.constant 5 : index
    %c1_198 = arith.constant 1 : index
    %168 = memref.load %arg1[%c5_197, %c1_198] : memref<8x4xi32, #tpu.memory_space<smem>>
    %c0_i32_199 = arith.constant 0 : i32
    %169 = arith.maxsi %168, %c0_i32_199 : i32
    %c2047_i32_200 = arith.constant 2047 : i32
    %170 = arith.minsi %169, %c2047_i32_200 : i32
    %c5_i32_201 = arith.constant 5 : i32
    %c5_i32_202 = arith.constant 5 : i32
    %c1_i32_203 = arith.constant 1 : i32
    %c0_i32_204 = arith.constant 0 : i32
    %171 = tpu.memref_slice %arg2[%170, %c0_i32_204] : memref<2048x128xf32, #tpu.memory_space<any>> -> memref<1x128xf32, #tpu.memory_space<any>>
    %c1_i32_205 = arith.constant 1 : i32
    %c0_i32_206 = arith.constant 0 : i32
    %172 = tpu.memref_slice %arg4[%c5_i32_201, %c1_i32_205, %c0_i32_206] : memref<8x4x128xf32, #tpu.memory_space<vmem>> -> memref<1x1x128xf32, #tpu.memory_space<vmem>>
    %173 = tpu.memref_squeeze %172 : memref<1x1x128xf32, #tpu.memory_space<vmem>> -> memref<1x128xf32, #tpu.memory_space<vmem>>
    %174 = tpu.memref_slice %arg5[%c5_i32_202, %c1_i32_203] : memref<8x4x!tpu.dma_semaphore, #tpu.memory_space<semaphore_mem>> -> memref<1x1x!tpu.dma_semaphore, #tpu.memory_space<semaphore_mem>>
    %175 = tpu.memref_squeeze %174 : memref<1x1x!tpu.dma_semaphore, #tpu.memory_space<semaphore_mem>> -> memref<!tpu.dma_semaphore, #tpu.memory_space<semaphore_mem>>
    tpu.enqueue_dma source(%171 : memref<1x128xf32, #tpu.memory_space<any>>) target(%173 : memref<1x128xf32, #tpu.memory_space<vmem>>) target_semaphore(%175 : memref<!tpu.dma_semaphore, #tpu.memory_space<semaphore_mem>>)
    %c5_207 = arith.constant 5 : index
    %c2_208 = arith.constant 2 : index
    %176 = memref.load %arg1[%c5_207, %c2_208] : memref<8x4xi32, #tpu.memory_space<smem>>
    %c0_i32_209 = arith.constant 0 : i32
    %177 = arith.maxsi %176, %c0_i32_209 : i32
    %c2047_i32_210 = arith.constant 2047 : i32
    %178 = arith.minsi %177, %c2047_i32_210 : i32
    %c5_i32_211 = arith.constant 5 : i32
    %c5_i32_212 = arith.constant 5 : i32
    %c2_i32_213 = arith.constant 2 : i32
    %c0_i32_214 = arith.constant 0 : i32
    %179 = tpu.memref_slice %arg2[%178, %c0_i32_214] : memref<2048x128xf32, #tpu.memory_space<any>> -> memref<1x128xf32, #tpu.memory_space<any>>
    %c2_i32_215 = arith.constant 2 : i32
    %c0_i32_216 = arith.constant 0 : i32
    %180 = tpu.memref_slice %arg4[%c5_i32_211, %c2_i32_215, %c0_i32_216] : memref<8x4x128xf32, #tpu.memory_space<vmem>> -> memref<1x1x128xf32, #tpu.memory_space<vmem>>
    %181 = tpu.memref_squeeze %180 : memref<1x1x128xf32, #tpu.memory_space<vmem>> -> memref<1x128xf32, #tpu.memory_space<vmem>>
    %182 = tpu.memref_slice %arg5[%c5_i32_212, %c2_i32_213] : memref<8x4x!tpu.dma_semaphore, #tpu.memory_space<semaphore_mem>> -> memref<1x1x!tpu.dma_semaphore, #tpu.memory_space<semaphore_mem>>
    %183 = tpu.memref_squeeze %182 : memref<1x1x!tpu.dma_semaphore, #tpu.memory_space<semaphore_mem>> -> memref<!tpu.dma_semaphore, #tpu.memory_space<semaphore_mem>>
    tpu.enqueue_dma source(%179 : memref<1x128xf32, #tpu.memory_space<any>>) target(%181 : memref<1x128xf32, #tpu.memory_space<vmem>>) target_semaphore(%183 : memref<!tpu.dma_semaphore, #tpu.memory_space<semaphore_mem>>)
    %c5_217 = arith.constant 5 : index
    %c3_218 = arith.constant 3 : index
    %184 = memref.load %arg1[%c5_217, %c3_218] : memref<8x4xi32, #tpu.memory_space<smem>>
    %c0_i32_219 = arith.constant 0 : i32
    %185 = arith.maxsi %184, %c0_i32_219 : i32
    %c2047_i32_220 = arith.constant 2047 : i32
    %186 = arith.minsi %185, %c2047_i32_220 : i32
    %c5_i32_221 = arith.constant 5 : i32
    %c5_i32_222 = arith.constant 5 : i32
    %c3_i32_223 = arith.constant 3 : i32
    %c0_i32_224 = arith.constant 0 : i32
    %187 = tpu.memref_slice %arg2[%186, %c0_i32_224] : memref<2048x128xf32, #tpu.memory_space<any>> -> memref<1x128xf32, #tpu.memory_space<any>>
    %c3_i32_225 = arith.constant 3 : i32
    %c0_i32_226 = arith.constant 0 : i32
    %188 = tpu.memref_slice %arg4[%c5_i32_221, %c3_i32_225, %c0_i32_226] : memref<8x4x128xf32, #tpu.memory_space<vmem>> -> memref<1x1x128xf32, #tpu.memory_space<vmem>>
    %189 = tpu.memref_squeeze %188 : memref<1x1x128xf32, #tpu.memory_space<vmem>> -> memref<1x128xf32, #tpu.memory_space<vmem>>
    %190 = tpu.memref_slice %arg5[%c5_i32_222, %c3_i32_223] : memref<8x4x!tpu.dma_semaphore, #tpu.memory_space<semaphore_mem>> -> memref<1x1x!tpu.dma_semaphore, #tpu.memory_space<semaphore_mem>>
    %191 = tpu.memref_squeeze %190 : memref<1x1x!tpu.dma_semaphore, #tpu.memory_space<semaphore_mem>> -> memref<!tpu.dma_semaphore, #tpu.memory_space<semaphore_mem>>
    tpu.enqueue_dma source(%187 : memref<1x128xf32, #tpu.memory_space<any>>) target(%189 : memref<1x128xf32, #tpu.memory_space<vmem>>) target_semaphore(%191 : memref<!tpu.dma_semaphore, #tpu.memory_space<semaphore_mem>>)
    %c6 = arith.constant 6 : index
    %c0_227 = arith.constant 0 : index
    %192 = memref.load %arg1[%c6, %c0_227] : memref<8x4xi32, #tpu.memory_space<smem>>
    %c0_i32_228 = arith.constant 0 : i32
    %193 = arith.maxsi %192, %c0_i32_228 : i32
    %c2047_i32_229 = arith.constant 2047 : i32
    %194 = arith.minsi %193, %c2047_i32_229 : i32
    %c6_i32 = arith.constant 6 : i32
    %c6_i32_230 = arith.constant 6 : i32
    %c0_i32_231 = arith.constant 0 : i32
    %c0_i32_232 = arith.constant 0 : i32
    %195 = tpu.memref_slice %arg2[%194, %c0_i32_232] : memref<2048x128xf32, #tpu.memory_space<any>> -> memref<1x128xf32, #tpu.memory_space<any>>
    %c0_i32_233 = arith.constant 0 : i32
    %c0_i32_234 = arith.constant 0 : i32
    %196 = tpu.memref_slice %arg4[%c6_i32, %c0_i32_233, %c0_i32_234] : memref<8x4x128xf32, #tpu.memory_space<vmem>> -> memref<1x1x128xf32, #tpu.memory_space<vmem>>
    %197 = tpu.memref_squeeze %196 : memref<1x1x128xf32, #tpu.memory_space<vmem>> -> memref<1x128xf32, #tpu.memory_space<vmem>>
    %198 = tpu.memref_slice %arg5[%c6_i32_230, %c0_i32_231] : memref<8x4x!tpu.dma_semaphore, #tpu.memory_space<semaphore_mem>> -> memref<1x1x!tpu.dma_semaphore, #tpu.memory_space<semaphore_mem>>
    %199 = tpu.memref_squeeze %198 : memref<1x1x!tpu.dma_semaphore, #tpu.memory_space<semaphore_mem>> -> memref<!tpu.dma_semaphore, #tpu.memory_space<semaphore_mem>>
    tpu.enqueue_dma source(%195 : memref<1x128xf32, #tpu.memory_space<any>>) target(%197 : memref<1x128xf32, #tpu.memory_space<vmem>>) target_semaphore(%199 : memref<!tpu.dma_semaphore, #tpu.memory_space<semaphore_mem>>)
    %c6_235 = arith.constant 6 : index
    %c1_236 = arith.constant 1 : index
    %200 = memref.load %arg1[%c6_235, %c1_236] : memref<8x4xi32, #tpu.memory_space<smem>>
    %c0_i32_237 = arith.constant 0 : i32
    %201 = arith.maxsi %200, %c0_i32_237 : i32
    %c2047_i32_238 = arith.constant 2047 : i32
    %202 = arith.minsi %201, %c2047_i32_238 : i32
    %c6_i32_239 = arith.constant 6 : i32
    %c6_i32_240 = arith.constant 6 : i32
    %c1_i32_241 = arith.constant 1 : i32
    %c0_i32_242 = arith.constant 0 : i32
    %203 = tpu.memref_slice %arg2[%202, %c0_i32_242] : memref<2048x128xf32, #tpu.memory_space<any>> -> memref<1x128xf32, #tpu.memory_space<any>>
    %c1_i32_243 = arith.constant 1 : i32
    %c0_i32_244 = arith.constant 0 : i32
    %204 = tpu.memref_slice %arg4[%c6_i32_239, %c1_i32_243, %c0_i32_244] : memref<8x4x128xf32, #tpu.memory_space<vmem>> -> memref<1x1x128xf32, #tpu.memory_space<vmem>>
    %205 = tpu.memref_squeeze %204 : memref<1x1x128xf32, #tpu.memory_space<vmem>> -> memref<1x128xf32, #tpu.memory_space<vmem>>
    %206 = tpu.memref_slice %arg5[%c6_i32_240, %c1_i32_241] : memref<8x4x!tpu.dma_semaphore, #tpu.memory_space<semaphore_mem>> -> memref<1x1x!tpu.dma_semaphore, #tpu.memory_space<semaphore_mem>>
    %207 = tpu.memref_squeeze %206 : memref<1x1x!tpu.dma_semaphore, #tpu.memory_space<semaphore_mem>> -> memref<!tpu.dma_semaphore, #tpu.memory_space<semaphore_mem>>
    tpu.enqueue_dma source(%203 : memref<1x128xf32, #tpu.memory_space<any>>) target(%205 : memref<1x128xf32, #tpu.memory_space<vmem>>) target_semaphore(%207 : memref<!tpu.dma_semaphore, #tpu.memory_space<semaphore_mem>>)
    %c6_245 = arith.constant 6 : index
    %c2_246 = arith.constant 2 : index
    %208 = memref.load %arg1[%c6_245, %c2_246] : memref<8x4xi32, #tpu.memory_space<smem>>
    %c0_i32_247 = arith.constant 0 : i32
    %209 = arith.maxsi %208, %c0_i32_247 : i32
    %c2047_i32_248 = arith.constant 2047 : i32
    %210 = arith.minsi %209, %c2047_i32_248 : i32
    %c6_i32_249 = arith.constant 6 : i32
    %c6_i32_250 = arith.constant 6 : i32
    %c2_i32_251 = arith.constant 2 : i32
    %c0_i32_252 = arith.constant 0 : i32
    %211 = tpu.memref_slice %arg2[%210, %c0_i32_252] : memref<2048x128xf32, #tpu.memory_space<any>> -> memref<1x128xf32, #tpu.memory_space<any>>
    %c2_i32_253 = arith.constant 2 : i32
    %c0_i32_254 = arith.constant 0 : i32
    %212 = tpu.memref_slice %arg4[%c6_i32_249, %c2_i32_253, %c0_i32_254] : memref<8x4x128xf32, #tpu.memory_space<vmem>> -> memref<1x1x128xf32, #tpu.memory_space<vmem>>
    %213 = tpu.memref_squeeze %212 : memref<1x1x128xf32, #tpu.memory_space<vmem>> -> memref<1x128xf32, #tpu.memory_space<vmem>>
    %214 = tpu.memref_slice %arg5[%c6_i32_250, %c2_i32_251] : memref<8x4x!tpu.dma_semaphore, #tpu.memory_space<semaphore_mem>> -> memref<1x1x!tpu.dma_semaphore, #tpu.memory_space<semaphore_mem>>
    %215 = tpu.memref_squeeze %214 : memref<1x1x!tpu.dma_semaphore, #tpu.memory_space<semaphore_mem>> -> memref<!tpu.dma_semaphore, #tpu.memory_space<semaphore_mem>>
    tpu.enqueue_dma source(%211 : memref<1x128xf32, #tpu.memory_space<any>>) target(%213 : memref<1x128xf32, #tpu.memory_space<vmem>>) target_semaphore(%215 : memref<!tpu.dma_semaphore, #tpu.memory_space<semaphore_mem>>)
    %c6_255 = arith.constant 6 : index
    %c3_256 = arith.constant 3 : index
    %216 = memref.load %arg1[%c6_255, %c3_256] : memref<8x4xi32, #tpu.memory_space<smem>>
    %c0_i32_257 = arith.constant 0 : i32
    %217 = arith.maxsi %216, %c0_i32_257 : i32
    %c2047_i32_258 = arith.constant 2047 : i32
    %218 = arith.minsi %217, %c2047_i32_258 : i32
    %c6_i32_259 = arith.constant 6 : i32
    %c6_i32_260 = arith.constant 6 : i32
    %c3_i32_261 = arith.constant 3 : i32
    %c0_i32_262 = arith.constant 0 : i32
    %219 = tpu.memref_slice %arg2[%218, %c0_i32_262] : memref<2048x128xf32, #tpu.memory_space<any>> -> memref<1x128xf32, #tpu.memory_space<any>>
    %c3_i32_263 = arith.constant 3 : i32
    %c0_i32_264 = arith.constant 0 : i32
    %220 = tpu.memref_slice %arg4[%c6_i32_259, %c3_i32_263, %c0_i32_264] : memref<8x4x128xf32, #tpu.memory_space<vmem>> -> memref<1x1x128xf32, #tpu.memory_space<vmem>>
    %221 = tpu.memref_squeeze %220 : memref<1x1x128xf32, #tpu.memory_space<vmem>> -> memref<1x128xf32, #tpu.memory_space<vmem>>
    %222 = tpu.memref_slice %arg5[%c6_i32_260, %c3_i32_261] : memref<8x4x!tpu.dma_semaphore, #tpu.memory_space<semaphore_mem>> -> memref<1x1x!tpu.dma_semaphore, #tpu.memory_space<semaphore_mem>>
    %223 = tpu.memref_squeeze %222 : memref<1x1x!tpu.dma_semaphore, #tpu.memory_space<semaphore_mem>> -> memref<!tpu.dma_semaphore, #tpu.memory_space<semaphore_mem>>
    tpu.enqueue_dma source(%219 : memref<1x128xf32, #tpu.memory_space<any>>) target(%221 : memref<1x128xf32, #tpu.memory_space<vmem>>) target_semaphore(%223 : memref<!tpu.dma_semaphore, #tpu.memory_space<semaphore_mem>>)
    %c7 = arith.constant 7 : index
    %c0_265 = arith.constant 0 : index
    %224 = memref.load %arg1[%c7, %c0_265] : memref<8x4xi32, #tpu.memory_space<smem>>
    %c0_i32_266 = arith.constant 0 : i32
    %225 = arith.maxsi %224, %c0_i32_266 : i32
    %c2047_i32_267 = arith.constant 2047 : i32
    %226 = arith.minsi %225, %c2047_i32_267 : i32
    %c7_i32 = arith.constant 7 : i32
    %c7_i32_268 = arith.constant 7 : i32
    %c0_i32_269 = arith.constant 0 : i32
    %c0_i32_270 = arith.constant 0 : i32
    %227 = tpu.memref_slice %arg2[%226, %c0_i32_270] : memref<2048x128xf32, #tpu.memory_space<any>> -> memref<1x128xf32, #tpu.memory_space<any>>
    %c0_i32_271 = arith.constant 0 : i32
    %c0_i32_272 = arith.constant 0 : i32
    %228 = tpu.memref_slice %arg4[%c7_i32, %c0_i32_271, %c0_i32_272] : memref<8x4x128xf32, #tpu.memory_space<vmem>> -> memref<1x1x128xf32, #tpu.memory_space<vmem>>
    %229 = tpu.memref_squeeze %228 : memref<1x1x128xf32, #tpu.memory_space<vmem>> -> memref<1x128xf32, #tpu.memory_space<vmem>>
    %230 = tpu.memref_slice %arg5[%c7_i32_268, %c0_i32_269] : memref<8x4x!tpu.dma_semaphore, #tpu.memory_space<semaphore_mem>> -> memref<1x1x!tpu.dma_semaphore, #tpu.memory_space<semaphore_mem>>
    %231 = tpu.memref_squeeze %230 : memref<1x1x!tpu.dma_semaphore, #tpu.memory_space<semaphore_mem>> -> memref<!tpu.dma_semaphore, #tpu.memory_space<semaphore_mem>>
    tpu.enqueue_dma source(%227 : memref<1x128xf32, #tpu.memory_space<any>>) target(%229 : memref<1x128xf32, #tpu.memory_space<vmem>>) target_semaphore(%231 : memref<!tpu.dma_semaphore, #tpu.memory_space<semaphore_mem>>)
    %c7_273 = arith.constant 7 : index
    %c1_274 = arith.constant 1 : index
    %232 = memref.load %arg1[%c7_273, %c1_274] : memref<8x4xi32, #tpu.memory_space<smem>>
    %c0_i32_275 = arith.constant 0 : i32
    %233 = arith.maxsi %232, %c0_i32_275 : i32
    %c2047_i32_276 = arith.constant 2047 : i32
    %234 = arith.minsi %233, %c2047_i32_276 : i32
    %c7_i32_277 = arith.constant 7 : i32
    %c7_i32_278 = arith.constant 7 : i32
    %c1_i32_279 = arith.constant 1 : i32
    %c0_i32_280 = arith.constant 0 : i32
    %235 = tpu.memref_slice %arg2[%234, %c0_i32_280] : memref<2048x128xf32, #tpu.memory_space<any>> -> memref<1x128xf32, #tpu.memory_space<any>>
    %c1_i32_281 = arith.constant 1 : i32
    %c0_i32_282 = arith.constant 0 : i32
    %236 = tpu.memref_slice %arg4[%c7_i32_277, %c1_i32_281, %c0_i32_282] : memref<8x4x128xf32, #tpu.memory_space<vmem>> -> memref<1x1x128xf32, #tpu.memory_space<vmem>>
    %237 = tpu.memref_squeeze %236 : memref<1x1x128xf32, #tpu.memory_space<vmem>> -> memref<1x128xf32, #tpu.memory_space<vmem>>
    %238 = tpu.memref_slice %arg5[%c7_i32_278, %c1_i32_279] : memref<8x4x!tpu.dma_semaphore, #tpu.memory_space<semaphore_mem>> -> memref<1x1x!tpu.dma_semaphore, #tpu.memory_space<semaphore_mem>>
    %239 = tpu.memref_squeeze %238 : memref<1x1x!tpu.dma_semaphore, #tpu.memory_space<semaphore_mem>> -> memref<!tpu.dma_semaphore, #tpu.memory_space<semaphore_mem>>
    tpu.enqueue_dma source(%235 : memref<1x128xf32, #tpu.memory_space<any>>) target(%237 : memref<1x128xf32, #tpu.memory_space<vmem>>) target_semaphore(%239 : memref<!tpu.dma_semaphore, #tpu.memory_space<semaphore_mem>>)
    %c7_283 = arith.constant 7 : index
    %c2_284 = arith.constant 2 : index
    %240 = memref.load %arg1[%c7_283, %c2_284] : memref<8x4xi32, #tpu.memory_space<smem>>
    %c0_i32_285 = arith.constant 0 : i32
    %241 = arith.maxsi %240, %c0_i32_285 : i32
    %c2047_i32_286 = arith.constant 2047 : i32
    %242 = arith.minsi %241, %c2047_i32_286 : i32
    %c7_i32_287 = arith.constant 7 : i32
    %c7_i32_288 = arith.constant 7 : i32
    %c2_i32_289 = arith.constant 2 : i32
    %c0_i32_290 = arith.constant 0 : i32
    %243 = tpu.memref_slice %arg2[%242, %c0_i32_290] : memref<2048x128xf32, #tpu.memory_space<any>> -> memref<1x128xf32, #tpu.memory_space<any>>
    %c2_i32_291 = arith.constant 2 : i32
    %c0_i32_292 = arith.constant 0 : i32
    %244 = tpu.memref_slice %arg4[%c7_i32_287, %c2_i32_291, %c0_i32_292] : memref<8x4x128xf32, #tpu.memory_space<vmem>> -> memref<1x1x128xf32, #tpu.memory_space<vmem>>
    %245 = tpu.memref_squeeze %244 : memref<1x1x128xf32, #tpu.memory_space<vmem>> -> memref<1x128xf32, #tpu.memory_space<vmem>>
    %246 = tpu.memref_slice %arg5[%c7_i32_288, %c2_i32_289] : memref<8x4x!tpu.dma_semaphore, #tpu.memory_space<semaphore_mem>> -> memref<1x1x!tpu.dma_semaphore, #tpu.memory_space<semaphore_mem>>
    %247 = tpu.memref_squeeze %246 : memref<1x1x!tpu.dma_semaphore, #tpu.memory_space<semaphore_mem>> -> memref<!tpu.dma_semaphore, #tpu.memory_space<semaphore_mem>>
    tpu.enqueue_dma source(%243 : memref<1x128xf32, #tpu.memory_space<any>>) target(%245 : memref<1x128xf32, #tpu.memory_space<vmem>>) target_semaphore(%247 : memref<!tpu.dma_semaphore, #tpu.memory_space<semaphore_mem>>)
    %c7_293 = arith.constant 7 : index
    %c3_294 = arith.constant 3 : index
    %248 = memref.load %arg1[%c7_293, %c3_294] : memref<8x4xi32, #tpu.memory_space<smem>>
    %c0_i32_295 = arith.constant 0 : i32
    %249 = arith.maxsi %248, %c0_i32_295 : i32
    %c2047_i32_296 = arith.constant 2047 : i32
    %250 = arith.minsi %249, %c2047_i32_296 : i32
    %c7_i32_297 = arith.constant 7 : i32
    %c7_i32_298 = arith.constant 7 : i32
    %c3_i32_299 = arith.constant 3 : i32
    %c0_i32_300 = arith.constant 0 : i32
    %251 = tpu.memref_slice %arg2[%250, %c0_i32_300] : memref<2048x128xf32, #tpu.memory_space<any>> -> memref<1x128xf32, #tpu.memory_space<any>>
    %c3_i32_301 = arith.constant 3 : i32
    %c0_i32_302 = arith.constant 0 : i32
    %252 = tpu.memref_slice %arg4[%c7_i32_297, %c3_i32_301, %c0_i32_302] : memref<8x4x128xf32, #tpu.memory_space<vmem>> -> memref<1x1x128xf32, #tpu.memory_space<vmem>>
    %253 = tpu.memref_squeeze %252 : memref<1x1x128xf32, #tpu.memory_space<vmem>> -> memref<1x128xf32, #tpu.memory_space<vmem>>
    %254 = tpu.memref_slice %arg5[%c7_i32_298, %c3_i32_299] : memref<8x4x!tpu.dma_semaphore, #tpu.memory_space<semaphore_mem>> -> memref<1x1x!tpu.dma_semaphore, #tpu.memory_space<semaphore_mem>>
    %255 = tpu.memref_squeeze %254 : memref<1x1x!tpu.dma_semaphore, #tpu.memory_space<semaphore_mem>> -> memref<!tpu.dma_semaphore, #tpu.memory_space<semaphore_mem>>
    tpu.enqueue_dma source(%251 : memref<1x128xf32, #tpu.memory_space<any>>) target(%253 : memref<1x128xf32, #tpu.memory_space<vmem>>) target_semaphore(%255 : memref<!tpu.dma_semaphore, #tpu.memory_space<semaphore_mem>>)
    %c0_i32_303 = arith.constant 0 : i32
    %c0_i32_304 = arith.constant 0 : i32
    %c0_i32_305 = arith.constant 0 : i32
    %c0_i32_306 = arith.constant 0 : i32
    %256 = tpu.memref_slice %arg2[%2, %c0_i32_306] : memref<2048x128xf32, #tpu.memory_space<any>> -> memref<1x128xf32, #tpu.memory_space<any>>
    %c0_i32_307 = arith.constant 0 : i32
    %c0_i32_308 = arith.constant 0 : i32
    %257 = tpu.memref_slice %arg4[%c0_i32_303, %c0_i32_307, %c0_i32_308] : memref<8x4x128xf32, #tpu.memory_space<vmem>> -> memref<1x1x128xf32, #tpu.memory_space<vmem>>
    %258 = tpu.memref_squeeze %257 : memref<1x1x128xf32, #tpu.memory_space<vmem>> -> memref<1x128xf32, #tpu.memory_space<vmem>>
    %259 = tpu.memref_slice %arg5[%c0_i32_304, %c0_i32_305] : memref<8x4x!tpu.dma_semaphore, #tpu.memory_space<semaphore_mem>> -> memref<1x1x!tpu.dma_semaphore, #tpu.memory_space<semaphore_mem>>
    %260 = tpu.memref_squeeze %259 : memref<1x1x!tpu.dma_semaphore, #tpu.memory_space<semaphore_mem>> -> memref<!tpu.dma_semaphore, #tpu.memory_space<semaphore_mem>>
    tpu.wait_dma2 semaphore(%260 : memref<!tpu.dma_semaphore, #tpu.memory_space<semaphore_mem>>) src(%256 : memref<1x128xf32, #tpu.memory_space<any>>) dst(%258 : memref<1x128xf32, #tpu.memory_space<vmem>>)
    %c0_i32_309 = arith.constant 0 : i32
    %c0_i32_310 = arith.constant 0 : i32
    %c1_i32_311 = arith.constant 1 : i32
    %c0_i32_312 = arith.constant 0 : i32
    %261 = tpu.memref_slice %arg2[%10, %c0_i32_312] : memref<2048x128xf32, #tpu.memory_space<any>> -> memref<1x128xf32, #tpu.memory_space<any>>
    %c1_i32_313 = arith.constant 1 : i32
    %c0_i32_314 = arith.constant 0 : i32
    %262 = tpu.memref_slice %arg4[%c0_i32_309, %c1_i32_313, %c0_i32_314] : memref<8x4x128xf32, #tpu.memory_space<vmem>> -> memref<1x1x128xf32, #tpu.memory_space<vmem>>
    %263 = tpu.memref_squeeze %262 : memref<1x1x128xf32, #tpu.memory_space<vmem>> -> memref<1x128xf32, #tpu.memory_space<vmem>>
    %264 = tpu.memref_slice %arg5[%c0_i32_310, %c1_i32_311] : memref<8x4x!tpu.dma_semaphore, #tpu.memory_space<semaphore_mem>> -> memref<1x1x!tpu.dma_semaphore, #tpu.memory_space<semaphore_mem>>
    %265 = tpu.memref_squeeze %264 : memref<1x1x!tpu.dma_semaphore, #tpu.memory_space<semaphore_mem>> -> memref<!tpu.dma_semaphore, #tpu.memory_space<semaphore_mem>>
    tpu.wait_dma2 semaphore(%265 : memref<!tpu.dma_semaphore, #tpu.memory_space<semaphore_mem>>) src(%261 : memref<1x128xf32, #tpu.memory_space<any>>) dst(%263 : memref<1x128xf32, #tpu.memory_space<vmem>>)
    %c0_i32_315 = arith.constant 0 : i32
    %c0_i32_316 = arith.constant 0 : i32
    %c2_i32_317 = arith.constant 2 : i32
    %c0_i32_318 = arith.constant 0 : i32
    %266 = tpu.memref_slice %arg2[%18, %c0_i32_318] : memref<2048x128xf32, #tpu.memory_space<any>> -> memref<1x128xf32, #tpu.memory_space<any>>
    %c2_i32_319 = arith.constant 2 : i32
    %c0_i32_320 = arith.constant 0 : i32
    %267 = tpu.memref_slice %arg4[%c0_i32_315, %c2_i32_319, %c0_i32_320] : memref<8x4x128xf32, #tpu.memory_space<vmem>> -> memref<1x1x128xf32, #tpu.memory_space<vmem>>
    %268 = tpu.memref_squeeze %267 : memref<1x1x128xf32, #tpu.memory_space<vmem>> -> memref<1x128xf32, #tpu.memory_space<vmem>>
    %269 = tpu.memref_slice %arg5[%c0_i32_316, %c2_i32_317] : memref<8x4x!tpu.dma_semaphore, #tpu.memory_space<semaphore_mem>> -> memref<1x1x!tpu.dma_semaphore, #tpu.memory_space<semaphore_mem>>
    %270 = tpu.memref_squeeze %269 : memref<1x1x!tpu.dma_semaphore, #tpu.memory_space<semaphore_mem>> -> memref<!tpu.dma_semaphore, #tpu.memory_space<semaphore_mem>>
    tpu.wait_dma2 semaphore(%270 : memref<!tpu.dma_semaphore, #tpu.memory_space<semaphore_mem>>) src(%266 : memref<1x128xf32, #tpu.memory_space<any>>) dst(%268 : memref<1x128xf32, #tpu.memory_space<vmem>>)
    %c0_i32_321 = arith.constant 0 : i32
    %c0_i32_322 = arith.constant 0 : i32
    %c3_i32_323 = arith.constant 3 : i32
    %c0_i32_324 = arith.constant 0 : i32
    %271 = tpu.memref_slice %arg2[%26, %c0_i32_324] : memref<2048x128xf32, #tpu.memory_space<any>> -> memref<1x128xf32, #tpu.memory_space<any>>
    %c3_i32_325 = arith.constant 3 : i32
    %c0_i32_326 = arith.constant 0 : i32
    %272 = tpu.memref_slice %arg4[%c0_i32_321, %c3_i32_325, %c0_i32_326] : memref<8x4x128xf32, #tpu.memory_space<vmem>> -> memref<1x1x128xf32, #tpu.memory_space<vmem>>
    %273 = tpu.memref_squeeze %272 : memref<1x1x128xf32, #tpu.memory_space<vmem>> -> memref<1x128xf32, #tpu.memory_space<vmem>>
    %274 = tpu.memref_slice %arg5[%c0_i32_322, %c3_i32_323] : memref<8x4x!tpu.dma_semaphore, #tpu.memory_space<semaphore_mem>> -> memref<1x1x!tpu.dma_semaphore, #tpu.memory_space<semaphore_mem>>
    %275 = tpu.memref_squeeze %274 : memref<1x1x!tpu.dma_semaphore, #tpu.memory_space<semaphore_mem>> -> memref<!tpu.dma_semaphore, #tpu.memory_space<semaphore_mem>>
    tpu.wait_dma2 semaphore(%275 : memref<!tpu.dma_semaphore, #tpu.memory_space<semaphore_mem>>) src(%271 : memref<1x128xf32, #tpu.memory_space<any>>) dst(%273 : memref<1x128xf32, #tpu.memory_space<vmem>>)
    %c1_i32_327 = arith.constant 1 : i32
    %c1_i32_328 = arith.constant 1 : i32
    %c0_i32_329 = arith.constant 0 : i32
    %c0_i32_330 = arith.constant 0 : i32
    %276 = tpu.memref_slice %arg2[%34, %c0_i32_330] : memref<2048x128xf32, #tpu.memory_space<any>> -> memref<1x128xf32, #tpu.memory_space<any>>
    %c0_i32_331 = arith.constant 0 : i32
    %c0_i32_332 = arith.constant 0 : i32
    %277 = tpu.memref_slice %arg4[%c1_i32_327, %c0_i32_331, %c0_i32_332] : memref<8x4x128xf32, #tpu.memory_space<vmem>> -> memref<1x1x128xf32, #tpu.memory_space<vmem>>
    %278 = tpu.memref_squeeze %277 : memref<1x1x128xf32, #tpu.memory_space<vmem>> -> memref<1x128xf32, #tpu.memory_space<vmem>>
    %279 = tpu.memref_slice %arg5[%c1_i32_328, %c0_i32_329] : memref<8x4x!tpu.dma_semaphore, #tpu.memory_space<semaphore_mem>> -> memref<1x1x!tpu.dma_semaphore, #tpu.memory_space<semaphore_mem>>
    %280 = tpu.memref_squeeze %279 : memref<1x1x!tpu.dma_semaphore, #tpu.memory_space<semaphore_mem>> -> memref<!tpu.dma_semaphore, #tpu.memory_space<semaphore_mem>>
    tpu.wait_dma2 semaphore(%280 : memref<!tpu.dma_semaphore, #tpu.memory_space<semaphore_mem>>) src(%276 : memref<1x128xf32, #tpu.memory_space<any>>) dst(%278 : memref<1x128xf32, #tpu.memory_space<vmem>>)
    %c1_i32_333 = arith.constant 1 : i32
    %c1_i32_334 = arith.constant 1 : i32
    %c1_i32_335 = arith.constant 1 : i32
    %c0_i32_336 = arith.constant 0 : i32
    %281 = tpu.memref_slice %arg2[%42, %c0_i32_336] : memref<2048x128xf32, #tpu.memory_space<any>> -> memref<1x128xf32, #tpu.memory_space<any>>
    %c1_i32_337 = arith.constant 1 : i32
    %c0_i32_338 = arith.constant 0 : i32
    %282 = tpu.memref_slice %arg4[%c1_i32_333, %c1_i32_337, %c0_i32_338] : memref<8x4x128xf32, #tpu.memory_space<vmem>> -> memref<1x1x128xf32, #tpu.memory_space<vmem>>
    %283 = tpu.memref_squeeze %282 : memref<1x1x128xf32, #tpu.memory_space<vmem>> -> memref<1x128xf32, #tpu.memory_space<vmem>>
    %284 = tpu.memref_slice %arg5[%c1_i32_334, %c1_i32_335] : memref<8x4x!tpu.dma_semaphore, #tpu.memory_space<semaphore_mem>> -> memref<1x1x!tpu.dma_semaphore, #tpu.memory_space<semaphore_mem>>
    %285 = tpu.memref_squeeze %284 : memref<1x1x!tpu.dma_semaphore, #tpu.memory_space<semaphore_mem>> -> memref<!tpu.dma_semaphore, #tpu.memory_space<semaphore_mem>>
    tpu.wait_dma2 semaphore(%285 : memref<!tpu.dma_semaphore, #tpu.memory_space<semaphore_mem>>) src(%281 : memref<1x128xf32, #tpu.memory_space<any>>) dst(%283 : memref<1x128xf32, #tpu.memory_space<vmem>>)
    %c1_i32_339 = arith.constant 1 : i32
    %c1_i32_340 = arith.constant 1 : i32
    %c2_i32_341 = arith.constant 2 : i32
    %c0_i32_342 = arith.constant 0 : i32
    %286 = tpu.memref_slice %arg2[%50, %c0_i32_342] : memref<2048x128xf32, #tpu.memory_space<any>> -> memref<1x128xf32, #tpu.memory_space<any>>
    %c2_i32_343 = arith.constant 2 : i32
    %c0_i32_344 = arith.constant 0 : i32
    %287 = tpu.memref_slice %arg4[%c1_i32_339, %c2_i32_343, %c0_i32_344] : memref<8x4x128xf32, #tpu.memory_space<vmem>> -> memref<1x1x128xf32, #tpu.memory_space<vmem>>
    %288 = tpu.memref_squeeze %287 : memref<1x1x128xf32, #tpu.memory_space<vmem>> -> memref<1x128xf32, #tpu.memory_space<vmem>>
    %289 = tpu.memref_slice %arg5[%c1_i32_340, %c2_i32_341] : memref<8x4x!tpu.dma_semaphore, #tpu.memory_space<semaphore_mem>> -> memref<1x1x!tpu.dma_semaphore, #tpu.memory_space<semaphore_mem>>
    %290 = tpu.memref_squeeze %289 : memref<1x1x!tpu.dma_semaphore, #tpu.memory_space<semaphore_mem>> -> memref<!tpu.dma_semaphore, #tpu.memory_space<semaphore_mem>>
    tpu.wait_dma2 semaphore(%290 : memref<!tpu.dma_semaphore, #tpu.memory_space<semaphore_mem>>) src(%286 : memref<1x128xf32, #tpu.memory_space<any>>) dst(%288 : memref<1x128xf32, #tpu.memory_space<vmem>>)
    %c1_i32_345 = arith.constant 1 : i32
    %c1_i32_346 = arith.constant 1 : i32
    %c3_i32_347 = arith.constant 3 : i32
    %c0_i32_348 = arith.constant 0 : i32
    %291 = tpu.memref_slice %arg2[%58, %c0_i32_348] : memref<2048x128xf32, #tpu.memory_space<any>> -> memref<1x128xf32, #tpu.memory_space<any>>
    %c3_i32_349 = arith.constant 3 : i32
    %c0_i32_350 = arith.constant 0 : i32
    %292 = tpu.memref_slice %arg4[%c1_i32_345, %c3_i32_349, %c0_i32_350] : memref<8x4x128xf32, #tpu.memory_space<vmem>> -> memref<1x1x128xf32, #tpu.memory_space<vmem>>
    %293 = tpu.memref_squeeze %292 : memref<1x1x128xf32, #tpu.memory_space<vmem>> -> memref<1x128xf32, #tpu.memory_space<vmem>>
    %294 = tpu.memref_slice %arg5[%c1_i32_346, %c3_i32_347] : memref<8x4x!tpu.dma_semaphore, #tpu.memory_space<semaphore_mem>> -> memref<1x1x!tpu.dma_semaphore, #tpu.memory_space<semaphore_mem>>
    %295 = tpu.memref_squeeze %294 : memref<1x1x!tpu.dma_semaphore, #tpu.memory_space<semaphore_mem>> -> memref<!tpu.dma_semaphore, #tpu.memory_space<semaphore_mem>>
    tpu.wait_dma2 semaphore(%295 : memref<!tpu.dma_semaphore, #tpu.memory_space<semaphore_mem>>) src(%291 : memref<1x128xf32, #tpu.memory_space<any>>) dst(%293 : memref<1x128xf32, #tpu.memory_space<vmem>>)
    %c2_i32_351 = arith.constant 2 : i32
    %c2_i32_352 = arith.constant 2 : i32
    %c0_i32_353 = arith.constant 0 : i32
    %c0_i32_354 = arith.constant 0 : i32
    %296 = tpu.memref_slice %arg2[%66, %c0_i32_354] : memref<2048x128xf32, #tpu.memory_space<any>> -> memref<1x128xf32, #tpu.memory_space<any>>
    %c0_i32_355 = arith.constant 0 : i32
    %c0_i32_356 = arith.constant 0 : i32
    %297 = tpu.memref_slice %arg4[%c2_i32_351, %c0_i32_355, %c0_i32_356] : memref<8x4x128xf32, #tpu.memory_space<vmem>> -> memref<1x1x128xf32, #tpu.memory_space<vmem>>
    %298 = tpu.memref_squeeze %297 : memref<1x1x128xf32, #tpu.memory_space<vmem>> -> memref<1x128xf32, #tpu.memory_space<vmem>>
    %299 = tpu.memref_slice %arg5[%c2_i32_352, %c0_i32_353] : memref<8x4x!tpu.dma_semaphore, #tpu.memory_space<semaphore_mem>> -> memref<1x1x!tpu.dma_semaphore, #tpu.memory_space<semaphore_mem>>
    %300 = tpu.memref_squeeze %299 : memref<1x1x!tpu.dma_semaphore, #tpu.memory_space<semaphore_mem>> -> memref<!tpu.dma_semaphore, #tpu.memory_space<semaphore_mem>>
    tpu.wait_dma2 semaphore(%300 : memref<!tpu.dma_semaphore, #tpu.memory_space<semaphore_mem>>) src(%296 : memref<1x128xf32, #tpu.memory_space<any>>) dst(%298 : memref<1x128xf32, #tpu.memory_space<vmem>>)
    %c2_i32_357 = arith.constant 2 : i32
    %c2_i32_358 = arith.constant 2 : i32
    %c1_i32_359 = arith.constant 1 : i32
    %c0_i32_360 = arith.constant 0 : i32
    %301 = tpu.memref_slice %arg2[%74, %c0_i32_360] : memref<2048x128xf32, #tpu.memory_space<any>> -> memref<1x128xf32, #tpu.memory_space<any>>
    %c1_i32_361 = arith.constant 1 : i32
    %c0_i32_362 = arith.constant 0 : i32
    %302 = tpu.memref_slice %arg4[%c2_i32_357, %c1_i32_361, %c0_i32_362] : memref<8x4x128xf32, #tpu.memory_space<vmem>> -> memref<1x1x128xf32, #tpu.memory_space<vmem>>
    %303 = tpu.memref_squeeze %302 : memref<1x1x128xf32, #tpu.memory_space<vmem>> -> memref<1x128xf32, #tpu.memory_space<vmem>>
    %304 = tpu.memref_slice %arg5[%c2_i32_358, %c1_i32_359] : memref<8x4x!tpu.dma_semaphore, #tpu.memory_space<semaphore_mem>> -> memref<1x1x!tpu.dma_semaphore, #tpu.memory_space<semaphore_mem>>
    %305 = tpu.memref_squeeze %304 : memref<1x1x!tpu.dma_semaphore, #tpu.memory_space<semaphore_mem>> -> memref<!tpu.dma_semaphore, #tpu.memory_space<semaphore_mem>>
    tpu.wait_dma2 semaphore(%305 : memref<!tpu.dma_semaphore, #tpu.memory_space<semaphore_mem>>) src(%301 : memref<1x128xf32, #tpu.memory_space<any>>) dst(%303 : memref<1x128xf32, #tpu.memory_space<vmem>>)
    %c2_i32_363 = arith.constant 2 : i32
    %c2_i32_364 = arith.constant 2 : i32
    %c2_i32_365 = arith.constant 2 : i32
    %c0_i32_366 = arith.constant 0 : i32
    %306 = tpu.memref_slice %arg2[%82, %c0_i32_366] : memref<2048x128xf32, #tpu.memory_space<any>> -> memref<1x128xf32, #tpu.memory_space<any>>
    %c2_i32_367 = arith.constant 2 : i32
    %c0_i32_368 = arith.constant 0 : i32
    %307 = tpu.memref_slice %arg4[%c2_i32_363, %c2_i32_367, %c0_i32_368] : memref<8x4x128xf32, #tpu.memory_space<vmem>> -> memref<1x1x128xf32, #tpu.memory_space<vmem>>
    %308 = tpu.memref_squeeze %307 : memref<1x1x128xf32, #tpu.memory_space<vmem>> -> memref<1x128xf32, #tpu.memory_space<vmem>>
    %309 = tpu.memref_slice %arg5[%c2_i32_364, %c2_i32_365] : memref<8x4x!tpu.dma_semaphore, #tpu.memory_space<semaphore_mem>> -> memref<1x1x!tpu.dma_semaphore, #tpu.memory_space<semaphore_mem>>
    %310 = tpu.memref_squeeze %309 : memref<1x1x!tpu.dma_semaphore, #tpu.memory_space<semaphore_mem>> -> memref<!tpu.dma_semaphore, #tpu.memory_space<semaphore_mem>>
    tpu.wait_dma2 semaphore(%310 : memref<!tpu.dma_semaphore, #tpu.memory_space<semaphore_mem>>) src(%306 : memref<1x128xf32, #tpu.memory_space<any>>) dst(%308 : memref<1x128xf32, #tpu.memory_space<vmem>>)
    %c2_i32_369 = arith.constant 2 : i32
    %c2_i32_370 = arith.constant 2 : i32
    %c3_i32_371 = arith.constant 3 : i32
    %c0_i32_372 = arith.constant 0 : i32
    %311 = tpu.memref_slice %arg2[%90, %c0_i32_372] : memref<2048x128xf32, #tpu.memory_space<any>> -> memref<1x128xf32, #tpu.memory_space<any>>
    %c3_i32_373 = arith.constant 3 : i32
    %c0_i32_374 = arith.constant 0 : i32
    %312 = tpu.memref_slice %arg4[%c2_i32_369, %c3_i32_373, %c0_i32_374] : memref<8x4x128xf32, #tpu.memory_space<vmem>> -> memref<1x1x128xf32, #tpu.memory_space<vmem>>
    %313 = tpu.memref_squeeze %312 : memref<1x1x128xf32, #tpu.memory_space<vmem>> -> memref<1x128xf32, #tpu.memory_space<vmem>>
    %314 = tpu.memref_slice %arg5[%c2_i32_370, %c3_i32_371] : memref<8x4x!tpu.dma_semaphore, #tpu.memory_space<semaphore_mem>> -> memref<1x1x!tpu.dma_semaphore, #tpu.memory_space<semaphore_mem>>
    %315 = tpu.memref_squeeze %314 : memref<1x1x!tpu.dma_semaphore, #tpu.memory_space<semaphore_mem>> -> memref<!tpu.dma_semaphore, #tpu.memory_space<semaphore_mem>>
    tpu.wait_dma2 semaphore(%315 : memref<!tpu.dma_semaphore, #tpu.memory_space<semaphore_mem>>) src(%311 : memref<1x128xf32, #tpu.memory_space<any>>) dst(%313 : memref<1x128xf32, #tpu.memory_space<vmem>>)
    %c3_i32_375 = arith.constant 3 : i32
    %c3_i32_376 = arith.constant 3 : i32
    %c0_i32_377 = arith.constant 0 : i32
    %c0_i32_378 = arith.constant 0 : i32
    %316 = tpu.memref_slice %arg2[%98, %c0_i32_378] : memref<2048x128xf32, #tpu.memory_space<any>> -> memref<1x128xf32, #tpu.memory_space<any>>
    %c0_i32_379 = arith.constant 0 : i32
    %c0_i32_380 = arith.constant 0 : i32
    %317 = tpu.memref_slice %arg4[%c3_i32_375, %c0_i32_379, %c0_i32_380] : memref<8x4x128xf32, #tpu.memory_space<vmem>> -> memref<1x1x128xf32, #tpu.memory_space<vmem>>
    %318 = tpu.memref_squeeze %317 : memref<1x1x128xf32, #tpu.memory_space<vmem>> -> memref<1x128xf32, #tpu.memory_space<vmem>>
    %319 = tpu.memref_slice %arg5[%c3_i32_376, %c0_i32_377] : memref<8x4x!tpu.dma_semaphore, #tpu.memory_space<semaphore_mem>> -> memref<1x1x!tpu.dma_semaphore, #tpu.memory_space<semaphore_mem>>
    %320 = tpu.memref_squeeze %319 : memref<1x1x!tpu.dma_semaphore, #tpu.memory_space<semaphore_mem>> -> memref<!tpu.dma_semaphore, #tpu.memory_space<semaphore_mem>>
    tpu.wait_dma2 semaphore(%320 : memref<!tpu.dma_semaphore, #tpu.memory_space<semaphore_mem>>) src(%316 : memref<1x128xf32, #tpu.memory_space<any>>) dst(%318 : memref<1x128xf32, #tpu.memory_space<vmem>>)
    %c3_i32_381 = arith.constant 3 : i32
    %c3_i32_382 = arith.constant 3 : i32
    %c1_i32_383 = arith.constant 1 : i32
    %c0_i32_384 = arith.constant 0 : i32
    %321 = tpu.memref_slice %arg2[%106, %c0_i32_384] : memref<2048x128xf32, #tpu.memory_space<any>> -> memref<1x128xf32, #tpu.memory_space<any>>
    %c1_i32_385 = arith.constant 1 : i32
    %c0_i32_386 = arith.constant 0 : i32
    %322 = tpu.memref_slice %arg4[%c3_i32_381, %c1_i32_385, %c0_i32_386] : memref<8x4x128xf32, #tpu.memory_space<vmem>> -> memref<1x1x128xf32, #tpu.memory_space<vmem>>
    %323 = tpu.memref_squeeze %322 : memref<1x1x128xf32, #tpu.memory_space<vmem>> -> memref<1x128xf32, #tpu.memory_space<vmem>>
    %324 = tpu.memref_slice %arg5[%c3_i32_382, %c1_i32_383] : memref<8x4x!tpu.dma_semaphore, #tpu.memory_space<semaphore_mem>> -> memref<1x1x!tpu.dma_semaphore, #tpu.memory_space<semaphore_mem>>
    %325 = tpu.memref_squeeze %324 : memref<1x1x!tpu.dma_semaphore, #tpu.memory_space<semaphore_mem>> -> memref<!tpu.dma_semaphore, #tpu.memory_space<semaphore_mem>>
    tpu.wait_dma2 semaphore(%325 : memref<!tpu.dma_semaphore, #tpu.memory_space<semaphore_mem>>) src(%321 : memref<1x128xf32, #tpu.memory_space<any>>) dst(%323 : memref<1x128xf32, #tpu.memory_space<vmem>>)
    %c3_i32_387 = arith.constant 3 : i32
    %c3_i32_388 = arith.constant 3 : i32
    %c2_i32_389 = arith.constant 2 : i32
    %c0_i32_390 = arith.constant 0 : i32
    %326 = tpu.memref_slice %arg2[%114, %c0_i32_390] : memref<2048x128xf32, #tpu.memory_space<any>> -> memref<1x128xf32, #tpu.memory_space<any>>
    %c2_i32_391 = arith.constant 2 : i32
    %c0_i32_392 = arith.constant 0 : i32
    %327 = tpu.memref_slice %arg4[%c3_i32_387, %c2_i32_391, %c0_i32_392] : memref<8x4x128xf32, #tpu.memory_space<vmem>> -> memref<1x1x128xf32, #tpu.memory_space<vmem>>
    %328 = tpu.memref_squeeze %327 : memref<1x1x128xf32, #tpu.memory_space<vmem>> -> memref<1x128xf32, #tpu.memory_space<vmem>>
    %329 = tpu.memref_slice %arg5[%c3_i32_388, %c2_i32_389] : memref<8x4x!tpu.dma_semaphore, #tpu.memory_space<semaphore_mem>> -> memref<1x1x!tpu.dma_semaphore, #tpu.memory_space<semaphore_mem>>
    %330 = tpu.memref_squeeze %329 : memref<1x1x!tpu.dma_semaphore, #tpu.memory_space<semaphore_mem>> -> memref<!tpu.dma_semaphore, #tpu.memory_space<semaphore_mem>>
    tpu.wait_dma2 semaphore(%330 : memref<!tpu.dma_semaphore, #tpu.memory_space<semaphore_mem>>) src(%326 : memref<1x128xf32, #tpu.memory_space<any>>) dst(%328 : memref<1x128xf32, #tpu.memory_space<vmem>>)
    %c3_i32_393 = arith.constant 3 : i32
    %c3_i32_394 = arith.constant 3 : i32
    %c3_i32_395 = arith.constant 3 : i32
    %c0_i32_396 = arith.constant 0 : i32
    %331 = tpu.memref_slice %arg2[%122, %c0_i32_396] : memref<2048x128xf32, #tpu.memory_space<any>> -> memref<1x128xf32, #tpu.memory_space<any>>
    %c3_i32_397 = arith.constant 3 : i32
    %c0_i32_398 = arith.constant 0 : i32
    %332 = tpu.memref_slice %arg4[%c3_i32_393, %c3_i32_397, %c0_i32_398] : memref<8x4x128xf32, #tpu.memory_space<vmem>> -> memref<1x1x128xf32, #tpu.memory_space<vmem>>
    %333 = tpu.memref_squeeze %332 : memref<1x1x128xf32, #tpu.memory_space<vmem>> -> memref<1x128xf32, #tpu.memory_space<vmem>>
    %334 = tpu.memref_slice %arg5[%c3_i32_394, %c3_i32_395] : memref<8x4x!tpu.dma_semaphore, #tpu.memory_space<semaphore_mem>> -> memref<1x1x!tpu.dma_semaphore, #tpu.memory_space<semaphore_mem>>
    %335 = tpu.memref_squeeze %334 : memref<1x1x!tpu.dma_semaphore, #tpu.memory_space<semaphore_mem>> -> memref<!tpu.dma_semaphore, #tpu.memory_space<semaphore_mem>>
    tpu.wait_dma2 semaphore(%335 : memref<!tpu.dma_semaphore, #tpu.memory_space<semaphore_mem>>) src(%331 : memref<1x128xf32, #tpu.memory_space<any>>) dst(%333 : memref<1x128xf32, #tpu.memory_space<vmem>>)
    %c4_i32_399 = arith.constant 4 : i32
    %c4_i32_400 = arith.constant 4 : i32
    %c0_i32_401 = arith.constant 0 : i32
    %c0_i32_402 = arith.constant 0 : i32
    %336 = tpu.memref_slice %arg2[%130, %c0_i32_402] : memref<2048x128xf32, #tpu.memory_space<any>> -> memref<1x128xf32, #tpu.memory_space<any>>
    %c0_i32_403 = arith.constant 0 : i32
    %c0_i32_404 = arith.constant 0 : i32
    %337 = tpu.memref_slice %arg4[%c4_i32_399, %c0_i32_403, %c0_i32_404] : memref<8x4x128xf32, #tpu.memory_space<vmem>> -> memref<1x1x128xf32, #tpu.memory_space<vmem>>
    %338 = tpu.memref_squeeze %337 : memref<1x1x128xf32, #tpu.memory_space<vmem>> -> memref<1x128xf32, #tpu.memory_space<vmem>>
    %339 = tpu.memref_slice %arg5[%c4_i32_400, %c0_i32_401] : memref<8x4x!tpu.dma_semaphore, #tpu.memory_space<semaphore_mem>> -> memref<1x1x!tpu.dma_semaphore, #tpu.memory_space<semaphore_mem>>
    %340 = tpu.memref_squeeze %339 : memref<1x1x!tpu.dma_semaphore, #tpu.memory_space<semaphore_mem>> -> memref<!tpu.dma_semaphore, #tpu.memory_space<semaphore_mem>>
    tpu.wait_dma2 semaphore(%340 : memref<!tpu.dma_semaphore, #tpu.memory_space<semaphore_mem>>) src(%336 : memref<1x128xf32, #tpu.memory_space<any>>) dst(%338 : memref<1x128xf32, #tpu.memory_space<vmem>>)
    %c4_i32_405 = arith.constant 4 : i32
    %c4_i32_406 = arith.constant 4 : i32
    %c1_i32_407 = arith.constant 1 : i32
    %c0_i32_408 = arith.constant 0 : i32
    %341 = tpu.memref_slice %arg2[%138, %c0_i32_408] : memref<2048x128xf32, #tpu.memory_space<any>> -> memref<1x128xf32, #tpu.memory_space<any>>
    %c1_i32_409 = arith.constant 1 : i32
    %c0_i32_410 = arith.constant 0 : i32
    %342 = tpu.memref_slice %arg4[%c4_i32_405, %c1_i32_409, %c0_i32_410] : memref<8x4x128xf32, #tpu.memory_space<vmem>> -> memref<1x1x128xf32, #tpu.memory_space<vmem>>
    %343 = tpu.memref_squeeze %342 : memref<1x1x128xf32, #tpu.memory_space<vmem>> -> memref<1x128xf32, #tpu.memory_space<vmem>>
    %344 = tpu.memref_slice %arg5[%c4_i32_406, %c1_i32_407] : memref<8x4x!tpu.dma_semaphore, #tpu.memory_space<semaphore_mem>> -> memref<1x1x!tpu.dma_semaphore, #tpu.memory_space<semaphore_mem>>
    %345 = tpu.memref_squeeze %344 : memref<1x1x!tpu.dma_semaphore, #tpu.memory_space<semaphore_mem>> -> memref<!tpu.dma_semaphore, #tpu.memory_space<semaphore_mem>>
    tpu.wait_dma2 semaphore(%345 : memref<!tpu.dma_semaphore, #tpu.memory_space<semaphore_mem>>) src(%341 : memref<1x128xf32, #tpu.memory_space<any>>) dst(%343 : memref<1x128xf32, #tpu.memory_space<vmem>>)
    %c4_i32_411 = arith.constant 4 : i32
    %c4_i32_412 = arith.constant 4 : i32
    %c2_i32_413 = arith.constant 2 : i32
    %c0_i32_414 = arith.constant 0 : i32
    %346 = tpu.memref_slice %arg2[%146, %c0_i32_414] : memref<2048x128xf32, #tpu.memory_space<any>> -> memref<1x128xf32, #tpu.memory_space<any>>
    %c2_i32_415 = arith.constant 2 : i32
    %c0_i32_416 = arith.constant 0 : i32
    %347 = tpu.memref_slice %arg4[%c4_i32_411, %c2_i32_415, %c0_i32_416] : memref<8x4x128xf32, #tpu.memory_space<vmem>> -> memref<1x1x128xf32, #tpu.memory_space<vmem>>
    %348 = tpu.memref_squeeze %347 : memref<1x1x128xf32, #tpu.memory_space<vmem>> -> memref<1x128xf32, #tpu.memory_space<vmem>>
    %349 = tpu.memref_slice %arg5[%c4_i32_412, %c2_i32_413] : memref<8x4x!tpu.dma_semaphore, #tpu.memory_space<semaphore_mem>> -> memref<1x1x!tpu.dma_semaphore, #tpu.memory_space<semaphore_mem>>
    %350 = tpu.memref_squeeze %349 : memref<1x1x!tpu.dma_semaphore, #tpu.memory_space<semaphore_mem>> -> memref<!tpu.dma_semaphore, #tpu.memory_space<semaphore_mem>>
    tpu.wait_dma2 semaphore(%350 : memref<!tpu.dma_semaphore, #tpu.memory_space<semaphore_mem>>) src(%346 : memref<1x128xf32, #tpu.memory_space<any>>) dst(%348 : memref<1x128xf32, #tpu.memory_space<vmem>>)
    %c4_i32_417 = arith.constant 4 : i32
    %c4_i32_418 = arith.constant 4 : i32
    %c3_i32_419 = arith.constant 3 : i32
    %c0_i32_420 = arith.constant 0 : i32
    %351 = tpu.memref_slice %arg2[%154, %c0_i32_420] : memref<2048x128xf32, #tpu.memory_space<any>> -> memref<1x128xf32, #tpu.memory_space<any>>
    %c3_i32_421 = arith.constant 3 : i32
    %c0_i32_422 = arith.constant 0 : i32
    %352 = tpu.memref_slice %arg4[%c4_i32_417, %c3_i32_421, %c0_i32_422] : memref<8x4x128xf32, #tpu.memory_space<vmem>> -> memref<1x1x128xf32, #tpu.memory_space<vmem>>
    %353 = tpu.memref_squeeze %352 : memref<1x1x128xf32, #tpu.memory_space<vmem>> -> memref<1x128xf32, #tpu.memory_space<vmem>>
    %354 = tpu.memref_slice %arg5[%c4_i32_418, %c3_i32_419] : memref<8x4x!tpu.dma_semaphore, #tpu.memory_space<semaphore_mem>> -> memref<1x1x!tpu.dma_semaphore, #tpu.memory_space<semaphore_mem>>
    %355 = tpu.memref_squeeze %354 : memref<1x1x!tpu.dma_semaphore, #tpu.memory_space<semaphore_mem>> -> memref<!tpu.dma_semaphore, #tpu.memory_space<semaphore_mem>>
    tpu.wait_dma2 semaphore(%355 : memref<!tpu.dma_semaphore, #tpu.memory_space<semaphore_mem>>) src(%351 : memref<1x128xf32, #tpu.memory_space<any>>) dst(%353 : memref<1x128xf32, #tpu.memory_space<vmem>>)
    %c5_i32_423 = arith.constant 5 : i32
    %c5_i32_424 = arith.constant 5 : i32
    %c0_i32_425 = arith.constant 0 : i32
    %c0_i32_426 = arith.constant 0 : i32
    %356 = tpu.memref_slice %arg2[%162, %c0_i32_426] : memref<2048x128xf32, #tpu.memory_space<any>> -> memref<1x128xf32, #tpu.memory_space<any>>
    %c0_i32_427 = arith.constant 0 : i32
    %c0_i32_428 = arith.constant 0 : i32
    %357 = tpu.memref_slice %arg4[%c5_i32_423, %c0_i32_427, %c0_i32_428] : memref<8x4x128xf32, #tpu.memory_space<vmem>> -> memref<1x1x128xf32, #tpu.memory_space<vmem>>
    %358 = tpu.memref_squeeze %357 : memref<1x1x128xf32, #tpu.memory_space<vmem>> -> memref<1x128xf32, #tpu.memory_space<vmem>>
    %359 = tpu.memref_slice %arg5[%c5_i32_424, %c0_i32_425] : memref<8x4x!tpu.dma_semaphore, #tpu.memory_space<semaphore_mem>> -> memref<1x1x!tpu.dma_semaphore, #tpu.memory_space<semaphore_mem>>
    %360 = tpu.memref_squeeze %359 : memref<1x1x!tpu.dma_semaphore, #tpu.memory_space<semaphore_mem>> -> memref<!tpu.dma_semaphore, #tpu.memory_space<semaphore_mem>>
    tpu.wait_dma2 semaphore(%360 : memref<!tpu.dma_semaphore, #tpu.memory_space<semaphore_mem>>) src(%356 : memref<1x128xf32, #tpu.memory_space<any>>) dst(%358 : memref<1x128xf32, #tpu.memory_space<vmem>>)
    %c5_i32_429 = arith.constant 5 : i32
    %c5_i32_430 = arith.constant 5 : i32
    %c1_i32_431 = arith.constant 1 : i32
    %c0_i32_432 = arith.constant 0 : i32
    %361 = tpu.memref_slice %arg2[%170, %c0_i32_432] : memref<2048x128xf32, #tpu.memory_space<any>> -> memref<1x128xf32, #tpu.memory_space<any>>
    %c1_i32_433 = arith.constant 1 : i32
    %c0_i32_434 = arith.constant 0 : i32
    %362 = tpu.memref_slice %arg4[%c5_i32_429, %c1_i32_433, %c0_i32_434] : memref<8x4x128xf32, #tpu.memory_space<vmem>> -> memref<1x1x128xf32, #tpu.memory_space<vmem>>
    %363 = tpu.memref_squeeze %362 : memref<1x1x128xf32, #tpu.memory_space<vmem>> -> memref<1x128xf32, #tpu.memory_space<vmem>>
    %364 = tpu.memref_slice %arg5[%c5_i32_430, %c1_i32_431] : memref<8x4x!tpu.dma_semaphore, #tpu.memory_space<semaphore_mem>> -> memref<1x1x!tpu.dma_semaphore, #tpu.memory_space<semaphore_mem>>
    %365 = tpu.memref_squeeze %364 : memref<1x1x!tpu.dma_semaphore, #tpu.memory_space<semaphore_mem>> -> memref<!tpu.dma_semaphore, #tpu.memory_space<semaphore_mem>>
    tpu.wait_dma2 semaphore(%365 : memref<!tpu.dma_semaphore, #tpu.memory_space<semaphore_mem>>) src(%361 : memref<1x128xf32, #tpu.memory_space<any>>) dst(%363 : memref<1x128xf32, #tpu.memory_space<vmem>>)
    %c5_i32_435 = arith.constant 5 : i32
    %c5_i32_436 = arith.constant 5 : i32
    %c2_i32_437 = arith.constant 2 : i32
    %c0_i32_438 = arith.constant 0 : i32
    %366 = tpu.memref_slice %arg2[%178, %c0_i32_438] : memref<2048x128xf32, #tpu.memory_space<any>> -> memref<1x128xf32, #tpu.memory_space<any>>
    %c2_i32_439 = arith.constant 2 : i32
    %c0_i32_440 = arith.constant 0 : i32
    %367 = tpu.memref_slice %arg4[%c5_i32_435, %c2_i32_439, %c0_i32_440] : memref<8x4x128xf32, #tpu.memory_space<vmem>> -> memref<1x1x128xf32, #tpu.memory_space<vmem>>
    %368 = tpu.memref_squeeze %367 : memref<1x1x128xf32, #tpu.memory_space<vmem>> -> memref<1x128xf32, #tpu.memory_space<vmem>>
    %369 = tpu.memref_slice %arg5[%c5_i32_436, %c2_i32_437] : memref<8x4x!tpu.dma_semaphore, #tpu.memory_space<semaphore_mem>> -> memref<1x1x!tpu.dma_semaphore, #tpu.memory_space<semaphore_mem>>
    %370 = tpu.memref_squeeze %369 : memref<1x1x!tpu.dma_semaphore, #tpu.memory_space<semaphore_mem>> -> memref<!tpu.dma_semaphore, #tpu.memory_space<semaphore_mem>>
    tpu.wait_dma2 semaphore(%370 : memref<!tpu.dma_semaphore, #tpu.memory_space<semaphore_mem>>) src(%366 : memref<1x128xf32, #tpu.memory_space<any>>) dst(%368 : memref<1x128xf32, #tpu.memory_space<vmem>>)
    %c5_i32_441 = arith.constant 5 : i32
    %c5_i32_442 = arith.constant 5 : i32
    %c3_i32_443 = arith.constant 3 : i32
    %c0_i32_444 = arith.constant 0 : i32
    %371 = tpu.memref_slice %arg2[%186, %c0_i32_444] : memref<2048x128xf32, #tpu.memory_space<any>> -> memref<1x128xf32, #tpu.memory_space<any>>
    %c3_i32_445 = arith.constant 3 : i32
    %c0_i32_446 = arith.constant 0 : i32
    %372 = tpu.memref_slice %arg4[%c5_i32_441, %c3_i32_445, %c0_i32_446] : memref<8x4x128xf32, #tpu.memory_space<vmem>> -> memref<1x1x128xf32, #tpu.memory_space<vmem>>
    %373 = tpu.memref_squeeze %372 : memref<1x1x128xf32, #tpu.memory_space<vmem>> -> memref<1x128xf32, #tpu.memory_space<vmem>>
    %374 = tpu.memref_slice %arg5[%c5_i32_442, %c3_i32_443] : memref<8x4x!tpu.dma_semaphore, #tpu.memory_space<semaphore_mem>> -> memref<1x1x!tpu.dma_semaphore, #tpu.memory_space<semaphore_mem>>
    %375 = tpu.memref_squeeze %374 : memref<1x1x!tpu.dma_semaphore, #tpu.memory_space<semaphore_mem>> -> memref<!tpu.dma_semaphore, #tpu.memory_space<semaphore_mem>>
    tpu.wait_dma2 semaphore(%375 : memref<!tpu.dma_semaphore, #tpu.memory_space<semaphore_mem>>) src(%371 : memref<1x128xf32, #tpu.memory_space<any>>) dst(%373 : memref<1x128xf32, #tpu.memory_space<vmem>>)
    %c6_i32_447 = arith.constant 6 : i32
    %c6_i32_448 = arith.constant 6 : i32
    %c0_i32_449 = arith.constant 0 : i32
    %c0_i32_450 = arith.constant 0 : i32
    %376 = tpu.memref_slice %arg2[%194, %c0_i32_450] : memref<2048x128xf32, #tpu.memory_space<any>> -> memref<1x128xf32, #tpu.memory_space<any>>
    %c0_i32_451 = arith.constant 0 : i32
    %c0_i32_452 = arith.constant 0 : i32
    %377 = tpu.memref_slice %arg4[%c6_i32_447, %c0_i32_451, %c0_i32_452] : memref<8x4x128xf32, #tpu.memory_space<vmem>> -> memref<1x1x128xf32, #tpu.memory_space<vmem>>
    %378 = tpu.memref_squeeze %377 : memref<1x1x128xf32, #tpu.memory_space<vmem>> -> memref<1x128xf32, #tpu.memory_space<vmem>>
    %379 = tpu.memref_slice %arg5[%c6_i32_448, %c0_i32_449] : memref<8x4x!tpu.dma_semaphore, #tpu.memory_space<semaphore_mem>> -> memref<1x1x!tpu.dma_semaphore, #tpu.memory_space<semaphore_mem>>
    %380 = tpu.memref_squeeze %379 : memref<1x1x!tpu.dma_semaphore, #tpu.memory_space<semaphore_mem>> -> memref<!tpu.dma_semaphore, #tpu.memory_space<semaphore_mem>>
    tpu.wait_dma2 semaphore(%380 : memref<!tpu.dma_semaphore, #tpu.memory_space<semaphore_mem>>) src(%376 : memref<1x128xf32, #tpu.memory_space<any>>) dst(%378 : memref<1x128xf32, #tpu.memory_space<vmem>>)
    %c6_i32_453 = arith.constant 6 : i32
    %c6_i32_454 = arith.constant 6 : i32
    %c1_i32_455 = arith.constant 1 : i32
    %c0_i32_456 = arith.constant 0 : i32
    %381 = tpu.memref_slice %arg2[%202, %c0_i32_456] : memref<2048x128xf32, #tpu.memory_space<any>> -> memref<1x128xf32, #tpu.memory_space<any>>
    %c1_i32_457 = arith.constant 1 : i32
    %c0_i32_458 = arith.constant 0 : i32
    %382 = tpu.memref_slice %arg4[%c6_i32_453, %c1_i32_457, %c0_i32_458] : memref<8x4x128xf32, #tpu.memory_space<vmem>> -> memref<1x1x128xf32, #tpu.memory_space<vmem>>
    %383 = tpu.memref_squeeze %382 : memref<1x1x128xf32, #tpu.memory_space<vmem>> -> memref<1x128xf32, #tpu.memory_space<vmem>>
    %384 = tpu.memref_slice %arg5[%c6_i32_454, %c1_i32_455] : memref<8x4x!tpu.dma_semaphore, #tpu.memory_space<semaphore_mem>> -> memref<1x1x!tpu.dma_semaphore, #tpu.memory_space<semaphore_mem>>
    %385 = tpu.memref_squeeze %384 : memref<1x1x!tpu.dma_semaphore, #tpu.memory_space<semaphore_mem>> -> memref<!tpu.dma_semaphore, #tpu.memory_space<semaphore_mem>>
    tpu.wait_dma2 semaphore(%385 : memref<!tpu.dma_semaphore, #tpu.memory_space<semaphore_mem>>) src(%381 : memref<1x128xf32, #tpu.memory_space<any>>) dst(%383 : memref<1x128xf32, #tpu.memory_space<vmem>>)
    %c6_i32_459 = arith.constant 6 : i32
    %c6_i32_460 = arith.constant 6 : i32
    %c2_i32_461 = arith.constant 2 : i32
    %c0_i32_462 = arith.constant 0 : i32
    %386 = tpu.memref_slice %arg2[%210, %c0_i32_462] : memref<2048x128xf32, #tpu.memory_space<any>> -> memref<1x128xf32, #tpu.memory_space<any>>
    %c2_i32_463 = arith.constant 2 : i32
    %c0_i32_464 = arith.constant 0 : i32
    %387 = tpu.memref_slice %arg4[%c6_i32_459, %c2_i32_463, %c0_i32_464] : memref<8x4x128xf32, #tpu.memory_space<vmem>> -> memref<1x1x128xf32, #tpu.memory_space<vmem>>
    %388 = tpu.memref_squeeze %387 : memref<1x1x128xf32, #tpu.memory_space<vmem>> -> memref<1x128xf32, #tpu.memory_space<vmem>>
    %389 = tpu.memref_slice %arg5[%c6_i32_460, %c2_i32_461] : memref<8x4x!tpu.dma_semaphore, #tpu.memory_space<semaphore_mem>> -> memref<1x1x!tpu.dma_semaphore, #tpu.memory_space<semaphore_mem>>
    %390 = tpu.memref_squeeze %389 : memref<1x1x!tpu.dma_semaphore, #tpu.memory_space<semaphore_mem>> -> memref<!tpu.dma_semaphore, #tpu.memory_space<semaphore_mem>>
    tpu.wait_dma2 semaphore(%390 : memref<!tpu.dma_semaphore, #tpu.memory_space<semaphore_mem>>) src(%386 : memref<1x128xf32, #tpu.memory_space<any>>) dst(%388 : memref<1x128xf32, #tpu.memory_space<vmem>>)
    %c6_i32_465 = arith.constant 6 : i32
    %c6_i32_466 = arith.constant 6 : i32
    %c3_i32_467 = arith.constant 3 : i32
    %c0_i32_468 = arith.constant 0 : i32
    %391 = tpu.memref_slice %arg2[%218, %c0_i32_468] : memref<2048x128xf32, #tpu.memory_space<any>> -> memref<1x128xf32, #tpu.memory_space<any>>
    %c3_i32_469 = arith.constant 3 : i32
    %c0_i32_470 = arith.constant 0 : i32
    %392 = tpu.memref_slice %arg4[%c6_i32_465, %c3_i32_469, %c0_i32_470] : memref<8x4x128xf32, #tpu.memory_space<vmem>> -> memref<1x1x128xf32, #tpu.memory_space<vmem>>
    %393 = tpu.memref_squeeze %392 : memref<1x1x128xf32, #tpu.memory_space<vmem>> -> memref<1x128xf32, #tpu.memory_space<vmem>>
    %394 = tpu.memref_slice %arg5[%c6_i32_466, %c3_i32_467] : memref<8x4x!tpu.dma_semaphore, #tpu.memory_space<semaphore_mem>> -> memref<1x1x!tpu.dma_semaphore, #tpu.memory_space<semaphore_mem>>
    %395 = tpu.memref_squeeze %394 : memref<1x1x!tpu.dma_semaphore, #tpu.memory_space<semaphore_mem>> -> memref<!tpu.dma_semaphore, #tpu.memory_space<semaphore_mem>>
    tpu.wait_dma2 semaphore(%395 : memref<!tpu.dma_semaphore, #tpu.memory_space<semaphore_mem>>) src(%391 : memref<1x128xf32, #tpu.memory_space<any>>) dst(%393 : memref<1x128xf32, #tpu.memory_space<vmem>>)
    %c7_i32_471 = arith.constant 7 : i32
    %c7_i32_472 = arith.constant 7 : i32
    %c0_i32_473 = arith.constant 0 : i32
    %c0_i32_474 = arith.constant 0 : i32
    %396 = tpu.memref_slice %arg2[%226, %c0_i32_474] : memref<2048x128xf32, #tpu.memory_space<any>> -> memref<1x128xf32, #tpu.memory_space<any>>
    %c0_i32_475 = arith.constant 0 : i32
    %c0_i32_476 = arith.constant 0 : i32
    %397 = tpu.memref_slice %arg4[%c7_i32_471, %c0_i32_475, %c0_i32_476] : memref<8x4x128xf32, #tpu.memory_space<vmem>> -> memref<1x1x128xf32, #tpu.memory_space<vmem>>
    %398 = tpu.memref_squeeze %397 : memref<1x1x128xf32, #tpu.memory_space<vmem>> -> memref<1x128xf32, #tpu.memory_space<vmem>>
    %399 = tpu.memref_slice %arg5[%c7_i32_472, %c0_i32_473] : memref<8x4x!tpu.dma_semaphore, #tpu.memory_space<semaphore_mem>> -> memref<1x1x!tpu.dma_semaphore, #tpu.memory_space<semaphore_mem>>
    %400 = tpu.memref_squeeze %399 : memref<1x1x!tpu.dma_semaphore, #tpu.memory_space<semaphore_mem>> -> memref<!tpu.dma_semaphore, #tpu.memory_space<semaphore_mem>>
    tpu.wait_dma2 semaphore(%400 : memref<!tpu.dma_semaphore, #tpu.memory_space<semaphore_mem>>) src(%396 : memref<1x128xf32, #tpu.memory_space<any>>) dst(%398 : memref<1x128xf32, #tpu.memory_space<vmem>>)
    %c7_i32_477 = arith.constant 7 : i32
    %c7_i32_478 = arith.constant 7 : i32
    %c1_i32_479 = arith.constant 1 : i32
    %c0_i32_480 = arith.constant 0 : i32
    %401 = tpu.memref_slice %arg2[%234, %c0_i32_480] : memref<2048x128xf32, #tpu.memory_space<any>> -> memref<1x128xf32, #tpu.memory_space<any>>
    %c1_i32_481 = arith.constant 1 : i32
    %c0_i32_482 = arith.constant 0 : i32
    %402 = tpu.memref_slice %arg4[%c7_i32_477, %c1_i32_481, %c0_i32_482] : memref<8x4x128xf32, #tpu.memory_space<vmem>> -> memref<1x1x128xf32, #tpu.memory_space<vmem>>
    %403 = tpu.memref_squeeze %402 : memref<1x1x128xf32, #tpu.memory_space<vmem>> -> memref<1x128xf32, #tpu.memory_space<vmem>>
    %404 = tpu.memref_slice %arg5[%c7_i32_478, %c1_i32_479] : memref<8x4x!tpu.dma_semaphore, #tpu.memory_space<semaphore_mem>> -> memref<1x1x!tpu.dma_semaphore, #tpu.memory_space<semaphore_mem>>
    %405 = tpu.memref_squeeze %404 : memref<1x1x!tpu.dma_semaphore, #tpu.memory_space<semaphore_mem>> -> memref<!tpu.dma_semaphore, #tpu.memory_space<semaphore_mem>>
    tpu.wait_dma2 semaphore(%405 : memref<!tpu.dma_semaphore, #tpu.memory_space<semaphore_mem>>) src(%401 : memref<1x128xf32, #tpu.memory_space<any>>) dst(%403 : memref<1x128xf32, #tpu.memory_space<vmem>>)
    %c7_i32_483 = arith.constant 7 : i32
    %c7_i32_484 = arith.constant 7 : i32
    %c2_i32_485 = arith.constant 2 : i32
    %c0_i32_486 = arith.constant 0 : i32
    %406 = tpu.memref_slice %arg2[%242, %c0_i32_486] : memref<2048x128xf32, #tpu.memory_space<any>> -> memref<1x128xf32, #tpu.memory_space<any>>
    %c2_i32_487 = arith.constant 2 : i32
    %c0_i32_488 = arith.constant 0 : i32
    %407 = tpu.memref_slice %arg4[%c7_i32_483, %c2_i32_487, %c0_i32_488] : memref<8x4x128xf32, #tpu.memory_space<vmem>> -> memref<1x1x128xf32, #tpu.memory_space<vmem>>
    %408 = tpu.memref_squeeze %407 : memref<1x1x128xf32, #tpu.memory_space<vmem>> -> memref<1x128xf32, #tpu.memory_space<vmem>>
    %409 = tpu.memref_slice %arg5[%c7_i32_484, %c2_i32_485] : memref<8x4x!tpu.dma_semaphore, #tpu.memory_space<semaphore_mem>> -> memref<1x1x!tpu.dma_semaphore, #tpu.memory_space<semaphore_mem>>
    %410 = tpu.memref_squeeze %409 : memref<1x1x!tpu.dma_semaphore, #tpu.memory_space<semaphore_mem>> -> memref<!tpu.dma_semaphore, #tpu.memory_space<semaphore_mem>>
    tpu.wait_dma2 semaphore(%410 : memref<!tpu.dma_semaphore, #tpu.memory_space<semaphore_mem>>) src(%406 : memref<1x128xf32, #tpu.memory_space<any>>) dst(%408 : memref<1x128xf32, #tpu.memory_space<vmem>>)
    %c7_i32_489 = arith.constant 7 : i32
    %c7_i32_490 = arith.constant 7 : i32
    %c3_i32_491 = arith.constant 3 : i32
    %c0_i32_492 = arith.constant 0 : i32
    %411 = tpu.memref_slice %arg2[%250, %c0_i32_492] : memref<2048x128xf32, #tpu.memory_space<any>> -> memref<1x128xf32, #tpu.memory_space<any>>
    %c3_i32_493 = arith.constant 3 : i32
    %c0_i32_494 = arith.constant 0 : i32
    %412 = tpu.memref_slice %arg4[%c7_i32_489, %c3_i32_493, %c0_i32_494] : memref<8x4x128xf32, #tpu.memory_space<vmem>> -> memref<1x1x128xf32, #tpu.memory_space<vmem>>
    %413 = tpu.memref_squeeze %412 : memref<1x1x128xf32, #tpu.memory_space<vmem>> -> memref<1x128xf32, #tpu.memory_space<vmem>>
    %414 = tpu.memref_slice %arg5[%c7_i32_490, %c3_i32_491] : memref<8x4x!tpu.dma_semaphore, #tpu.memory_space<semaphore_mem>> -> memref<1x1x!tpu.dma_semaphore, #tpu.memory_space<semaphore_mem>>
    %415 = tpu.memref_squeeze %414 : memref<1x1x!tpu.dma_semaphore, #tpu.memory_space<semaphore_mem>> -> memref<!tpu.dma_semaphore, #tpu.memory_space<semaphore_mem>>
    tpu.wait_dma2 semaphore(%415 : memref<!tpu.dma_semaphore, #tpu.memory_space<semaphore_mem>>) src(%411 : memref<1x128xf32, #tpu.memory_space<any>>) dst(%413 : memref<1x128xf32, #tpu.memory_space<vmem>>)
    %c0_495 = arith.constant 0 : index
    %c0_496 = arith.constant 0 : index
    %c0_497 = arith.constant 0 : index
    %416 = vector.load %arg4[%c0_495, %c0_496, %c0_497] : memref<8x4x128xf32, #tpu.memory_space<vmem>>, vector<8x4x128xf32>
    %cst = arith.constant dense<0.000000e+00> : vector<8x128xf32>
    %417 = vector.multi_reduction <add>, %416, %cst [1] : vector<8x4x128xf32> to vector<8x128xf32>
    %cst_498 = arith.constant 4.000000e+00 : f32
    %418 = vector.broadcast %cst_498 : f32 to vector<8x128xf32>
    %419 = arith.divf %417, %418 : vector<8x128xf32>
    %420 = arith.truncf %419 : vector<8x128xf32> to vector<8x128xbf16>
    %c0_499 = arith.constant 0 : index
    %c0_500 = arith.constant 0 : index
    %421 = vector.load %arg3[%c0_499, %c0_500] : memref<8x128xbf16, #tpu.memory_space<vmem>>, vector<8x128xbf16>
    tpu.vector_store %arg3[%c0_499, %c0_500], %420 {strides = array<i32>} : memref<8x128xbf16, #tpu.memory_space<vmem>>, vector<8x128xbf16>,
    return
  }
  func.func @transform_1(%arg0: i32, %arg1: memref<8x4xi32, #tpu.memory_space<smem>>) -> (i32, i32) {
    %c0_i32 = arith.constant 0 : i32
    %c0_i32_0 = arith.constant 0 : i32
    %c0_i32_1 = arith.constant 0 : i32
    return %c0_i32, %c0_i32_0 : i32, i32
  }
}

</mosaic_0001>

<bundles_post_ra>
// kernel: tpu_custom_call.1
= control target key start
LH: loop header
LB: loop body
LE: loop exit
PB: predicated region body
PF: predicated region fallthrough
CT: control target
= control target key end

     0   :  { %s3136_s0 = inlined_call_operand.vmem [shape: s32[8,4], index: 0, kind: input, shape index: {}]   ;;  %s3137_s1 = inlined_call_operand.hbm [shape: f32[2048,128], index: 1, kind: input, shape index: {}]   ;;  %s3138_s2 = inlined_call_operand.hbm [shape: bf16[8,128], index: 2, kind: output, shape index: {}]  }
   0x1   :  { %s7_s11 = sshll.u32 %s3136_s0, 4  ;;  %s8_s11 = int_to_ptr.vmem [resolvable:$true] %s7_s11 }
   0x2   :  { %s1518_s12 = scalar_lea.vmem %s8_s11, 128  ;;  %p1523_p1 = scmp.lt.s32.totalorder %s8_s11, %s8_s11 }
   0x3   :  { %p1519_p0 = scmp.ne.s32.totalorder %s8_s11, %s1518_s12  ;;  %p1524_p2 = scmp.lt.s32.totalorder %s1518_s12, %s1518_s12 }
   0x5   :  { %p1525_p3 = por %p1524_p2, %p1523_p1 }
   0x7   :  { %p1526_p4 = pnand %p1525_p3, %p1519_p0 }
   0x9   :  { %1529 = shalt.err (!%p1526_p4)  }
   0xa   :  { %s2388_s13 = smov [#allocation5]  }
   0xb   :  { %10 = dma.vmem_to_smem %s8_s11, 128, %s2388_s13, [#allocation4] }
   0xc   :  { %2320 = dma.done.wait [#allocation4], 128 }
   0xd   :  { %2321 = vsyncadd [#allocation4], 4294967168 }
   0xe   :  { %12 = sfence }
   0xf   :  { %13 = vsyncpa [#allocation7], 0  ;;  %s14_s14 = sld [smem:[#allocation5]]  ;;  %s2389_s15 = smov [#allocation2]  }
  0x10   :  { %s28_s16 = sshll.u32 %s2389_s15, 4  ;;  %s1155_s17 = sld [smem:[#allocation5 + $0x1]]  ;;  %s2440_s16 = int_to_ptr.vmem [resolvable:$true] %s28_s16 }
  0x11   :  { %s2390_s0 = smov [#allocation2 + $0x1]   ;;  %s2442_s19 = sld [smem:[#allocation5 + $0x2]] }
  0x12   :  { %s48_s18 = sshll.u32 %s2390_s0, 4  ;;  %s2391_s20 = smov [#allocation2 + $0x2]   ;;  %s2444_s18 = int_to_ptr.vmem [resolvable:$true] %s48_s18 }
  0x13   :  { %s2446_s21 = sshll.u32 %s2391_s20, 4  ;;  %s2448_s22 = sld [smem:[#allocation5 + $0x3]]  ;;  %s69_s21 = int_to_ptr.vmem [resolvable:$true] %s2446_s21 }
  0x14   :  { %s2457_s3 = scalar_lea.hbm %s3137_s1, 32768 }
  0x15   :  { %p15_p5 = scmp.gt.s32.totalorder %s14_s14, 0  ;;  %p1149_p6 = scmp.lt.s32.totalorder %s14_s14, 2047 }
  0x16   :  { %p33_p7 = scmp.gt.s32.totalorder %s1155_s17, 0  ;;  %p1156_p8 = scmp.lt.s32.totalorder %s1155_s17, 2047 }
  0x17   :  { %s3147_s14 = smov (!%p15_p5, %s14_s14), 0  ;;  %p53_p9 = scmp.gt.s32.totalorder %s2442_s19, 0 }
  0x18   :  { %s3149_s17 = smov (!%p33_p7, %s1155_s17), 0  ;;  %s3151_s14 = smov (!%p1149_p6, %s3147_s14), 2047 }
  0x19   :  { %s3153_s17 = smov (!%p1156_p8, %s3149_s17), 2047  ;;  %s1154_s23 = sshll.u32 %s3151_s14, 4 }
  0x1a   :  { %s20_s26 = scalar_lea.hbm %s3137_s1, %s1154_s23  ;;  %s1161_s27 = sshll.u32 %s3153_s17, 4 }
  0x1b   :  { %s1530_s28 = scalar_lea.hbm %s20_s26, 16  ;;  %p1533_p11 = scmp.lt.u32.totalorder %s20_s26, %s3137_s1 }
  0x1c   :  { %p1531_p10 = scmp.ne.s32.totalorder %s20_s26, %s1530_s28  ;;  %p1534_p12 = scmp.lt.u32.totalorder %s2457_s3, %s1530_s28 }
  0x1d   :  { %p1536_p0 = scmp.lt.u32.totalorder %s1530_s28, %s20_s26 }
  0x1e   :  { %p1535_p13 = por %p1534_p12, %p1533_p11 }
  0x20   :  { %p1537_p1 = por %p1536_p0, %p1535_p13 }
  0x22   :  { %p1538_p2 = pnand %p1537_p1, %p1531_p10 }
  0x24   :  { %1541 = shalt.err (!%p1538_p2)  }
  0x25   :  { %s1542_s6 = scalar_lea.vmem %s2440_s16, 16  ;;  %s2466_s7 = scalar_lea.vmem %s2440_s16, 512 }
  0x26   :  { %p1543_p3 = scmp.ne.s32.totalorder %s2440_s16, %s1542_s6  ;;  %p1547_p4 = scmp.lt.s32.totalorder %s2440_s16, %s2440_s16 }
  0x27   :  { %p1548_p5 = scmp.lt.s32.totalorder %s2466_s7, %s1542_s6 }
  0x29   :  { %p1549_p6 = por %p1548_p5, %p1547_p4 }
  0x2b   :  { %p1550_p7 = pnand %p1549_p6, %p1543_p3 }
  0x2d   :  { %1553 = shalt.err (!%p1550_p7)  }
  0x2e   :  { %31 = dma.hbm_to_vmem [thread:$0]  %s20_s26, 16, %s2440_s16, [#allocation3] }
  0x2f   :  { %s38_s10 = scalar_lea.hbm %s3137_s1, %s1161_s27  ;;  %p1163_p8 = scmp.lt.s32.totalorder %s2442_s19, 2047 }
  0x30   :  { %s1554_s11 = scalar_lea.hbm %s38_s10, 16  ;;  %p1557_p11 = scmp.lt.u32.totalorder %s38_s10, %s3137_s1 }
  0x31   :  { %p1555_p10 = scmp.ne.s32.totalorder %s38_s10, %s1554_s11  ;;  %p1558_p12 = scmp.lt.u32.totalorder %s2457_s3, %s1554_s11 }
  0x32   :  { %p1560_p0 = scmp.lt.u32.totalorder %s1554_s11, %s38_s10 }
  0x33   :  { %p1559_p13 = por %p1558_p12, %p1557_p11 }
  0x35   :  { %p1561_p1 = por %p1560_p0, %p1559_p13 }
  0x37   :  { %p1562_p2 = pnand %p1561_p1, %p1555_p10 }
  0x39   :  { %1565 = shalt.err (!%p1562_p2)  }
  0x3a   :  { %s1566_s14 = scalar_lea.vmem %s2444_s18, 16  ;;  %p1571_p4 = scmp.lt.s32.totalorder %s2444_s18, %s2440_s16 }
  0x3b   :  { %p1567_p3 = scmp.ne.s32.totalorder %s2444_s18, %s1566_s14  ;;  %p1572_p5 = scmp.lt.s32.totalorder %s2466_s7, %s1566_s14 }
  0x3d   :  { %p1573_p6 = por %p1572_p5, %p1571_p4 }
  0x3f   :  { %p1574_p7 = pnand %p1573_p6, %p1567_p3 }
  0x41   :  { %1577 = shalt.err (!%p1574_p7)  }
  0x42   :  { %51 = dma.hbm_to_vmem [thread:$0]  %s38_s10, 16, %s2444_s18, [#allocation3 + $0x1] }
  0x43   :  { %s54_s15 = scalar_select %p53_p9, %s2442_s19, 0 }
  0x44   :  { %p73_p10 = scmp.gt.s32.totalorder %s2448_s22, 0  ;;  %p1170_p11 = scmp.lt.s32.totalorder %s2448_s22, 2047 }
  0x45   :  { %s3155_s15 = smov (!%p1163_p8, %s54_s15), 2047 }
  0x46   :  { %s74_s17 = scalar_select %p73_p10, %s2448_s22, 0 }
  0x47   :  { %s1168_s0 = sshll.u32 %s3155_s15, 4 }
  0x48   :  { %s58_s24 = scalar_lea.hbm %s3137_s1, %s1168_s0 }
  0x49   :  { %s1578_s25 = scalar_lea.hbm %s58_s24, 16  ;;  %p1581_p13 = scmp.lt.u32.totalorder %s58_s24, %s3137_s1 }
  0x4a   :  { %p1579_p12 = scmp.ne.s32.totalorder %s58_s24, %s1578_s25  ;;  %p1582_p0 = scmp.lt.u32.totalorder %s2457_s3, %s1578_s25 }
  0x4b   :  { %p1584_p9 = scmp.lt.u32.totalorder %s1578_s25, %s58_s24 }
  0x4c   :  { %p1583_p1 = por %p1582_p0, %p1581_p13 }
  0x4e   :  { %p1585_p2 = por %p1584_p9, %p1583_p1 }
  0x50   :  { %p1586_p3 = pnand %p1585_p2, %p1579_p12 }
  0x52   :  { %1589 = shalt.err (!%p1586_p3)  }
  0x53   :  { %s1590_s18 = scalar_lea.vmem %s69_s21, 16  ;;  %p1595_p4 = scmp.lt.s32.totalorder %s69_s21, %s2440_s16 }
  0x54   :  { %p1591_p8 = scmp.ne.s32.totalorder %s69_s21, %s1590_s18  ;;  %p1596_p5 = scmp.lt.s32.totalorder %s2466_s7, %s1590_s18 }
  0x56   :  { %p1597_p6 = por %p1596_p5, %p1595_p4 }
  0x58   :  { %p1598_p7 = pnand %p1597_p6, %p1591_p8 }
  0x5a   :  { %1601 = shalt.err (!%p1598_p7)  }
  0x5b   :  { %71 = dma.hbm_to_vmem [thread:$0]  %s58_s24, 16, %s69_s21, [#allocation3 + $0x2] }
  0x5c   :  { %s3157_s17 = smov (!%p1170_p11, %s74_s17), 2047  ;;  %s2392_s19 = smov [#allocation2 + $0x3]  }
  0x5d   :  { %s88_s28 = sshll.u32 %s2392_s19, 4  ;;  %s2506_s29 = sld [smem:[#allocation5 + $0x80]]  ;;  %s89_s28 = int_to_ptr.vmem [resolvable:$true] %s88_s28 }
  0x5e   :  { %s1175_s30 = sshll.u32 %s3157_s17, 4 }
  0x5f   :  { %s78_s6 = scalar_lea.hbm %s3137_s1, %s1175_s30 }
  0x60   :  { %s1602_s8 = scalar_lea.hbm %s78_s6, 16  ;;  %p1605_p12 = scmp.lt.u32.totalorder %s78_s6, %s3137_s1 }
  0x61   :  { %p1603_p10 = scmp.ne.s32.totalorder %s78_s6, %s1602_s8  ;;  %p1606_p13 = scmp.lt.u32.totalorder %s2457_s3, %s1602_s8 }
  0x62   :  { %p1608_p1 = scmp.lt.u32.totalorder %s1602_s8, %s78_s6 }
  0x63   :  { %p1607_p0 = por %p1606_p13, %p1605_p12 }
  0x65   :  { %p1609_p11 = por %p1608_p1, %p1607_p0 }
  0x67   :  { %p1610_p9 = pnand %p1609_p11, %p1603_p10 }
  0x69   :  { %1613 = shalt.err (!%p1610_p9)  }
  0x6a   :  { %s1614_s21 = scalar_lea.vmem %s89_s28, 16  ;;  %p1619_p3 = scmp.lt.s32.totalorder %s89_s28, %s2440_s16 }
  0x6b   :  { %p1615_p2 = scmp.ne.s32.totalorder %s89_s28, %s1614_s21  ;;  %p1620_p8 = scmp.lt.s32.totalorder %s2466_s7, %s1614_s21 }
  0x6d   :  { %p1621_p4 = por %p1620_p8, %p1619_p3 }
  0x6f   :  { %p1622_p5 = pnand %p1621_p4, %p1615_p2 }
  0x71   :  { %1625 = shalt.err (!%p1622_p5)  }
  0x72   :  { %91 = dma.hbm_to_vmem [thread:$0]  %s78_s6, 16, %s89_s28, [#allocation3 + $0x3] }
  0x73   :  { %s2393_s22 = smov [#allocation2 + $0x4]   ;;  %s2517_s12 = sld [smem:[#allocation5 + $0x81]] }
  0x74   :  { %s108_s11 = sshll.u32 %s2393_s22, 4  ;;  %p93_p6 = scmp.gt.s32.totalorder %s2506_s29, 0  ;;  %s2519_s11 = int_to_ptr.vmem [resolvable:$true] %s108_s11 }
  0x75   :  { %p1177_p7 = scmp.lt.s32.totalorder %s2506_s29, 2047  ;;  %s2394_s13 = smov [#allocation2 + $0x5]  }
  0x76   :  { %s128_s14 = sshll.u32 %s2394_s13, 4  ;;  %s2523_s15 = sld [smem:[#allocation5 + $0x82]]  ;;  %s2526_s14 = int_to_ptr.vmem [resolvable:$true] %s128_s14 }
  0x77   :  { %s3159_s29 = smov (!%p93_p6, %s2506_s29), 0  ;;  %s2395_s0 = smov [#allocation2 + $0x6]  }
  0x78   :  { %s3161_s29 = smov (!%p1177_p7, %s3159_s29), 2047  ;;  %s148_s20 = sshll.u32 %s2395_s0, 4  ;;  %s2553_s20 = int_to_ptr.vmem [resolvable:$true] %s148_s20 }
  0x79   :  { %p113_p10 = scmp.gt.s32.totalorder %s2517_s12, 0  ;;  %s1182_s17 = sshll.u32 %s3161_s29, 4 }
  0x7a   :  { %s98_s25 = scalar_lea.hbm %s3137_s1, %s1182_s17 }
  0x7b   :  { %s1626_s26 = scalar_lea.hbm %s98_s25, 16  ;;  %p1629_p1 = scmp.lt.u32.totalorder %s98_s25, %s3137_s1 }
  0x7c   :  { %p133_p13 = scmp.gt.s32.totalorder %s2523_s15, 0  ;;  %p1627_p0 = scmp.ne.s32.totalorder %s98_s25, %s1626_s26 }
  0x7d   :  { %p1630_p11 = scmp.lt.u32.totalorder %s2457_s3, %s1626_s26  ;;  %p1632_p2 = scmp.lt.u32.totalorder %s1626_s26, %s98_s25 }
  0x7f   :  { %p1631_p9 = por %p1630_p11, %p1629_p1 }
  0x81   :  { %p1633_p3 = por %p1632_p2, %p1631_p9 }
  0x83   :  { %p1634_p8 = pnand %p1633_p3, %p1627_p0 }
  0x85   :  { %1637 = shalt.err (!%p1634_p8)  }
  0x86   :  { %s1638_s19 = scalar_lea.vmem %s2519_s11, 16  ;;  %p1643_p5 = scmp.lt.s32.totalorder %s2519_s11, %s2440_s16 }
  0x87   :  { %p1639_p4 = scmp.ne.s32.totalorder %s2519_s11, %s1638_s19  ;;  %p1644_p6 = scmp.lt.s32.totalorder %s2466_s7, %s1638_s19 }
  0x89   :  { %p1645_p7 = por %p1644_p6, %p1643_p5 }
  0x8b   :  { %p1646_p12 = pnand %p1645_p7, %p1639_p4 }
  0x8d   :  { %1649 = shalt.err (!%p1646_p12)  }
  0x8e   :  { %111 = dma.hbm_to_vmem [thread:$0]  %s98_s25, 16, %s2519_s11, [#allocation3 + $0x4] }
  0x8f   :  { %s114_s28 = scalar_select %p113_p10, %s2517_s12, 0 }
  0x90   :  { %s134_s29 = scalar_select %p133_p13, %s2523_s15, 0 }
  0x91   :  { %p3139_p0 = scmp.lt.s32.totalorder %s2517_s12, 2047  ;;  %p1191_p1 = scmp.lt.s32.totalorder %s2523_s15, 2047 }
  0x92   :  { %s2555_s4 = sld [smem:[#allocation5 + $0x83]] }
  0x93   :  { %s3163_s28 = smov (!%p3139_p0, %s114_s28), 2047 }
  0x94   :  { %s1189_s30 = sshll.u32 %s3163_s28, 4 }
  0x95   :  { %s118_s8 = scalar_lea.hbm %s3137_s1, %s1189_s30 }
  0x96   :  { %s1650_s9 = scalar_lea.hbm %s118_s8, 16  ;;  %p1653_p10 = scmp.lt.u32.totalorder %s118_s8, %s3137_s1 }
  0x97   :  { %p1651_p12 = scmp.ne.s32.totalorder %s118_s8, %s1650_s9  ;;  %p1654_p11 = scmp.lt.u32.totalorder %s2457_s3, %s1650_s9 }
  0x98   :  { %p1656_p9 = scmp.lt.u32.totalorder %s1650_s9, %s118_s8 }
  0x99   :  { %p1655_p13 = por %p1654_p11, %p1653_p10 }
  0x9b   :  { %p1657_p2 = por %p1656_p9, %p1655_p13 }
  0x9d   :  { %p1658_p3 = pnand %p1657_p2, %p1651_p12 }
  0x9f   :  { %1661 = shalt.err (!%p1658_p3)  }
  0xa0   :  { %s1662_s22 = scalar_lea.vmem %s2526_s14, 16  ;;  %p1667_p4 = scmp.lt.s32.totalorder %s2526_s14, %s2440_s16 }
  0xa1   :  { %p1663_p8 = scmp.ne.s32.totalorder %s2526_s14, %s1662_s22  ;;  %p1668_p5 = scmp.lt.s32.totalorder %s2466_s7, %s1662_s22 }
  0xa3   :  { %p1669_p6 = por %p1668_p5, %p1667_p4 }
  0xa5   :  { %p1670_p7 = pnand %p1669_p6, %p1663_p8 }
  0xa7   :  { %1673 = shalt.err (!%p1670_p7)  }
  0xa8   :  { %131 = dma.hbm_to_vmem [thread:$0]  %s118_s8, 16, %s2526_s14, [#allocation3 + $0x5] }
  0xa9   :  { %s3165_s29 = smov (!%p1191_p1, %s134_s29), 2047  ;;  %s2396_s11 = smov [#allocation2 + $0x7]  }
  0xaa   :  { %s168_s12 = sshll.u32 %s2396_s11, 4  ;;  %s2572_s13 = sld [smem:[#allocation5 + $0x100]]  ;;  %s2574_s12 = int_to_ptr.vmem [resolvable:$true] %s168_s12 }
  0xab   :  { %s1196_s17 = sshll.u32 %s3165_s29, 4  ;;  %p153_p0 = scmp.gt.s32.totalorder %s2555_s4, 0 }
  0xac   :  { %s138_s24 = scalar_lea.hbm %s3137_s1, %s1196_s17 }
  0xad   :  { %s1674_s25 = scalar_lea.hbm %s138_s24, 16  ;;  %p1677_p10 = scmp.lt.u32.totalorder %s138_s24, %s3137_s1 }
  0xae   :  { %p1675_p12 = scmp.ne.s32.totalorder %s138_s24, %s1674_s25  ;;  %p1678_p11 = scmp.lt.u32.totalorder %s2457_s3, %s1674_s25 }
  0xaf   :  { %p1680_p13 = scmp.lt.u32.totalorder %s1674_s25, %s138_s24 }
  0xb0   :  { %p1679_p1 = por %p1678_p11, %p1677_p10 }
  0xb2   :  { %p1681_p9 = por %p1680_p13, %p1679_p1 }
  0xb4   :  { %p1682_p2 = pnand %p1681_p9, %p1675_p12 }
  0xb6   :  { %1685 = shalt.err (!%p1682_p2)  }
  0xb7   :  { %s1686_s14 = scalar_lea.vmem %s2553_s20, 16  ;;  %p1691_p8 = scmp.lt.s32.totalorder %s2553_s20, %s2440_s16 }
  0xb8   :  { %p1687_p3 = scmp.ne.s32.totalorder %s2553_s20, %s1686_s14  ;;  %p1692_p4 = scmp.lt.s32.totalorder %s2466_s7, %s1686_s14 }
  0xba   :  { %p1693_p5 = por %p1692_p4, %p1691_p8 }
  0xbc   :  { %p1694_p6 = pnand %p1693_p5, %p1687_p3 }
  0xbe   :  { %1697 = shalt.err (!%p1694_p6)  }
  0xbf   :  { %151 = dma.hbm_to_vmem [thread:$0]  %s138_s24, 16, %s2553_s20, [#allocation3 + $0x6] }
  0xc0   :  { %s154_s15 = scalar_select %p153_p0, %s2555_s4, 0 }
  0xc1   :  { %p1198_p7 = scmp.lt.s32.totalorder %s2555_s4, 2047  ;;  %p173_p12 = scmp.gt.s32.totalorder %s2572_s13, 0 }
  0xc2   :  { %p1205_p10 = scmp.lt.s32.totalorder %s2572_s13, 2047  ;;  %s2397_s28 = smov [#allocation2 + $0x8]  }
  0xc3   :  { %s3167_s15 = smov (!%p1198_p7, %s154_s15), 2047  ;;  %s188_s29 = sshll.u32 %s2397_s28, 4  ;;  %s2600_s29 = int_to_ptr.vmem [resolvable:$true] %s188_s29 }
  0xc4   :  { %s174_s18 = scalar_select %p173_p12, %s2572_s13, 0 }
  0xc5   :  { %s1203_s19 = sshll.u32 %s3167_s15, 4 }
  0xc6   :  { %s158_s6 = scalar_lea.hbm %s3137_s1, %s1203_s19 }
  0xc7   :  { %s1698_s8 = scalar_lea.hbm %s158_s6, 16  ;;  %p1701_p0 = scmp.lt.u32.totalorder %s158_s6, %s3137_s1 }
  0xc8   :  { %p1699_p11 = scmp.ne.s32.totalorder %s158_s6, %s1698_s8  ;;  %p1702_p1 = scmp.lt.u32.totalorder %s2457_s3, %s1698_s8 }
  0xc9   :  { %p1704_p9 = scmp.lt.u32.totalorder %s1698_s8, %s158_s6 }
  0xca   :  { %p1703_p13 = por %p1702_p1, %p1701_p0 }
  0xcc   :  { %p1705_p2 = por %p1704_p9, %p1703_p13 }
  0xce   :  { %p1706_p3 = pnand %p1705_p2, %p1699_p11 }
  0xd0   :  { %1709 = shalt.err (!%p1706_p3)  }
  0xd1   :  { %s1710_s4 = scalar_lea.vmem %s2574_s12, 16  ;;  %p1715_p4 = scmp.lt.s32.totalorder %s2574_s12, %s2440_s16 }
  0xd2   :  { %p1711_p8 = scmp.ne.s32.totalorder %s2574_s12, %s1710_s4  ;;  %p1716_p5 = scmp.lt.s32.totalorder %s2466_s7, %s1710_s4 }
  0xd4   :  { %p1717_p6 = por %p1716_p5, %p1715_p4 }
  0xd6   :  { %p1718_p7 = pnand %p1717_p6, %p1711_p8 }
  0xd8   :  { %1721 = shalt.err (!%p1718_p7)  }
  0xd9   :  { %171 = dma.hbm_to_vmem [thread:$0]  %s158_s6, 16, %s2574_s12, [#allocation3 + $0x7] }
  0xda   :  { %s3169_s18 = smov (!%p1205_p10, %s174_s18), 2047  ;;  %s2614_s10 = sld [smem:[#allocation5 + $0x101]] }
  0xdb   :  { %s1210_s21 = sshll.u32 %s3169_s18, 4  ;;  %s2398_s22 = smov [#allocation2 + $0x9]  }
  0xdc   :  { %s208_s11 = sshll.u32 %s2398_s22, 4  ;;  %s178_s23 = scalar_lea.hbm %s3137_s1, %s1210_s21  ;;  %s2619_s11 = int_to_ptr.vmem [resolvable:$true] %s208_s11 }
  0xdd   :  { %s1722_s24 = scalar_lea.hbm %s178_s23, 16  ;;  %p1725_p11 = scmp.lt.u32.totalorder %s178_s23, %s3137_s1 }
  0xde   :  { %p1723_p12 = scmp.ne.s32.totalorder %s178_s23, %s1722_s24  ;;  %p1726_p0 = scmp.lt.u32.totalorder %s2457_s3, %s1722_s24 }
  0xdf   :  { %p1728_p10 = scmp.lt.u32.totalorder %s1722_s24, %s178_s23 }
  0xe0   :  { %p1727_p1 = por %p1726_p0, %p1725_p11 }
  0xe2   :  { %p1729_p13 = por %p1728_p10, %p1727_p1 }
  0xe4   :  { %p1730_p9 = pnand %p1729_p13, %p1723_p12 }
  0xe6   :  { %1733 = shalt.err (!%p1730_p9)  }
  0xe7   :  { %s1734_s12 = scalar_lea.vmem %s2600_s29, 16  ;;  %p1739_p3 = scmp.lt.s32.totalorder %s2600_s29, %s2440_s16 }
  0xe8   :  { %p1735_p2 = scmp.ne.s32.totalorder %s2600_s29, %s1734_s12  ;;  %p1740_p8 = scmp.lt.s32.totalorder %s2466_s7, %s1734_s12 }
  0xea   :  { %p1741_p4 = por %p1740_p8, %p1739_p3 }
  0xec   :  { %p1742_p5 = pnand %p1741_p4, %p1735_p2 }
  0xee   :  { %1745 = shalt.err (!%p1742_p5)  }
  0xef   :  { %191 = dma.hbm_to_vmem [thread:$0]  %s178_s23, 16, %s2600_s29, [#allocation3 + $0x8] }
  0xf0   :  { %s2631_s13 = sld [smem:[#allocation5 + $0x102]]  ;;  %s2399_s27 = smov [#allocation2 + $0xa]  }
  0xf1   :  { %s228_s14 = sshll.u32 %s2399_s27, 4  ;;  %s2633_s15 = sld [smem:[#allocation5 + $0x103]]  ;;  %s2637_s14 = int_to_ptr.vmem [resolvable:$true] %s228_s14 }
  0xf2   :  { %p193_p6 = scmp.gt.s32.totalorder %s2614_s10, 0  ;;  %p1212_p7 = scmp.lt.s32.totalorder %s2614_s10, 2047 }
  0xf3   :  { %s2400_s18 = smov [#allocation2 + $0xb]   ;;  %s2642_s28 = sld [smem:[#allocation5 + $0x180]] }
  0xf4   :  { %s3171_s10 = smov (!%p193_p6, %s2614_s10), 0  ;;  %s2640_s19 = sshll.u32 %s2400_s18, 4  ;;  %s2672_s19 = int_to_ptr.vmem [resolvable:$true] %s2640_s19 }
  0xf5   :  { %s3173_s10 = smov (!%p1212_p7, %s3171_s10), 2047 }
  0xf6   :  { %p213_p12 = scmp.gt.s32.totalorder %s2631_s13, 0  ;;  %s1217_s29 = sshll.u32 %s3173_s10, 4 }
  0xf7   :  { %p233_p0 = scmp.gt.s32.totalorder %s2633_s15, 0  ;;  %s198_s6 = scalar_lea.hbm %s3137_s1, %s1217_s29 }
  0xf8   :  { %s1746_s8 = scalar_lea.hbm %s198_s6, 16  ;;  %p1749_p13 = scmp.lt.u32.totalorder %s198_s6, %s3137_s1 }
  0xf9   :  { %p1747_p10 = scmp.ne.s32.totalorder %s198_s6, %s1746_s8  ;;  %p1750_p9 = scmp.lt.u32.totalorder %s2457_s3, %s1746_s8 }
  0xfa   :  { %p1752_p3 = scmp.lt.u32.totalorder %s1746_s8, %s198_s6 }
  0xfb   :  { %p1751_p2 = por %p1750_p9, %p1749_p13 }
  0xfd   :  { %p1753_p8 = por %p1752_p3, %p1751_p2 }
  0xff   :  { %p1754_p4 = pnand %p1753_p8, %p1747_p10 }
 0x101   :  { %1757 = shalt.err (!%p1754_p4)  }
 0x102   :  { %s1758_s4 = scalar_lea.vmem %s2619_s11, 16  ;;  %p1763_p6 = scmp.lt.s32.totalorder %s2619_s11, %s2440_s16 }
 0x103   :  { %p1759_p5 = scmp.ne.s32.totalorder %s2619_s11, %s1758_s4  ;;  %p1764_p7 = scmp.lt.s32.totalorder %s2466_s7, %s1758_s4 }
 0x105   :  { %p1765_p1 = por %p1764_p7, %p1763_p6 }
 0x107   :  { %p1766_p11 = pnand %p1765_p1, %p1759_p5 }
 0x109   :  { %1769 = shalt.err (!%p1766_p11)  }
 0x10a   :  { %211 = dma.hbm_to_vmem [thread:$0]  %s198_s6, 16, %s2619_s11, [#allocation3 + $0x9] }
 0x10b   :  { %s214_s10 = scalar_select %p213_p12, %s2631_s13, 0 }
 0x10c   :  { %s234_s21 = scalar_select %p233_p0, %s2633_s15, 0 }
 0x10d   :  { %p3140_p10 = scmp.lt.s32.totalorder %s2631_s13, 2047  ;;  %p3141_p13 = scmp.lt.s32.totalorder %s2633_s15, 2047 }
 0x10f   :  { %s3175_s10 = smov (!%p3140_p10, %s214_s10), 2047  ;;  %s3177_s21 = smov (!%p3141_p13, %s234_s21), 2047 }
 0x110   :  { %s1224_s22 = sshll.u32 %s3175_s10, 4  ;;  %s1231_s24 = sshll.u32 %s3177_s21, 4 }
 0x111   :  { %s218_s23 = scalar_lea.hbm %s3137_s1, %s1224_s22 }
 0x112   :  { %s1770_s25 = scalar_lea.hbm %s218_s23, 16  ;;  %p1773_p12 = scmp.lt.u32.totalorder %s218_s23, %s3137_s1 }
 0x113   :  { %p1771_p11 = scmp.ne.s32.totalorder %s218_s23, %s1770_s25  ;;  %p1774_p1 = scmp.lt.u32.totalorder %s2457_s3, %s1770_s25 }
 0x114   :  { %p1776_p9 = scmp.lt.u32.totalorder %s1770_s25, %s218_s23 }
 0x115   :  { %p1775_p0 = por %p1774_p1, %p1773_p12 }
 0x117   :  { %p1777_p2 = por %p1776_p9, %p1775_p0 }
 0x119   :  { %p1778_p3 = pnand %p1777_p2, %p1771_p11 }
 0x11b   :  { %1781 = shalt.err (!%p1778_p3)  }
 0x11c   :  { %s1782_s12 = scalar_lea.vmem %s2637_s14, 16  ;;  %p1787_p4 = scmp.lt.s32.totalorder %s2637_s14, %s2440_s16 }
 0x11d   :  { %p1783_p8 = scmp.ne.s32.totalorder %s2637_s14, %s1782_s12  ;;  %p1788_p5 = scmp.lt.s32.totalorder %s2466_s7, %s1782_s12 }
 0x11f   :  { %p1789_p6 = por %p1788_p5, %p1787_p4 }
 0x121   :  { %p1790_p7 = pnand %p1789_p6, %p1783_p8 }
 0x123   :  { %1793 = shalt.err (!%p1790_p7)  }
 0x124   :  { %231 = dma.hbm_to_vmem [thread:$0]  %s218_s23, 16, %s2637_s14, [#allocation3 + $0xa] }
 0x125   :  { %s238_s15 = scalar_lea.hbm %s3137_s1, %s1231_s24  ;;  %p253_p10 = scmp.gt.s32.totalorder %s2642_s28, 0 }
 0x126   :  { %s1794_s18 = scalar_lea.hbm %s238_s15, 16  ;;  %p1797_p11 = scmp.lt.u32.totalorder %s238_s15, %s3137_s1 }
 0x127   :  { %p1795_p13 = scmp.ne.s32.totalorder %s238_s15, %s1794_s18  ;;  %p1798_p12 = scmp.lt.u32.totalorder %s2457_s3, %s1794_s18 }
 0x128   :  { %p1800_p0 = scmp.lt.u32.totalorder %s1794_s18, %s238_s15 }
 0x129   :  { %p1799_p1 = por %p1798_p12, %p1797_p11 }
 0x12b   :  { %p1801_p9 = por %p1800_p0, %p1799_p1 }
 0x12d   :  { %p1802_p2 = pnand %p1801_p9, %p1795_p13 }
 0x12f   :  { %1805 = shalt.err (!%p1802_p2)  }
 0x130   :  { %s1806_s14 = scalar_lea.vmem %s2672_s19, 16  ;;  %p1811_p8 = scmp.lt.s32.totalorder %s2672_s19, %s2440_s16 }
 0x131   :  { %p1807_p3 = scmp.ne.s32.totalorder %s2672_s19, %s1806_s14  ;;  %p1812_p4 = scmp.lt.s32.totalorder %s2466_s7, %s1806_s14 }
 0x133   :  { %p1813_p5 = por %p1812_p4, %p1811_p8 }
 0x135   :  { %p1814_p6 = pnand %p1813_p5, %p1807_p3 }
 0x137   :  { %1817 = shalt.err (!%p1814_p6)  }
 0x138   :  { %251 = dma.hbm_to_vmem [thread:$0]  %s238_s15, 16, %s2672_s19, [#allocation3 + $0xb] }
 0x139   :  { %s254_s5 = scalar_select %p253_p10, %s2642_s28, 0 }
 0x13a   :  { %p1233_p7 = scmp.lt.s32.totalorder %s2642_s28, 2047  ;;  %s2401_s6 = smov [#allocation2 + $0xc]  }
 0x13b   :  { %s268_s8 = sshll.u32 %s2401_s6, 4  ;;  %s2705_s9 = sld [smem:[#allocation5 + $0x181]]  ;;  %s269_s8 = int_to_ptr.vmem [resolvable:$true] %s268_s8 }
 0x13c   :  { %s3179_s5 = smov (!%p1233_p7, %s254_s5), 2047  ;;  %s2402_s4 = smov [#allocation2 + $0xd]  }
 0x13d   :  { %s1238_s20 = sshll.u32 %s3179_s5, 4  ;;  %s288_s10 = sshll.u32 %s2402_s4, 4  ;;  %s2710_s10 = int_to_ptr.vmem [resolvable:$true] %s288_s10 }
 0x13e   :  { %s258_s17 = scalar_lea.hbm %s3137_s1, %s1238_s20 }
 0x13f   :  { %s1818_s19 = scalar_lea.hbm %s258_s17, 16  ;;  %p1821_p10 = scmp.lt.u32.totalorder %s258_s17, %s3137_s1 }
 0x140   :  { %p1819_p13 = scmp.ne.s32.totalorder %s258_s17, %s1818_s19  ;;  %p1822_p11 = scmp.lt.u32.totalorder %s2457_s3, %s1818_s19 }
 0x141   :  { %p1824_p1 = scmp.lt.u32.totalorder %s1818_s19, %s258_s17 }
 0x142   :  { %p1823_p12 = por %p1822_p11, %p1821_p10 }
 0x144   :  { %p1825_p0 = por %p1824_p1, %p1823_p12 }
 0x146   :  { %p1826_p9 = pnand %p1825_p0, %p1819_p13 }
 0x148   :  { %1829 = shalt.err (!%p1826_p9)  }
 0x149   :  { %s1830_s28 = scalar_lea.vmem %s269_s8, 16  ;;  %p1835_p3 = scmp.lt.s32.totalorder %s269_s8, %s2440_s16 }
 0x14a   :  { %p1831_p2 = scmp.ne.s32.totalorder %s269_s8, %s1830_s28  ;;  %p1836_p8 = scmp.lt.s32.totalorder %s2466_s7, %s1830_s28 }
 0x14c   :  { %p1837_p4 = por %p1836_p8, %p1835_p3 }
 0x14e   :  { %p1838_p5 = pnand %p1837_p4, %p1831_p2 }
 0x150   :  { %1841 = shalt.err (!%p1838_p5)  }
 0x151   :  { %271 = dma.hbm_to_vmem [thread:$0]  %s258_s17, 16, %s269_s8, [#allocation3 + $0xc] }
 0x152   :  { %p273_p6 = scmp.gt.s32.totalorder %s2705_s9, 0  ;;  %p1240_p7 = scmp.lt.s32.totalorder %s2705_s9, 2047 }
 0x153   :  { %s2720_s24 = sld [smem:[#allocation5 + $0x182]]  ;;  %s2403_s25 = smov [#allocation2 + $0xe]  }
 0x154   :  { %s3181_s9 = smov (!%p273_p6, %s2705_s9), 0  ;;  %s308_s26 = sshll.u32 %s2403_s25, 4  ;;  %s2725_s26 = int_to_ptr.vmem [resolvable:$true] %s308_s26 }
 0x155   :  { %s2723_s11 = sld [smem:[#allocation5 + $0x183]]  ;;  %s3183_s9 = smov (!%p1240_p7, %s3181_s9), 2047 }
 0x156   :  { %s1245_s12 = sshll.u32 %s3183_s9, 4  ;;  %s2404_s13 = smov [#allocation2 + $0xf]  }
 0x157   :  { %s328_s27 = sshll.u32 %s2404_s13, 4  ;;  %s278_s29 = scalar_lea.hbm %s3137_s1, %s1245_s12  ;;  %s2747_s27 = int_to_ptr.vmem [resolvable:$true] %s328_s27 }
 0x158   :  { %s1842_s30 = scalar_lea.hbm %s278_s29, 16  ;;  %p1845_p11 = scmp.lt.u32.totalorder %s278_s29, %s3137_s1 }
 0x159   :  { %p293_p13 = scmp.gt.s32.totalorder %s2720_s24, 0  ;;  %p1843_p10 = scmp.ne.s32.totalorder %s278_s29, %s1842_s30 }
 0x15a   :  { %p1846_p12 = scmp.lt.u32.totalorder %s2457_s3, %s1842_s30  ;;  %p1848_p0 = scmp.lt.u32.totalorder %s1842_s30, %s278_s29 }
 0x15c   :  { %p1847_p1 = por %p1846_p12, %p1845_p11 }
 0x15e   :  { %p1849_p9 = por %p1848_p0, %p1847_p1 }
 0x160   :  { %p1850_p2 = pnand %p1849_p9, %p1843_p10 }
 0x162   :  { %1853 = shalt.err (!%p1850_p2)  }
 0x163   :  { %s1854_s6 = scalar_lea.vmem %s2710_s10, 16  ;;  %p1859_p8 = scmp.lt.s32.totalorder %s2710_s10, %s2440_s16 }
 0x164   :  { %p1855_p3 = scmp.ne.s32.totalorder %s2710_s10, %s1854_s6  ;;  %p1860_p4 = scmp.lt.s32.totalorder %s2466_s7, %s1854_s6 }
 0x166   :  { %p1861_p5 = por %p1860_p4, %p1859_p8 }
 0x168   :  { %p1862_p6 = pnand %p1861_p5, %p1855_p3 }
 0x16a   :  { %1865 = shalt.err (!%p1862_p6)  }
 0x16b   :  { %291 = dma.hbm_to_vmem [thread:$0]  %s278_s29, 16, %s2710_s10, [#allocation3 + $0xd] }
 0x16c   :  { %s294_s8 = scalar_select %p293_p13, %s2720_s24, 0 }
 0x16d   :  { %p1247_p7 = scmp.lt.s32.totalorder %s2720_s24, 2047  ;;  %p313_p10 = scmp.gt.s32.totalorder %s2723_s11, 0 }
 0x16e   :  { %p1254_p11 = scmp.lt.s32.totalorder %s2723_s11, 2047  ;;  %s2750_s4 = sld [smem:[#allocation5 + $0x200]] }
 0x16f   :  { %s3185_s8 = smov (!%p1247_p7, %s294_s8), 2047 }
 0x170   :  { %s314_s9 = scalar_select %p313_p10, %s2723_s11, 0 }
 0x171   :  { %s1252_s20 = sshll.u32 %s3185_s8, 4 }
 0x172   :  { %s298_s17 = scalar_lea.hbm %s3137_s1, %s1252_s20 }
 0x173   :  { %s1866_s19 = scalar_lea.hbm %s298_s17, 16  ;;  %p1869_p13 = scmp.lt.u32.totalorder %s298_s17, %s3137_s1 }
 0x174   :  { %p1867_p12 = scmp.ne.s32.totalorder %s298_s17, %s1866_s19  ;;  %p1870_p1 = scmp.lt.u32.totalorder %s2457_s3, %s1866_s19 }
 0x175   :  { %p1872_p9 = scmp.lt.u32.totalorder %s1866_s19, %s298_s17 }
 0x176   :  { %p1871_p0 = por %p1870_p1, %p1869_p13 }
 0x178   :  { %p1873_p2 = por %p1872_p9, %p1871_p0 }
 0x17a   :  { %p1874_p3 = pnand %p1873_p2, %p1867_p12 }
 0x17c   :  { %1877 = shalt.err (!%p1874_p3)  }
 0x17d   :  { %s1878_s23 = scalar_lea.vmem %s2725_s26, 16  ;;  %p1883_p4 = scmp.lt.s32.totalorder %s2725_s26, %s2440_s16 }
 0x17e   :  { %p1879_p8 = scmp.ne.s32.totalorder %s2725_s26, %s1878_s23  ;;  %p1884_p5 = scmp.lt.s32.totalorder %s2466_s7, %s1878_s23 }
 0x180   :  { %p1885_p6 = por %p1884_p5, %p1883_p4 }
 0x182   :  { %p1886_p7 = pnand %p1885_p6, %p1879_p8 }
 0x184   :  { %1889 = shalt.err (!%p1886_p7)  }
 0x185   :  { %311 = dma.hbm_to_vmem [thread:$0]  %s298_s17, 16, %s2725_s26, [#allocation3 + $0xe] }
 0x186   :  { %s3187_s9 = smov (!%p1254_p11, %s314_s9), 2047  ;;  %s2405_s28 = smov [#allocation2 + $0x10]  }
 0x187   :  { %s348_s24 = sshll.u32 %s2405_s28, 4  ;;  %s2767_s25 = sld [smem:[#allocation5 + $0x201]]  ;;  %s2769_s24 = int_to_ptr.vmem [resolvable:$true] %s348_s24 }
 0x188   :  { %s1259_s12 = sshll.u32 %s3187_s9, 4  ;;  %p333_p10 = scmp.gt.s32.totalorder %s2750_s4, 0 }
 0x189   :  { %s318_s18 = scalar_lea.hbm %s3137_s1, %s1259_s12 }
 0x18a   :  { %s1890_s29 = scalar_lea.hbm %s318_s18, 16  ;;  %p1893_p13 = scmp.lt.u32.totalorder %s318_s18, %s3137_s1 }
 0x18b   :  { %p1891_p12 = scmp.ne.s32.totalorder %s318_s18, %s1890_s29  ;;  %p1894_p1 = scmp.lt.u32.totalorder %s2457_s3, %s1890_s29 }
 0x18c   :  { %p1896_p0 = scmp.lt.u32.totalorder %s1890_s29, %s318_s18 }
 0x18d   :  { %p1895_p11 = por %p1894_p1, %p1893_p13 }
 0x18f   :  { %p1897_p9 = por %p1896_p0, %p1895_p11 }
 0x191   :  { %p1898_p2 = pnand %p1897_p9, %p1891_p12 }
 0x193   :  { %1901 = shalt.err (!%p1898_p2)  }
 0x194   :  { %s1902_s26 = scalar_lea.vmem %s2747_s27, 16  ;;  %p1907_p8 = scmp.lt.s32.totalorder %s2747_s27, %s2440_s16 }
 0x195   :  { %p1903_p3 = scmp.ne.s32.totalorder %s2747_s27, %s1902_s26  ;;  %p1908_p4 = scmp.lt.s32.totalorder %s2466_s7, %s1902_s26 }
 0x197   :  { %p1909_p5 = por %p1908_p4, %p1907_p8 }
 0x199   :  { %p1910_p6 = pnand %p1909_p5, %p1903_p3 }
 0x19b   :  { %1913 = shalt.err (!%p1910_p6)  }
 0x19c   :  { %331 = dma.hbm_to_vmem [thread:$0]  %s318_s18, 16, %s2747_s27, [#allocation3 + $0xf] }
 0x19d   :  { %s334_s11 = scalar_select %p333_p10, %s2750_s4, 0 }
 0x19e   :  { %p1261_p7 = scmp.lt.s32.totalorder %s2750_s4, 2047  ;;  %p353_p12 = scmp.gt.s32.totalorder %s2767_s25, 0 }
 0x19f   :  { %p1268_p13 = scmp.lt.s32.totalorder %s2767_s25, 2047  ;;  %s2406_s8 = smov [#allocation2 + $0x11]  }
 0x1a0   :  { %s3189_s11 = smov (!%p1261_p7, %s334_s11), 2047  ;;  %s368_s9 = sshll.u32 %s2406_s8, 4  ;;  %s2795_s9 = int_to_ptr.vmem [resolvable:$true] %s368_s9 }
 0x1a1   :  { %s354_s5 = scalar_select %p353_p12, %s2767_s25, 0 }
 0x1a2   :  { %s1266_s6 = sshll.u32 %s3189_s11, 4 }
 0x1a3   :  { %s338_s22 = scalar_lea.hbm %s3137_s1, %s1266_s6 }
 0x1a4   :  { %s1914_s17 = scalar_lea.hbm %s338_s22, 16  ;;  %p1917_p10 = scmp.lt.u32.totalorder %s338_s22, %s3137_s1 }
 0x1a5   :  { %p1915_p1 = scmp.ne.s32.totalorder %s338_s22, %s1914_s17  ;;  %p1918_p11 = scmp.lt.u32.totalorder %s2457_s3, %s1914_s17 }
 0x1a6   :  { %p1920_p9 = scmp.lt.u32.totalorder %s1914_s17, %s338_s22 }
 0x1a7   :  { %p1919_p0 = por %p1918_p11, %p1917_p10 }
 0x1a9   :  { %p1921_p2 = por %p1920_p9, %p1919_p0 }
 0x1ab   :  { %p1922_p3 = pnand %p1921_p2, %p1915_p1 }
 0x1ad   :  { %1925 = shalt.err (!%p1922_p3)  }
 0x1ae   :  { %s1926_s4 = scalar_lea.vmem %s2769_s24, 16  ;;  %p1931_p4 = scmp.lt.s32.totalorder %s2769_s24, %s2440_s16 }
 0x1af   :  { %p1927_p8 = scmp.ne.s32.totalorder %s2769_s24, %s1926_s4  ;;  %p1932_p5 = scmp.lt.s32.totalorder %s2466_s7, %s1926_s4 }
 0x1b1   :  { %p1933_p6 = por %p1932_p5, %p1931_p4 }
 0x1b3   :  { %p1934_p7 = pnand %p1933_p6, %p1927_p8 }
 0x1b5   :  { %1937 = shalt.err (!%p1934_p7)  }
 0x1b6   :  { %351 = dma.hbm_to_vmem [thread:$0]  %s338_s22, 16, %s2769_s24, [#allocation3 + $0x10] }
 0x1b7   :  { %s3191_s5 = smov (!%p1268_p13, %s354_s5), 2047  ;;  %s2809_s0 = sld [smem:[#allocation5 + $0x202]] }
 0x1b8   :  { %s1273_s10 = sshll.u32 %s3191_s5, 4  ;;  %s2407_s23 = smov [#allocation2 + $0x12]  }
 0x1b9   :  { %s388_s28 = sshll.u32 %s2407_s23, 4  ;;  %s358_s15 = scalar_lea.hbm %s3137_s1, %s1273_s10  ;;  %s2814_s28 = int_to_ptr.vmem [resolvable:$true] %s388_s28 }
 0x1ba   :  { %s1938_s18 = scalar_lea.hbm %s358_s15, 16  ;;  %p1941_p1 = scmp.lt.u32.totalorder %s358_s15, %s3137_s1 }
 0x1bb   :  { %p1939_p12 = scmp.ne.s32.totalorder %s358_s15, %s1938_s18  ;;  %p1942_p10 = scmp.lt.u32.totalorder %s2457_s3, %s1938_s18 }
 0x1bc   :  { %p1944_p13 = scmp.lt.u32.totalorder %s1938_s18, %s358_s15 }
 0x1bd   :  { %p1943_p11 = por %p1942_p10, %p1941_p1 }
 0x1bf   :  { %p1945_p0 = por %p1944_p13, %p1943_p11 }
 0x1c1   :  { %p1946_p9 = pnand %p1945_p0, %p1939_p12 }
 0x1c3   :  { %1949 = shalt.err (!%p1946_p9)  }
 0x1c4   :  { %s1950_s24 = scalar_lea.vmem %s2795_s9, 16  ;;  %p1955_p3 = scmp.lt.s32.totalorder %s2795_s9, %s2440_s16 }
 0x1c5   :  { %p1951_p2 = scmp.ne.s32.totalorder %s2795_s9, %s1950_s24  ;;  %p1956_p8 = scmp.lt.s32.totalorder %s2466_s7, %s1950_s24 }
 0x1c7   :  { %p1957_p4 = por %p1956_p8, %p1955_p3 }
 0x1c9   :  { %p1958_p5 = pnand %p1957_p4, %p1951_p2 }
 0x1cb   :  { %1961 = shalt.err (!%p1958_p5)  }
 0x1cc   :  { %371 = dma.hbm_to_vmem [thread:$0]  %s358_s15, 16, %s2795_s9, [#allocation3 + $0x11] }
 0x1cd   :  { %s2826_s25 = sld [smem:[#allocation5 + $0x203]]  ;;  %s2408_s14 = smov [#allocation2 + $0x13]  }
 0x1ce   :  { %s408_s26 = sshll.u32 %s2408_s14, 4  ;;  %s2828_s11 = sld [smem:[#allocation5 + $0x280]]  ;;  %s2832_s26 = int_to_ptr.vmem [resolvable:$true] %s408_s26 }
 0x1cf   :  { %p373_p6 = scmp.gt.s32.totalorder %s2809_s0, 0  ;;  %p1275_p7 = scmp.lt.s32.totalorder %s2809_s0, 2047 }
 0x1d0   :  { %s2409_s5 = smov [#allocation2 + $0x14]   ;;  %s2837_s8 = sld [smem:[#allocation5 + $0x281]] }
 0x1d1   :  { %s3193_s0 = smov (!%p373_p6, %s2809_s0), 0  ;;  %s2835_s6 = sshll.u32 %s2409_s5, 4  ;;  %s2867_s6 = int_to_ptr.vmem [resolvable:$true] %s2835_s6 }
 0x1d2   :  { %s3195_s0 = smov (!%p1275_p7, %s3193_s0), 2047 }
 0x1d3   :  { %p393_p12 = scmp.gt.s32.totalorder %s2826_s25, 0  ;;  %s1280_s9 = sshll.u32 %s3195_s0, 4 }
 0x1d4   :  { %p413_p10 = scmp.gt.s32.totalorder %s2828_s11, 0  ;;  %s378_s22 = scalar_lea.hbm %s3137_s1, %s1280_s9 }
 0x1d5   :  { %s1962_s17 = scalar_lea.hbm %s378_s22, 16  ;;  %p1965_p0 = scmp.lt.u32.totalorder %s378_s22, %s3137_s1 }
 0x1d6   :  { %p1963_p13 = scmp.ne.s32.totalorder %s378_s22, %s1962_s17  ;;  %p1966_p9 = scmp.lt.u32.totalorder %s2457_s3, %s1962_s17 }
 0x1d7   :  { %p1968_p3 = scmp.lt.u32.totalorder %s1962_s17, %s378_s22 }
 0x1d8   :  { %p1967_p2 = por %p1966_p9, %p1965_p0 }
 0x1da   :  { %p1969_p8 = por %p1968_p3, %p1967_p2 }
 0x1dc   :  { %p1970_p4 = pnand %p1969_p8, %p1963_p13 }
 0x1de   :  { %1973 = shalt.err (!%p1970_p4)  }
 0x1df   :  { %s1974_s4 = scalar_lea.vmem %s2814_s28, 16  ;;  %p1979_p6 = scmp.lt.s32.totalorder %s2814_s28, %s2440_s16 }
 0x1e0   :  { %p1975_p5 = scmp.ne.s32.totalorder %s2814_s28, %s1974_s4  ;;  %p1980_p7 = scmp.lt.s32.totalorder %s2466_s7, %s1974_s4 }
 0x1e2   :  { %p1981_p11 = por %p1980_p7, %p1979_p6 }
 0x1e4   :  { %p1982_p1 = pnand %p1981_p11, %p1975_p5 }
 0x1e6   :  { %1985 = shalt.err (!%p1982_p1)  }
 0x1e7   :  { %391 = dma.hbm_to_vmem [thread:$0]  %s378_s22, 16, %s2814_s28, [#allocation3 + $0x12] }
 0x1e8   :  { %s394_s0 = scalar_select %p393_p12, %s2826_s25, 0 }
 0x1e9   :  { %s414_s10 = scalar_select %p413_p10, %s2828_s11, 0 }
 0x1ea   :  { %p3142_p13 = scmp.lt.s32.totalorder %s2826_s25, 2047  ;;  %p3143_p0 = scmp.lt.s32.totalorder %s2828_s11, 2047 }
 0x1ec   :  { %s3197_s0 = smov (!%p3142_p13, %s394_s0), 2047  ;;  %s3199_s10 = smov (!%p3143_p0, %s414_s10), 2047 }
 0x1ed   :  { %s1287_s23 = sshll.u32 %s3197_s0, 4  ;;  %s1294_s18 = sshll.u32 %s3199_s10, 4 }
 0x1ee   :  { %s398_s15 = scalar_lea.hbm %s3137_s1, %s1287_s23 }
 0x1ef   :  { %s1986_s29 = scalar_lea.hbm %s398_s15, 16  ;;  %p1989_p12 = scmp.lt.u32.totalorder %s398_s15, %s3137_s1 }
 0x1f0   :  { %p1987_p1 = scmp.ne.s32.totalorder %s398_s15, %s1986_s29  ;;  %p1990_p11 = scmp.lt.u32.totalorder %s2457_s3, %s1986_s29 }
 0x1f1   :  { %p1992_p9 = scmp.lt.u32.totalorder %s1986_s29, %s398_s15 }
 0x1f2   :  { %p1991_p10 = por %p1990_p11, %p1989_p12 }
 0x1f4   :  { %p1993_p2 = por %p1992_p9, %p1991_p10 }
 0x1f6   :  { %p1994_p3 = pnand %p1993_p2, %p1987_p1 }
 0x1f8   :  { %1997 = shalt.err (!%p1994_p3)  }
 0x1f9   :  { %s1998_s24 = scalar_lea.vmem %s2832_s26, 16  ;;  %p2003_p4 = scmp.lt.s32.totalorder %s2832_s26, %s2440_s16 }
 0x1fa   :  { %p1999_p8 = scmp.ne.s32.totalorder %s2832_s26, %s1998_s24  ;;  %p2004_p5 = scmp.lt.s32.totalorder %s2466_s7, %s1998_s24 }
 0x1fc   :  { %p2005_p6 = por %p2004_p5, %p2003_p4 }
 0x1fe   :  { %p2006_p7 = pnand %p2005_p6, %p1999_p8 }
 0x200   :  { %2009 = shalt.err (!%p2006_p7)  }
 0x201   :  { %411 = dma.hbm_to_vmem [thread:$0]  %s398_s15, 16, %s2832_s26, [#allocation3 + $0x13] }
 0x202   :  { %s418_s11 = scalar_lea.hbm %s3137_s1, %s1294_s18  ;;  %p433_p13 = scmp.gt.s32.totalorder %s2837_s8, 0 }
 0x203   :  { %s2010_s5 = scalar_lea.hbm %s418_s11, 16  ;;  %p2013_p1 = scmp.lt.u32.totalorder %s418_s11, %s3137_s1 }
 0x204   :  { %p2011_p0 = scmp.ne.s32.totalorder %s418_s11, %s2010_s5  ;;  %p2014_p12 = scmp.lt.u32.totalorder %s2457_s3, %s2010_s5 }
 0x205   :  { %p2016_p10 = scmp.lt.u32.totalorder %s2010_s5, %s418_s11 }
 0x206   :  { %p2015_p11 = por %p2014_p12, %p2013_p1 }
 0x208   :  { %p2017_p9 = por %p2016_p10, %p2015_p11 }
 0x20a   :  { %p2018_p2 = pnand %p2017_p9, %p2011_p0 }
 0x20c   :  { %2021 = shalt.err (!%p2018_p2)  }
 0x20d   :  { %s2022_s26 = scalar_lea.vmem %s2867_s6, 16  ;;  %p2027_p8 = scmp.lt.s32.totalorder %s2867_s6, %s2440_s16 }
 0x20e   :  { %p2023_p3 = scmp.ne.s32.totalorder %s2867_s6, %s2022_s26  ;;  %p2028_p4 = scmp.lt.s32.totalorder %s2466_s7, %s2022_s26 }
 0x210   :  { %p2029_p5 = por %p2028_p4, %p2027_p8 }
 0x212   :  { %p2030_p6 = pnand %p2029_p5, %p2023_p3 }
 0x214   :  { %2033 = shalt.err (!%p2030_p6)  }
 0x215   :  { %431 = dma.hbm_to_vmem [thread:$0]  %s418_s11, 16, %s2867_s6, [#allocation3 + $0x14] }
 0x216   :  { %s434_s21 = scalar_select %p433_p13, %s2837_s8, 0 }
 0x217   :  { %p1296_p7 = scmp.lt.s32.totalorder %s2837_s8, 2047  ;;  %s2410_s22 = smov [#allocation2 + $0x15]  }
 0x218   :  { %s448_s17 = sshll.u32 %s2410_s22, 4  ;;  %s2900_s19 = sld [smem:[#allocation5 + $0x282]]  ;;  %s449_s17 = int_to_ptr.vmem [resolvable:$true] %s448_s17 }
 0x219   :  { %s3201_s21 = smov (!%p1296_p7, %s434_s21), 2047  ;;  %s2411_s4 = smov [#allocation2 + $0x16]  }
 0x21a   :  { %s1301_s27 = sshll.u32 %s3201_s21, 4  ;;  %s468_s0 = sshll.u32 %s2411_s4, 4  ;;  %s2905_s0 = int_to_ptr.vmem [resolvable:$true] %s468_s0 }
 0x21b   :  { %s438_s12 = scalar_lea.hbm %s3137_s1, %s1301_s27 }
 0x21c   :  { %s2034_s6 = scalar_lea.hbm %s438_s12, 16  ;;  %p2037_p13 = scmp.lt.u32.totalorder %s438_s12, %s3137_s1 }
 0x21d   :  { %p2035_p0 = scmp.ne.s32.totalorder %s438_s12, %s2034_s6  ;;  %p2038_p1 = scmp.lt.u32.totalorder %s2457_s3, %s2034_s6 }
 0x21e   :  { %p2040_p11 = scmp.lt.u32.totalorder %s2034_s6, %s438_s12 }
 0x21f   :  { %p2039_p12 = por %p2038_p1, %p2037_p13 }
 0x221   :  { %p2041_p10 = por %p2040_p11, %p2039_p12 }
 0x223   :  { %p2042_p9 = pnand %p2041_p10, %p2035_p0 }
 0x225   :  { %2045 = shalt.err (!%p2042_p9)  }
 0x226   :  { %s2046_s8 = scalar_lea.vmem %s449_s17, 16  ;;  %p2051_p3 = scmp.lt.s32.totalorder %s449_s17, %s2440_s16 }
 0x227   :  { %p2047_p2 = scmp.ne.s32.totalorder %s449_s17, %s2046_s8  ;;  %p2052_p8 = scmp.lt.s32.totalorder %s2466_s7, %s2046_s8 }
 0x229   :  { %p2053_p4 = por %p2052_p8, %p2051_p3 }
 0x22b   :  { %p2054_p5 = pnand %p2053_p4, %p2047_p2 }
 0x22d   :  { %2057 = shalt.err (!%p2054_p5)  }
 0x22e   :  { %451 = dma.hbm_to_vmem [thread:$0]  %s438_s12, 16, %s449_s17, [#allocation3 + $0x15] }
 0x22f   :  { %p453_p6 = scmp.gt.s32.totalorder %s2900_s19, 0  ;;  %p1303_p7 = scmp.lt.s32.totalorder %s2900_s19, 2047 }
 0x230   :  { %s2915_s18 = sld [smem:[#allocation5 + $0x283]]  ;;  %s2412_s29 = smov [#allocation2 + $0x17]  }
 0x231   :  { %s3203_s19 = smov (!%p453_p6, %s2900_s19), 0  ;;  %s488_s30 = sshll.u32 %s2412_s29, 4  ;;  %s2920_s30 = int_to_ptr.vmem [resolvable:$true] %s488_s30 }
 0x232   :  { %s2918_s28 = sld [smem:[#allocation5 + $0x300]]  ;;  %s3205_s19 = smov (!%p1303_p7, %s3203_s19), 2047 }
 0x233   :  { %s1308_s24 = sshll.u32 %s3205_s19, 4  ;;  %s2413_s25 = smov [#allocation2 + $0x18]  }
 0x234   :  { %s508_s14 = sshll.u32 %s2413_s25, 4  ;;  %s458_s9 = scalar_lea.hbm %s3137_s1, %s1308_s24  ;;  %s2942_s14 = int_to_ptr.vmem [resolvable:$true] %s508_s14 }
 0x235   :  { %s2058_s20 = scalar_lea.hbm %s458_s9, 16  ;;  %p2061_p1 = scmp.lt.u32.totalorder %s458_s9, %s3137_s1 }
 0x236   :  { %p473_p0 = scmp.gt.s32.totalorder %s2915_s18, 0  ;;  %p2059_p13 = scmp.ne.s32.totalorder %s458_s9, %s2058_s20 }
 0x237   :  { %p2062_p12 = scmp.lt.u32.totalorder %s2457_s3, %s2058_s20  ;;  %p2064_p10 = scmp.lt.u32.totalorder %s2058_s20, %s458_s9 }
 0x239   :  { %p2063_p11 = por %p2062_p12, %p2061_p1 }
 0x23b   :  { %p2065_p9 = por %p2064_p10, %p2063_p11 }
 0x23d   :  { %p2066_p2 = pnand %p2065_p9, %p2059_p13 }
 0x23f   :  { %2069 = shalt.err (!%p2066_p2)  }
 0x240   :  { %s2070_s22 = scalar_lea.vmem %s2905_s0, 16  ;;  %p2075_p8 = scmp.lt.s32.totalorder %s2905_s0, %s2440_s16 }
 0x241   :  { %p2071_p3 = scmp.ne.s32.totalorder %s2905_s0, %s2070_s22  ;;  %p2076_p4 = scmp.lt.s32.totalorder %s2466_s7, %s2070_s22 }
 0x243   :  { %p2077_p5 = por %p2076_p4, %p2075_p8 }
 0x245   :  { %p2078_p6 = pnand %p2077_p5, %p2071_p3 }
 0x247   :  { %2081 = shalt.err (!%p2078_p6)  }
 0x248   :  { %471 = dma.hbm_to_vmem [thread:$0]  %s458_s9, 16, %s2905_s0, [#allocation3 + $0x16] }
 0x249   :  { %s474_s17 = scalar_select %p473_p0, %s2915_s18, 0 }
 0x24a   :  { %p1310_p7 = scmp.lt.s32.totalorder %s2915_s18, 2047  ;;  %p493_p13 = scmp.gt.s32.totalorder %s2918_s28, 0 }
 0x24b   :  { %p1317_p1 = scmp.lt.s32.totalorder %s2918_s28, 2047  ;;  %s2945_s4 = sld [smem:[#allocation5 + $0x301]] }
 0x24c   :  { %s3207_s17 = smov (!%p1310_p7, %s474_s17), 2047 }
 0x24d   :  { %s494_s19 = scalar_select %p493_p13, %s2918_s28, 0 }
 0x24e   :  { %s1315_s27 = sshll.u32 %s3207_s17, 4 }
 0x24f   :  { %s478_s12 = scalar_lea.hbm %s3137_s1, %s1315_s27 }
 0x250   :  { %s2082_s6 = scalar_lea.hbm %s478_s12, 16  ;;  %p2085_p0 = scmp.lt.u32.totalorder %s478_s12, %s3137_s1 }
 0x251   :  { %p2083_p12 = scmp.ne.s32.totalorder %s478_s12, %s2082_s6  ;;  %p2086_p11 = scmp.lt.u32.totalorder %s2457_s3, %s2082_s6 }
 0x252   :  { %p2088_p9 = scmp.lt.u32.totalorder %s2082_s6, %s478_s12 }
 0x253   :  { %p2087_p10 = por %p2086_p11, %p2085_p0 }
 0x255   :  { %p2089_p2 = por %p2088_p9, %p2087_p10 }
 0x257   :  { %p2090_p3 = pnand %p2089_p2, %p2083_p12 }
 0x259   :  { %2093 = shalt.err (!%p2090_p3)  }
 0x25a   :  { %s2094_s15 = scalar_lea.vmem %s2920_s30, 16  ;;  %p2099_p4 = scmp.lt.s32.totalorder %s2920_s30, %s2440_s16 }
 0x25b   :  { %p2095_p8 = scmp.ne.s32.totalorder %s2920_s30, %s2094_s15  ;;  %p2100_p5 = scmp.lt.s32.totalorder %s2466_s7, %s2094_s15 }
 0x25d   :  { %p2101_p6 = por %p2100_p5, %p2099_p4 }
 0x25f   :  { %p2102_p7 = pnand %p2101_p6, %p2095_p8 }
 0x261   :  { %2105 = shalt.err (!%p2102_p7)  }
 0x262   :  { %491 = dma.hbm_to_vmem [thread:$0]  %s478_s12, 16, %s2920_s30, [#allocation3 + $0x17] }
 0x263   :  { %s3209_s19 = smov (!%p1317_p1, %s494_s19), 2047  ;;  %s2414_s8 = smov [#allocation2 + $0x19]  }
 0x264   :  { %s528_s18 = sshll.u32 %s2414_s8, 4  ;;  %s2962_s29 = sld [smem:[#allocation5 + $0x302]]  ;;  %s2964_s18 = int_to_ptr.vmem [resolvable:$true] %s528_s18 }
 0x265   :  { %s1322_s24 = sshll.u32 %s3209_s19, 4  ;;  %p513_p13 = scmp.gt.s32.totalorder %s2945_s4, 0 }
 0x266   :  { %s498_s5 = scalar_lea.hbm %s3137_s1, %s1322_s24 }
 0x267   :  { %s2106_s9 = scalar_lea.hbm %s498_s5, 16  ;;  %p2109_p0 = scmp.lt.u32.totalorder %s498_s5, %s3137_s1 }
 0x268   :  { %p2107_p12 = scmp.ne.s32.totalorder %s498_s5, %s2106_s9  ;;  %p2110_p11 = scmp.lt.u32.totalorder %s2457_s3, %s2106_s9 }
 0x269   :  { %p2112_p10 = scmp.lt.u32.totalorder %s2106_s9, %s498_s5 }
 0x26a   :  { %p2111_p1 = por %p2110_p11, %p2109_p0 }
 0x26c   :  { %p2113_p9 = por %p2112_p10, %p2111_p1 }
 0x26e   :  { %p2114_p2 = pnand %p2113_p9, %p2107_p12 }
 0x270   :  { %2117 = shalt.err (!%p2114_p2)  }
 0x271   :  { %s2118_s30 = scalar_lea.vmem %s2942_s14, 16  ;;  %p2123_p8 = scmp.lt.s32.totalorder %s2942_s14, %s2440_s16 }
 0x272   :  { %p2119_p3 = scmp.ne.s32.totalorder %s2942_s14, %s2118_s30  ;;  %p2124_p4 = scmp.lt.s32.totalorder %s2466_s7, %s2118_s30 }
 0x274   :  { %p2125_p5 = por %p2124_p4, %p2123_p8 }
 0x276   :  { %p2126_p6 = pnand %p2125_p5, %p2119_p3 }
 0x278   :  { %2129 = shalt.err (!%p2126_p6)  }
 0x279   :  { %511 = dma.hbm_to_vmem [thread:$0]  %s498_s5, 16, %s2942_s14, [#allocation3 + $0x18] }
 0x27a   :  { %s514_s28 = scalar_select %p513_p13, %s2945_s4, 0 }
 0x27b   :  { %p1324_p7 = scmp.lt.s32.totalorder %s2945_s4, 2047  ;;  %p533_p12 = scmp.gt.s32.totalorder %s2962_s29, 0 }
 0x27c   :  { %p1331_p0 = scmp.lt.s32.totalorder %s2962_s29, 2047  ;;  %s2415_s17 = smov [#allocation2 + $0x1a]  }
 0x27d   :  { %s3211_s28 = smov (!%p1324_p7, %s514_s28), 2047  ;;  %s548_s19 = sshll.u32 %s2415_s17, 4  ;;  %s2990_s19 = int_to_ptr.vmem [resolvable:$true] %s548_s19 }
 0x27e   :  { %s534_s21 = scalar_select %p533_p12, %s2962_s29, 0 }
 0x27f   :  { %s1329_s22 = sshll.u32 %s3211_s28, 4 }
 0x280   :  { %s518_s23 = scalar_lea.hbm %s3137_s1, %s1329_s22 }
 0x281   :  { %s2130_s12 = scalar_lea.hbm %s518_s23, 16  ;;  %p2133_p13 = scmp.lt.u32.totalorder %s518_s23, %s3137_s1 }
 0x282   :  { %p2131_p11 = scmp.ne.s32.totalorder %s518_s23, %s2130_s12  ;;  %p2134_p1 = scmp.lt.u32.totalorder %s2457_s3, %s2130_s12 }
 0x283   :  { %p2136_p9 = scmp.lt.u32.totalorder %s2130_s12, %s518_s23 }
 0x284   :  { %p2135_p10 = por %p2134_p1, %p2133_p13 }
 0x286   :  { %p2137_p2 = por %p2136_p9, %p2135_p10 }
 0x288   :  { %p2138_p3 = pnand %p2137_p2, %p2131_p11 }
 0x28a   :  { %2141 = shalt.err (!%p2138_p3)  }
 0x28b   :  { %s2142_s4 = scalar_lea.vmem %s2964_s18, 16  ;;  %p2147_p4 = scmp.lt.s32.totalorder %s2964_s18, %s2440_s16 }
 0x28c   :  { %p2143_p8 = scmp.ne.s32.totalorder %s2964_s18, %s2142_s4  ;;  %p2148_p5 = scmp.lt.s32.totalorder %s2466_s7, %s2142_s4 }
 0x28e   :  { %p2149_p6 = por %p2148_p5, %p2147_p4 }
 0x290   :  { %p2150_p7 = pnand %p2149_p6, %p2143_p8 }
 0x292   :  { %2153 = shalt.err (!%p2150_p7)  }
 0x293   :  { %531 = dma.hbm_to_vmem [thread:$0]  %s518_s23, 16, %s2964_s18, [#allocation3 + $0x19] }
 0x294   :  { %s3213_s21 = smov (!%p1331_p0, %s534_s21), 2047  ;;  %s3004_s13 = sld [smem:[#allocation5 + $0x303]] }
 0x295   :  { %s1336_s0 = sshll.u32 %s3213_s21, 4  ;;  %s2416_s15 = smov [#allocation2 + $0x1b]  }
 0x296   :  { %s568_s8 = sshll.u32 %s2416_s15, 4  ;;  %s538_s11 = scalar_lea.hbm %s3137_s1, %s1336_s0  ;;  %s3009_s8 = int_to_ptr.vmem [resolvable:$true] %s568_s8 }
 0x297   :  { %s2154_s5 = scalar_lea.hbm %s538_s11, 16  ;;  %p2157_p11 = scmp.lt.u32.totalorder %s538_s11, %s3137_s1 }
 0x298   :  { %p2155_p12 = scmp.ne.s32.totalorder %s538_s11, %s2154_s5  ;;  %p2158_p13 = scmp.lt.u32.totalorder %s2457_s3, %s2154_s5 }
 0x299   :  { %p2160_p0 = scmp.lt.u32.totalorder %s2154_s5, %s538_s11 }
 0x29a   :  { %p2159_p1 = por %p2158_p13, %p2157_p11 }
 0x29c   :  { %p2161_p10 = por %p2160_p0, %p2159_p1 }
 0x29e   :  { %p2162_p9 = pnand %p2161_p10, %p2155_p12 }
 0x2a0   :  { %2165 = shalt.err (!%p2162_p9)  }
 0x2a1   :  { %s2166_s18 = scalar_lea.vmem %s2990_s19, 16  ;;  %p2171_p3 = scmp.lt.s32.totalorder %s2990_s19, %s2440_s16 }
 0x2a2   :  { %p2167_p2 = scmp.ne.s32.totalorder %s2990_s19, %s2166_s18  ;;  %p2172_p8 = scmp.lt.s32.totalorder %s2466_s7, %s2166_s18 }
 0x2a4   :  { %p2173_p4 = por %p2172_p8, %p2171_p3 }
 0x2a6   :  { %p2174_p5 = pnand %p2173_p4, %p2167_p2 }
 0x2a8   :  { %2177 = shalt.err (!%p2174_p5)  }
 0x2a9   :  { %551 = dma.hbm_to_vmem [thread:$0]  %s538_s11, 16, %s2990_s19, [#allocation3 + $0x1a] }
 0x2aa   :  { %s3021_s29 = sld [smem:[#allocation5 + $0x380]]  ;;  %s2417_s26 = smov [#allocation2 + $0x1c]  }
 0x2ab   :  { %s588_s30 = sshll.u32 %s2417_s26, 4  ;;  %s3023_s28 = sld [smem:[#allocation5 + $0x381]]  ;;  %s3027_s30 = int_to_ptr.vmem [resolvable:$true] %s588_s30 }
 0x2ac   :  { %p553_p6 = scmp.gt.s32.totalorder %s3004_s13, 0  ;;  %p1338_p7 = scmp.lt.s32.totalorder %s3004_s13, 2047 }
 0x2ad   :  { %s2418_s21 = smov [#allocation2 + $0x1d]   ;;  %s3032_s17 = sld [smem:[#allocation5 + $0x382]] }
 0x2ae   :  { %s3215_s13 = smov (!%p553_p6, %s3004_s13), 0  ;;  %s3030_s22 = sshll.u32 %s2418_s21, 4  ;;  %s3062_s22 = int_to_ptr.vmem [resolvable:$true] %s3030_s22 }
 0x2af   :  { %s3217_s13 = smov (!%p1338_p7, %s3215_s13), 2047 }
 0x2b0   :  { %p573_p12 = scmp.gt.s32.totalorder %s3021_s29, 0  ;;  %s1343_s19 = sshll.u32 %s3217_s13, 4 }
 0x2b1   :  { %p593_p13 = scmp.gt.s32.totalorder %s3023_s28, 0  ;;  %s558_s23 = scalar_lea.hbm %s3137_s1, %s1343_s19 }
 0x2b2   :  { %s2178_s12 = scalar_lea.hbm %s558_s23, 16  ;;  %p2181_p10 = scmp.lt.u32.totalorder %s558_s23, %s3137_s1 }
 0x2b3   :  { %p2179_p0 = scmp.ne.s32.totalorder %s558_s23, %s2178_s12  ;;  %p2182_p9 = scmp.lt.u32.totalorder %s2457_s3, %s2178_s12 }
 0x2b4   :  { %p2184_p3 = scmp.lt.u32.totalorder %s2178_s12, %s558_s23 }
 0x2b5   :  { %p2183_p2 = por %p2182_p9, %p2181_p10 }
 0x2b7   :  { %p2185_p8 = por %p2184_p3, %p2183_p2 }
 0x2b9   :  { %p2186_p4 = pnand %p2185_p8, %p2179_p0 }
 0x2bb   :  { %2189 = shalt.err (!%p2186_p4)  }
 0x2bc   :  { %s2190_s4 = scalar_lea.vmem %s3009_s8, 16  ;;  %p2195_p6 = scmp.lt.s32.totalorder %s3009_s8, %s2440_s16 }
 0x2bd   :  { %p2191_p5 = scmp.ne.s32.totalorder %s3009_s8, %s2190_s4  ;;  %p2196_p7 = scmp.lt.s32.totalorder %s2466_s7, %s2190_s4 }
 0x2bf   :  { %p2197_p1 = por %p2196_p7, %p2195_p6 }
 0x2c1   :  { %p2198_p11 = pnand %p2197_p1, %p2191_p5 }
 0x2c3   :  { %2201 = shalt.err (!%p2198_p11)  }
 0x2c4   :  { %571 = dma.hbm_to_vmem [thread:$0]  %s558_s23, 16, %s3009_s8, [#allocation3 + $0x1b] }
 0x2c5   :  { %s574_s13 = scalar_select %p573_p12, %s3021_s29, 0 }
 0x2c6   :  { %s594_s0 = scalar_select %p593_p13, %s3023_s28, 0 }
 0x2c7   :  { %p3144_p0 = scmp.lt.s32.totalorder %s3021_s29, 2047  ;;  %p3145_p10 = scmp.lt.s32.totalorder %s3023_s28, 2047 }
 0x2c9   :  { %s3219_s13 = smov (!%p3144_p0, %s574_s13), 2047  ;;  %s3221_s0 = smov (!%p3145_p10, %s594_s0), 2047 }
 0x2ca   :  { %s1350_s15 = sshll.u32 %s3219_s13, 4  ;;  %s1357_s5 = sshll.u32 %s3221_s0, 4 }
 0x2cb   :  { %s578_s11 = scalar_lea.hbm %s3137_s1, %s1350_s15 }
 0x2cc   :  { %s2202_s9 = scalar_lea.hbm %s578_s11, 16  ;;  %p2205_p12 = scmp.lt.u32.totalorder %s578_s11, %s3137_s1 }
 0x2cd   :  { %p2203_p11 = scmp.ne.s32.totalorder %s578_s11, %s2202_s9  ;;  %p2206_p1 = scmp.lt.u32.totalorder %s2457_s3, %s2202_s9 }
 0x2ce   :  { %p2208_p9 = scmp.lt.u32.totalorder %s2202_s9, %s578_s11 }
 0x2cf   :  { %p2207_p13 = por %p2206_p1, %p2205_p12 }
 0x2d1   :  { %p2209_p2 = por %p2208_p9, %p2207_p13 }
 0x2d3   :  { %p2210_p3 = pnand %p2209_p2, %p2203_p11 }
 0x2d5   :  { %2213 = shalt.err (!%p2210_p3)  }
 0x2d6   :  { %s2214_s18 = scalar_lea.vmem %s3027_s30, 16  ;;  %p2219_p4 = scmp.lt.s32.totalorder %s3027_s30, %s2440_s16 }
 0x2d7   :  { %p2215_p8 = scmp.ne.s32.totalorder %s3027_s30, %s2214_s18  ;;  %p2220_p5 = scmp.lt.s32.totalorder %s2466_s7, %s2214_s18 }
 0x2d9   :  { %p2221_p6 = por %p2220_p5, %p2219_p4 }
 0x2db   :  { %p2222_p7 = pnand %p2221_p6, %p2215_p8 }
 0x2dd   :  { %2225 = shalt.err (!%p2222_p7)  }
 0x2de   :  { %591 = dma.hbm_to_vmem [thread:$0]  %s578_s11, 16, %s3027_s30, [#allocation3 + $0x1c] }
 0x2df   :  { %s598_s28 = scalar_lea.hbm %s3137_s1, %s1357_s5  ;;  %p613_p0 = scmp.gt.s32.totalorder %s3032_s17, 0 }
 0x2e0   :  { %s2226_s21 = scalar_lea.hbm %s598_s28, 16  ;;  %p2229_p11 = scmp.lt.u32.totalorder %s598_s28, %s3137_s1 }
 0x2e1   :  { %p2227_p10 = scmp.ne.s32.totalorder %s598_s28, %s2226_s21  ;;  %p2230_p12 = scmp.lt.u32.totalorder %s2457_s3, %s2226_s21 }
 0x2e2   :  { %p2232_p13 = scmp.lt.u32.totalorder %s2226_s21, %s598_s28 }
 0x2e3   :  { %p2231_p1 = por %p2230_p12, %p2229_p11 }
 0x2e5   :  { %p2233_p9 = por %p2232_p13, %p2231_p1 }
 0x2e7   :  { %p2234_p2 = pnand %p2233_p9, %p2227_p10 }
 0x2e9   :  { %2237 = shalt.err (!%p2234_p2)  }
 0x2ea   :  { %s2238_s30 = scalar_lea.vmem %s3062_s22, 16  ;;  %p2243_p8 = scmp.lt.s32.totalorder %s3062_s22, %s2440_s16 }
 0x2eb   :  { %p2239_p3 = scmp.ne.s32.totalorder %s3062_s22, %s2238_s30  ;;  %p2244_p4 = scmp.lt.s32.totalorder %s2466_s7, %s2238_s30 }
 0x2ed   :  { %p2245_p5 = por %p2244_p4, %p2243_p8 }
 0x2ef   :  { %p2246_p6 = pnand %p2245_p5, %p2239_p3 }
 0x2f1   :  { %2249 = shalt.err (!%p2246_p6)  }
 0x2f2   :  { %611 = dma.hbm_to_vmem [thread:$0]  %s598_s28, 16, %s3062_s22, [#allocation3 + $0x1d] }
 0x2f3   :  { %s614_s10 = scalar_select %p613_p0, %s3032_s17, 0 }
 0x2f4   :  { %p1359_p7 = scmp.lt.s32.totalorder %s3032_s17, 2047  ;;  %s2419_s23 = smov [#allocation2 + $0x1e]  }
 0x2f5   :  { %s628_s12 = sshll.u32 %s2419_s23, 4  ;;  %s1365_s6 = sld [smem:[#allocation5 + $0x383]]  ;;  %s629_s12 = int_to_ptr.vmem [resolvable:$true] %s628_s12 }
 0x2f6   :  { %s3223_s10 = smov (!%p1359_p7, %s614_s10), 2047 }
 0x2f7   :  { %s1364_s14 = sshll.u32 %s3223_s10, 4 }
 0x2f8   :  { %s618_s0 = scalar_lea.hbm %s3137_s1, %s1364_s14 }
 0x2f9   :  { %s2250_s15 = scalar_lea.hbm %s618_s0, 16  ;;  %p2253_p11 = scmp.lt.u32.totalorder %s618_s0, %s3137_s1 }
 0x2fa   :  { %p2251_p10 = scmp.ne.s32.totalorder %s618_s0, %s2250_s15  ;;  %p2254_p12 = scmp.lt.u32.totalorder %s2457_s3, %s2250_s15 }
 0x2fb   :  { %p2256_p0 = scmp.lt.u32.totalorder %s2250_s15, %s618_s0 }
 0x2fc   :  { %p2255_p1 = por %p2254_p12, %p2253_p11 }
 0x2fe   :  { %p2257_p13 = por %p2256_p0, %p2255_p1 }
 0x300   :  { %p2258_p9 = pnand %p2257_p13, %p2251_p10 }
 0x302   :  { %2261 = shalt.err (!%p2258_p9)  }
 0x303   :  { %s2262_s22 = scalar_lea.vmem %s629_s12, 16  ;;  %p2267_p3 = scmp.lt.s32.totalorder %s629_s12, %s2440_s16 }
 0x304   :  { %p2263_p2 = scmp.ne.s32.totalorder %s629_s12, %s2262_s22  ;;  %p2268_p8 = scmp.lt.s32.totalorder %s2466_s7, %s2262_s22 }
 0x306   :  { %p2269_p4 = por %p2268_p8, %p2267_p3 }
 0x308   :  { %p2270_p5 = pnand %p2269_p4, %p2263_p2 }
 0x30a   :  { %2273 = shalt.err (!%p2270_p5)  }
 0x30b   :  { %631 = dma.hbm_to_vmem [thread:$0]  %s618_s0, 16, %s629_s12, [#allocation3 + $0x1e] }
 0x30c   :  { %p633_p6 = scmp.gt.s32.totalorder %s1365_s6, 0  ;;  %p1366_p7 = scmp.lt.s32.totalorder %s1365_s6, 2047 }
 0x30d   :  { %s2420_s17 = smov [#allocation2 + $0x1f]  }
 0x30e   :  { %s648_s11 = sshll.u32 %s2420_s17, 4  ;;  %s3225_s6 = smov (!%p633_p6, %s1365_s6), 0  ;;  %s649_s11 = int_to_ptr.vmem [resolvable:$true] %s648_s11 }
 0x30f   :  { %s3227_s6 = smov (!%p1366_p7, %s3225_s6), 2047 }
 0x310   :  { %s1371_s5 = sshll.u32 %s3227_s6, 4 }
 0x311   :  { %s638_s8 = scalar_lea.hbm %s3137_s1, %s1371_s5 }
 0x312   :  { %s2274_s18 = scalar_lea.hbm %s638_s8, 16  ;;  %p2277_p11 = scmp.lt.u32.totalorder %s638_s8, %s3137_s1 }
 0x313   :  { %p2275_p10 = scmp.ne.s32.totalorder %s638_s8, %s2274_s18  ;;  %p2278_p12 = scmp.lt.u32.totalorder %s2457_s3, %s2274_s18 }
 0x314   :  { %p2280_p0 = scmp.lt.u32.totalorder %s2274_s18, %s638_s8 }
 0x315   :  { %p2279_p1 = por %p2278_p12, %p2277_p11 }
 0x317   :  { %p2281_p13 = por %p2280_p0, %p2279_p1 }
 0x319   :  { %p2282_p9 = pnand %p2281_p13, %p2275_p10 }
 0x31b   :  { %2285 = shalt.err (!%p2282_p9)  }
 0x31c   :  { %s2286_s28 = scalar_lea.vmem %s649_s11, 16  ;;  %p2291_p3 = scmp.lt.s32.totalorder %s649_s11, %s2440_s16 }
 0x31d   :  { %p2287_p2 = scmp.ne.s32.totalorder %s649_s11, %s2286_s28  ;;  %p2292_p8 = scmp.lt.s32.totalorder %s2466_s7, %s2286_s28 }
 0x31f   :  { %p2293_p4 = por %p2292_p8, %p2291_p3 }
 0x321   :  { %p2294_p5 = pnand %p2293_p4, %p2287_p2 }
 0x323   :  { %2297 = shalt.err (!%p2294_p5)  }
 0x324   :  { %651 = dma.hbm_to_vmem [thread:$0]  %s638_s8, 16, %s649_s11, [#allocation3 + $0x1f] }
 0x325   :  { %2322 = dma.done.wait [#allocation3], 16 }
 0x326   :  { %2323 = vsyncadd [#allocation3], 4294967280 }
 0x327   :  { %2324 = dma.done.wait [#allocation3 + $0x1], 16 }
 0x328   :  { %2325 = vsyncadd [#allocation3 + $0x1], 4294967280 }
 0x329   :  { %2326 = dma.done.wait [#allocation3 + $0x2], 16 }
 0x32a   :  { %2327 = vsyncadd [#allocation3 + $0x2], 4294967280 }
 0x32b   :  { %2328 = dma.done.wait [#allocation3 + $0x3], 16 }
 0x32c   :  { %2329 = vsyncadd [#allocation3 + $0x3], 4294967280 }
 0x32d   :  { %2330 = dma.done.wait [#allocation3 + $0x4], 16 }
 0x32e   :  { %2331 = vsyncadd [#allocation3 + $0x4], 4294967280 }
 0x32f   :  { %2332 = dma.done.wait [#allocation3 + $0x5], 16 }
 0x330   :  { %2333 = vsyncadd [#allocation3 + $0x5], 4294967280 }
 0x331   :  { %2334 = dma.done.wait [#allocation3 + $0x6], 16 }
 0x332   :  { %2335 = vsyncadd [#allocation3 + $0x6], 4294967280 }
 0x333   :  { %2336 = dma.done.wait [#allocation3 + $0x7], 16 }
 0x334   :  { %2337 = vsyncadd [#allocation3 + $0x7], 4294967280 }
 0x335   :  { %2338 = dma.done.wait [#allocation3 + $0x8], 16 }
 0x336   :  { %2339 = vsyncadd [#allocation3 + $0x8], 4294967280 }
 0x337   :  { %2340 = dma.done.wait [#allocation3 + $0x9], 16 }
 0x338   :  { %2341 = vsyncadd [#allocation3 + $0x9], 4294967280 }
 0x339   :  { %2342 = dma.done.wait [#allocation3 + $0xa], 16 }
 0x33a   :  { %2343 = vsyncadd [#allocation3 + $0xa], 4294967280 }
 0x33b   :  { %2344 = dma.done.wait [#allocation3 + $0xb], 16 }
 0x33c   :  { %2345 = vsyncadd [#allocation3 + $0xb], 4294967280 }
 0x33d   :  { %2346 = dma.done.wait [#allocation3 + $0xc], 16 }
 0x33e   :  { %2347 = vsyncadd [#allocation3 + $0xc], 4294967280 }
 0x33f   :  { %2348 = dma.done.wait [#allocation3 + $0xd], 16 }
 0x340   :  { %2349 = vsyncadd [#allocation3 + $0xd], 4294967280 }
 0x341   :  { %2350 = dma.done.wait [#allocation3 + $0xe], 16 }
 0x342   :  { %2351 = vsyncadd [#allocation3 + $0xe], 4294967280 }
 0x343   :  { %2352 = dma.done.wait [#allocation3 + $0xf], 16 }
 0x344   :  { %2353 = vsyncadd [#allocation3 + $0xf], 4294967280 }
 0x345   :  { %2354 = dma.done.wait [#allocation3 + $0x10], 16 }
 0x346   :  { %2355 = vsyncadd [#allocation3 + $0x10], 4294967280 }
 0x347   :  { %2356 = dma.done.wait [#allocation3 + $0x11], 16 }
 0x348   :  { %2357 = vsyncadd [#allocation3 + $0x11], 4294967280 }
 0x349   :  { %2358 = dma.done.wait [#allocation3 + $0x12], 16 }
 0x34a   :  { %2359 = vsyncadd [#allocation3 + $0x12], 4294967280 }
 0x34b   :  { %2360 = dma.done.wait [#allocation3 + $0x13], 16 }
 0x34c   :  { %2361 = vsyncadd [#allocation3 + $0x13], 4294967280 }
 0x34d   :  { %2362 = dma.done.wait [#allocation3 + $0x14], 16 }
 0x34e   :  { %2363 = vsyncadd [#allocation3 + $0x14], 4294967280 }
 0x34f   :  { %2364 = dma.done.wait [#allocation3 + $0x15], 16 }
 0x350   :  { %2365 = vsyncadd [#allocation3 + $0x15], 4294967280 }
 0x351   :  { %2366 = dma.done.wait [#allocation3 + $0x16], 16 }
 0x352   :  { %2367 = vsyncadd [#allocation3 + $0x16], 4294967280 }
 0x353   :  { %2368 = dma.done.wait [#allocation3 + $0x17], 16 }
 0x354   :  { %2369 = vsyncadd [#allocation3 + $0x17], 4294967280 }
 0x355   :  { %2370 = dma.done.wait [#allocation3 + $0x18], 16 }
 0x356   :  { %2371 = vsyncadd [#allocation3 + $0x18], 4294967280 }
 0x357   :  { %2372 = dma.done.wait [#allocation3 + $0x19], 16 }
 0x358   :  { %2373 = vsyncadd [#allocation3 + $0x19], 4294967280 }
 0x359   :  { %2374 = dma.done.wait [#allocation3 + $0x1a], 16 }
 0x35a   :  { %2375 = vsyncadd [#allocation3 + $0x1a], 4294967280 }
 0x35b   :  { %2376 = dma.done.wait [#allocation3 + $0x1b], 16 }
 0x35c   :  { %2377 = vsyncadd [#allocation3 + $0x1b], 4294967280 }
 0x35d   :  { %2378 = dma.done.wait [#allocation3 + $0x1c], 16 }
 0x35e   :  { %2379 = vsyncadd [#allocation3 + $0x1c], 4294967280 }
 0x35f   :  { %2380 = dma.done.wait [#allocation3 + $0x1d], 16 }
 0x360   :  { %2381 = vsyncadd [#allocation3 + $0x1d], 4294967280 }
 0x361   :  { %2382 = dma.done.wait [#allocation3 + $0x1e], 16 }
 0x362   :  { %2383 = vsyncadd [#allocation3 + $0x1e], 4294967280 }
 0x363   :  { %2384 = dma.done.wait [#allocation3 + $0x1f], 16 }
 0x364   :  { %2385 = vsyncadd [#allocation3 + $0x1f], 4294967280  ;;  %vm725_vm0 = vcmask 1043456   ;;  %v717_v0 = vld [vmem:[#allocation2] sm:$0xf]  ;;  %vm831_vm1 = vcmask 1041409  }
 0x365   :  { %v718_v1 = vld [vmem:[#allocation2 + $0x4] sm:$0xf]  ;;  %v719_v2 = vld [vmem:[#allocation2 + $0x8] sm:$0xf]  ;;  %v720_v3 = vld [vmem:[#allocation2 + $0xc] sm:$0xf] }
 0x366   :  { %v721_v4 = vld [vmem:[#allocation2 + $0x10] sm:$0xf]  ;;  %v722_v5 = vld [vmem:[#allocation2 + $0x14] sm:$0xf]  ;;  %v723_v6 = vld [vmem:[#allocation2 + $0x18] sm:$0xf] }
 0x367   :  { %v726_v7 = vsel %vm725_vm0, %v717_v0, 0.0  ;;  %v733_v8 = vsel %vm725_vm0, %v718_v1, 0.0  ;;  %v724_v9 = vld [vmem:[#allocation2 + $0x1c] sm:$0xf]  ;;  %v740_v12 = vsel %vm725_vm0, %v719_v2, 0.0  ;;  %v747_v13 = vsel %vm725_vm0, %v720_v3, 0.0 }
 0x368   :  { %v727_v10 = vrot.slane %v726_v7, 4  ;;  %v734_v11 = vrot.slane %v733_v8, 4  ;;  %v741_v14 = vrot.slane %v740_v12, 4  ;;  %v748_v15 = vrot.slane %v747_v13, 4  ;;  %s2421_s1 = smov [#allocation6]  }
 0x369   :  { %v754_v16 = vsel %vm725_vm0, %v721_v4, 0.0  ;;  %v761_v17 = vsel %vm725_vm0, %v722_v5, 0.0  ;;  %v768_v24 = vsel %vm725_vm0, %v723_v6, 0.0  ;;  %v775_v25 = vsel %vm725_vm0, %v724_v9, 0.0  ;;  %s854_s16 = sshll.u32 %s2421_s1, 4  ;;  %s855_s16 = int_to_ptr.vmem [resolvable:$true] %s854_s16 }
 0x36a   :  { %v728_v18 = vadd.f32 %v727_v10, %v726_v7  ;;  %v735_v19 = vadd.f32 %v734_v11, %v733_v8  ;;  %v755_v20 = vrot.slane %v754_v16, 4  ;;  %v762_v21 = vrot.slane %v761_v17, 4  ;;  %s2298_s3 = scalar_lea.vmem %s855_s16, 64  ;;  %p2303_p7 = scmp.lt.s32.totalorder %s855_s16, %s855_s16 }
 0x36b   :  { %v742_v22 = vadd.f32 %v741_v14, %v740_v12  ;;  %v749_v23 = vadd.f32 %v748_v15, %v747_v13  ;;  %v769_v32 = vrot.slane %v768_v24, 4  ;;  %v776_v33 = vrot.slane %v775_v25, 4  ;;  %p2299_p6 = scmp.ne.s32.totalorder %s855_s16, %s2298_s3  ;;  %p2304_p10 = scmp.lt.s32.totalorder %s2298_s3, %s2298_s3 }
 0x36c   :  { %v729_v26 = vrot.slane %v728_v18, 2  ;;  %v736_v27 = vrot.slane %v735_v19, 2  ;;  %v756_v28 = vadd.f32 %v755_v20, %v754_v16  ;;  %v763_v29 = vadd.f32 %v762_v21, %v761_v17 }
 0x36d   :  { %v743_v30 = vrot.slane %v742_v22, 2  ;;  %v750_v31 = vrot.slane %v749_v23, 2  ;;  %v770_v40 = vadd.f32 %v769_v32, %v768_v24  ;;  %v777_v41 = vadd.f32 %v776_v33, %v775_v25  ;;  %p2305_p11 = por %p2304_p10, %p2303_p7 }
 0x36e   :  { %v730_v34 = vadd.f32 %v729_v26, %v728_v18  ;;  %v737_v35 = vadd.f32 %v736_v27, %v735_v19  ;;  %v757_v36 = vrot.slane %v756_v28, 2  ;;  %v764_v37 = vrot.slane %v763_v29, 2 }
 0x36f   :  { %v744_v38 = vadd.f32 %v743_v30, %v742_v22  ;;  %v751_v39 = vadd.f32 %v750_v31, %v749_v23  ;;  %vm833_vm2 = vcmask 1042434   ;;  %v771_v48 = vrot.slane %v770_v40, 2  ;;  %p2306_p12 = pnand %p2305_p11, %p2299_p6 }
 0x370   :  { %v731_v42 = vrot.slane %v730_v34, 1  ;;  %v738_v43 = vrot.slane %v737_v35, 1  ;;  %v758_v44 = vadd.f32 %v757_v36, %v756_v28  ;;  %v765_v45 = vadd.f32 %v764_v37, %v763_v29 }
 0x371   :  { %v745_v46 = vrot.slane %v744_v38, 1  ;;  %v752_v47 = vrot.slane %v751_v39, 1  ;;  %v778_v49 = vrot.slane %v777_v41, 2  ;;  %vm835_vm3 = vcmask 1043459  }
 0x372   :  { %v732_v50 = vadd.f32 %v731_v42, %v730_v34  ;;  %v739_v51 = vadd.f32 %v738_v43, %v737_v35  ;;  %v759_v52 = vrot.slane %v758_v44, 1  ;;  %v766_v53 = vrot.slane %v765_v45, 1 }
 0x373   :  { %v746_v54 = vadd.f32 %v745_v46, %v744_v38  ;;  %v753_v55 = vadd.f32 %v752_v47, %v751_v39  ;;  %v772_v56 = vadd.f32 %v771_v48, %v770_v40  ;;  %v779_v57 = vadd.f32 %v778_v49, %v777_v41 }
 0x374   :  { %v760_v58 = vadd.f32 %v759_v52, %v758_v44  ;;  %v767_v59 = vadd.f32 %v766_v53, %v765_v45  ;;  %v783_v60 = vmul.f32 0.25, %v732_v50  ;;  %v784_v61 = vmul.f32 0.25, %v739_v51 }
 0x375   :  { %v773_v62 = vrot.slane %v772_v56, 1  ;;  %v780_v63 = vrot.slane %v779_v57, 1  ;;  %v785_v0 = vmul.f32 0.25, %v746_v54  ;;  %v786_v1 = vmul.f32 0.25, %v753_v55 }
 0x376   :  { %v787_v2 = vmul.f32 0.25, %v760_v58  ;;  %v788_v3 = vmul.f32 0.25, %v767_v59  ;;  %v1476_v4 = vpack.c.bf16 %v783_v60, %v783_v60  ;;  %v1477_v5 = vpack.c.bf16 %v784_v61, %v784_v61 }
 0x377   :  { %v774_v6 = vadd.f32 %v773_v62, %v772_v56  ;;  %v781_v7 = vadd.f32 %v780_v63, %v779_v57  ;;  %v1478_v8 = vpack.c.bf16 %v785_v0, %v785_v0  ;;  %v1479_v9 = vpack.c.bf16 %v786_v1, %v786_v1 }
 0x378   :  { %v1480_v10 = vpack.c.bf16 %v787_v2, %v787_v2  ;;  %v1481_v11 = vpack.c.bf16 %v788_v3, %v788_v3  ;;  %v823_v12 = vunpack.c.l.b16 %v1476_v4  ;;  %v824_v13 = vunpack.c.l.b16 %v1477_v5 }
 0x379   :  { %v789_v14 = vmul.f32 0.25, %v774_v6  ;;  %v790_v15 = vmul.f32 0.25, %v781_v7  ;;  %v825_v16 = vunpack.c.l.b16 %v1478_v8  ;;  %v826_v17 = vunpack.c.l.b16 %v1479_v9 }
 0x37a   :  { %v827_v18 = vunpack.c.l.b16 %v1480_v10  ;;  %v828_v19 = vunpack.c.l.b16 %v1481_v11  ;;  %v832_v20 = vsel %vm831_vm1, %v824_v13, %v823_v12  ;;  %vm837_vm4 = vcmask 1044484  }
 0x37b   :  { %v1482_v21 = vpack.c.bf16 %v789_v14, %v789_v14  ;;  %v1483_v22 = vpack.c.bf16 %v790_v15, %v790_v15  ;;  %v834_v23 = vsel %vm833_vm2, %v825_v16, %v832_v20  ;;  %vm839_vm5 = vcmask 1045509  }
 0x37c   :  { %v836_v24 = vsel %vm835_vm3, %v826_v17, %v834_v23  ;;  %vm841_vm6 = vcmask 1046534   ;;  %vm843_vm7 = vcmask 1047559  }
 0x37d   :  { %v829_v25 = vunpack.c.l.b16 %v1482_v21  ;;  %v830_v26 = vunpack.c.l.b16 %v1483_v22  ;;  %v838_v27 = vsel %vm837_vm4, %v827_v18, %v836_v24 }
 0x37e   :  { %v840_v28 = vsel %vm839_vm5, %v828_v19, %v838_v27 }
 0x37f   :  { %v842_v29 = vsel %vm841_vm6, %v829_v25, %v840_v28 }
 0x380   :  { %v844_v30 = vsel %vm843_vm7, %v830_v26, %v842_v29 }
 0x381   :  { %v845_v31 = vpack.c.b16 %v844_v30, %v844_v30 }
 0x383   :  { %847 = vst [vmem:[#allocation6] sm:$0xf] %v845_v31 }
 0x384   :  { %2309 = shalt.err (!%p2306_p12)
}
 0x385   :  { %s2310_s19 = scalar_lea.hbm %s3138_s2, 64 }
 0x386   :  { %p2311_p1 = scmp.ne.s32.totalorder %s3138_s2, %s2310_s19  ;;  %p2314_p0 = scmp.lt.u32.totalorder %s2310_s19, %s3138_s2 }
 0x388   :  { %p2316_p13 = pnand %p2314_p0, %p2311_p1 }
 0x38a   :  { %2319 = shalt.err (!%p2316_p13)
}
 0x38b   :  { %857 = dma.vmem_to_hbm [thread:$0]  %s855_s16, 64, %s3138_s2, [#allocation7]  }
 0x38c   :  { %2386 = dma.done.wait [#allocation7], 64  }
 0x38d   :  { %2387 = vsyncadd [#allocation7], 4294967232 }
 0x38e   :  { %861 = vsyncpa [#allocation7], 1 }
 0x38f   :  { %862 = vsyncmov [#allocation3] }
 0x392   :  { %s863_s14 = vpop.sfrf %862 }
 0x393   :  { %p1380_p9 = scmp.ne.s32.totalorder %s863_s14, 0 }
 0x395   :  { %867 = shalt.err (%p1380_p9)  }
 0x396   :  { %869 = vsyncmov [#allocation3 + $0x1] }
 0x399   :  { %s870_s4 = vpop.sfrf %869 }
 0x39a   :  { %p1381_p2 = scmp.ne.s32.totalorder %s870_s4, 0 }
 0x39c   :  { %874 = shalt.err (%p1381_p2)  }
 0x39d   :  { %876 = vsyncmov [#allocation3 + $0x2] }
 0x3a0   :  { %s877_s13 = vpop.sfrf %876 }
 0x3a1   :  { %p1382_p3 = scmp.ne.s32.totalorder %s877_s13, 0 }
 0x3a3   :  { %881 = shalt.err (%p1382_p3)  }
 0x3a4   :  { %883 = vsyncmov [#allocation3 + $0x3] }
 0x3a7   :  { %s884_s0 = vpop.sfrf %883 }
 0x3a8   :  { %p1383_p8 = scmp.ne.s32.totalorder %s884_s0, 0 }
 0x3aa   :  { %888 = shalt.err (%p1383_p8)  }
 0x3ab   :  { %890 = vsyncmov [#allocation3 + $0x4] }
 0x3ae   :  { %s891_s2 = vpop.sfrf %890 }
 0x3af   :  { %p1384_p4 = scmp.ne.s32.totalorder %s891_s2, 0 }
 0x3b1   :  { %895 = shalt.err (%p1384_p4)  }
 0x3b2   :  { %897 = vsyncmov [#allocation3 + $0x5] }
 0x3b5   :  { %s898_s15 = vpop.sfrf %897 }
 0x3b6   :  { %p1385_p5 = scmp.ne.s32.totalorder %s898_s15, 0 }
 0x3b8   :  { %902 = shalt.err (%p1385_p5)  }
 0x3b9   :  { %904 = vsyncmov [#allocation3 + $0x6] }
 0x3bc   :  { %s905_s24 = vpop.sfrf %904 }
 0x3bd   :  { %p1386_p6 = scmp.ne.s32.totalorder %s905_s24, 0 }
 0x3bf   :  { %909 = shalt.err (%p1386_p6)  }
 0x3c0   :  { %911 = vsyncmov [#allocation3 + $0x7] }
 0x3c3   :  { %s912_s25 = vpop.sfrf %911 }
 0x3c4   :  { %p1387_p7 = scmp.ne.s32.totalorder %s912_s25, 0 }
 0x3c6   :  { %916 = shalt.err (%p1387_p7)  }
 0x3c7   :  { %918 = vsyncmov [#allocation3 + $0x8] }
 0x3ca   :  { %s919_s22 = vpop.sfrf %918 }
 0x3cb   :  { %p1388_p10 = scmp.ne.s32.totalorder %s919_s22, 0 }
 0x3cd   :  { %923 = shalt.err (%p1388_p10)  }
 0x3ce   :  { %925 = vsyncmov [#allocation3 + $0x9] }
 0x3d1   :  { %s926_s17 = vpop.sfrf %925 }
 0x3d2   :  { %p1389_p11 = scmp.ne.s32.totalorder %s926_s17, 0 }
 0x3d4   :  { %930 = shalt.err (%p1389_p11)  }
 0x3d5   :  { %932 = vsyncmov [#allocation3 + $0xa] }
 0x3d8   :  { %s933_s11 = vpop.sfrf %932 }
 0x3d9   :  { %p1390_p12 = scmp.ne.s32.totalorder %s933_s11, 0 }
 0x3db   :  { %937 = shalt.err (%p1390_p12)  }
 0x3dc   :  { %939 = vsyncmov [#allocation3 + $0xb] }
 0x3df   :  { %s940_s5 = vpop.sfrf %939 }
 0x3e0   :  { %p1391_p1 = scmp.ne.s32.totalorder %s940_s5, 0 }
 0x3e2   :  { %944 = shalt.err (%p1391_p1)  }
 0x3e3   :  { %946 = vsyncmov [#allocation3 + $0xc] }
 0x3e6   :  { %s947_s9 = vpop.sfrf %946 }
 0x3e7   :  { %p1392_p0 = scmp.ne.s32.totalorder %s947_s9, 0 }
 0x3e9   :  { %951 = shalt.err (%p1392_p0)  }
 0x3ea   :  { %953 = vsyncmov [#allocation3 + $0xd] }
 0x3ed   :  { %s954_s20 = vpop.sfrf %953 }
 0x3ee   :  { %p1393_p13 = scmp.ne.s32.totalorder %s954_s20, 0 }
 0x3f0   :  { %958 = shalt.err (%p1393_p13)  }
 0x3f1   :  { %960 = vsyncmov [#allocation3 + $0xe] }
 0x3f4   :  { %s961_s8 = vpop.sfrf %960 }
 0x3f5   :  { %p1394_p9 = scmp.ne.s32.totalorder %s961_s8, 0 }
 0x3f7   :  { %965 = shalt.err (%p1394_p9)  }
 0x3f8   :  { %967 = vsyncmov [#allocation3 + $0xf] }
 0x3fb   :  { %s968_s18 = vpop.sfrf %967 }
 0x3fc   :  { %p1395_p2 = scmp.ne.s32.totalorder %s968_s18, 0 }
 0x3fe   :  { %972 = shalt.err (%p1395_p2)  }
 0x3ff   :  { %974 = vsyncmov [#allocation3 + $0x10] }
 0x402   :  { %s975_s29 = vpop.sfrf %974 }
 0x403   :  { %p1396_p3 = scmp.ne.s32.totalorder %s975_s29, 0 }
 0x405   :  { %979 = shalt.err (%p1396_p3)  }
 0x406   :  { %981 = vsyncmov [#allocation3 + $0x11] }
 0x409   :  { %s982_s26 = vpop.sfrf %981 }
 0x40a   :  { %p1397_p8 = scmp.ne.s32.totalorder %s982_s26, 0 }
 0x40c   :  { %986 = shalt.err (%p1397_p8)  }
 0x40d   :  { %988 = vsyncmov [#allocation3 + $0x12] }
 0x410   :  { %s989_s28 = vpop.sfrf %988 }
 0x411   :  { %p1398_p4 = scmp.ne.s32.totalorder %s989_s28, 0 }
 0x413   :  { %993 = shalt.err (%p1398_p4)  }
 0x414   :  { %995 = vsyncmov [#allocation3 + $0x13] }
 0x417   :  { %s996_s1 = vpop.sfrf %995 }
 0x418   :  { %p1399_p5 = scmp.ne.s32.totalorder %s996_s1, 0 }
 0x41a   :  { %1000 = shalt.err (%p1399_p5)  }
 0x41b   :  { %1002 = vsyncmov [#allocation3 + $0x14] }
 0x41e   :  { %s1003_s16 = vpop.sfrf %1002 }
 0x41f   :  { %p1400_p6 = scmp.ne.s32.totalorder %s1003_s16, 0 }
 0x421   :  { %1007 = shalt.err (%p1400_p6)  }
 0x422   :  { %1009 = vsyncmov [#allocation3 + $0x15] }
 0x425   :  { %s1010_s3 = vpop.sfrf %1009 }
 0x426   :  { %p1401_p7 = scmp.ne.s32.totalorder %s1010_s3, 0 }
 0x428   :  { %1014 = shalt.err (%p1401_p7)  }
 0x429   :  { %1016 = vsyncmov [#allocation3 + $0x16] }
 0x42c   :  { %s1017_s7 = vpop.sfrf %1016 }
 0x42d   :  { %p1402_p10 = scmp.ne.s32.totalorder %s1017_s7, 0 }
 0x42f   :  { %1021 = shalt.err (%p1402_p10)  }
 0x430   :  { %1023 = vsyncmov [#allocation3 + $0x17] }
 0x433   :  { %s1024_s21 = vpop.sfrf %1023 }
 0x434   :  { %p1403_p11 = scmp.ne.s32.totalorder %s1024_s21, 0 }
 0x436   :  { %1028 = shalt.err (%p1403_p11)  }
 0x437   :  { %1030 = vsyncmov [#allocation3 + $0x18] }
 0x43a   :  { %s1031_s19 = vpop.sfrf %1030 }
 0x43b   :  { %p1404_p12 = scmp.ne.s32.totalorder %s1031_s19, 0 }
 0x43d   :  { %1035 = shalt.err (%p1404_p12)  }
 0x43e   :  { %1037 = vsyncmov [#allocation3 + $0x19] }
 0x441   :  { %s1038_s27 = vpop.sfrf %1037 }
 0x442   :  { %p1405_p1 = scmp.ne.s32.totalorder %s1038_s27, 0 }
 0x444   :  { %1042 = shalt.err (%p1405_p1)  }
 0x445   :  { %1044 = vsyncmov [#allocation3 + $0x1a] }
 0x448   :  { %s1045_s30 = vpop.sfrf %1044 }
 0x449   :  { %p1406_p0 = scmp.ne.s32.totalorder %s1045_s30, 0 }
 0x44b   :  { %1049 = shalt.err (%p1406_p0)  }
 0x44c   :  { %1051 = vsyncmov [#allocation3 + $0x1b] }
 0x44f   :  { %s1052_s10 = vpop.sfrf %1051 }
 0x450   :  { %p1407_p13 = scmp.ne.s32.totalorder %s1052_s10, 0 }
 0x452   :  { %1056 = shalt.err (%p1407_p13)  }
 0x453   :  { %1058 = vsyncmov [#allocation3 + $0x1c] }
 0x456   :  { %s1059_s23 = vpop.sfrf %1058 }
 0x457   :  { %p1408_p9 = scmp.ne.s32.totalorder %s1059_s23, 0 }
 0x459   :  { %1063 = shalt.err (%p1408_p9)  }
 0x45a   :  { %1065 = vsyncmov [#allocation3 + $0x1d] }
 0x45d   :  { %s1066_s12 = vpop.sfrf %1065 }
 0x45e   :  { %p1409_p2 = scmp.ne.s32.totalorder %s1066_s12, 0 }
 0x460   :  { %1070 = shalt.err (%p1409_p2)  }
 0x461   :  { %1072 = vsyncmov [#allocation3 + $0x1e] }
 0x464   :  { %s1073_s6 = vpop.sfrf %1072 }
 0x465   :  { %p1410_p3 = scmp.ne.s32.totalorder %s1073_s6, 0 }
 0x467   :  { %1077 = shalt.err (%p1410_p3)  }
 0x468   :  { %1079 = vsyncmov [#allocation3 + $0x1f] }
 0x46b   :  { %s1080_s14 = vpop.sfrf %1079 }
 0x46c   :  { %p1411_p8 = scmp.ne.s32.totalorder %s1080_s14, 0 }
 0x46e   :  { %1084 = shalt.err (%p1411_p8)  }

</bundles_post_ra>
